<compile_context>
chip_gen: v6e
topology: v6e:2x2x1
jax: 0.10.0
libtpu: 0.0.40
codegen_flags: <defaults>
</compile_context>

<pallas_src>
import jax
import jax.numpy as jnp
from jax.experimental import pallas as pl
from jax.experimental.pallas import tpu as pltpu

L_IN = 64             # sequence length (forced by fc1 = Linear(128*32, 256))
C_IN = 45
C1 = 64
C2 = 128
L_POOL = L_IN // 2    # 32
FC1_IN = C2 * L_POOL  # 4096
FC1_OUT = 256
FC2_OUT = 64
FC3_OUT = 2
BN_EPS = 1e-5


# --------------------------------------------------------------------------
# Kernels
# --------------------------------------------------------------------------
def _conv3_same(x2d, w_ref, tb, length, c_out):
    """'same' k=3 Conv1d as 3 per-tap matmuls + output row shifts.

    x2d   : (tb*length, c_in) bf16 activations, row index = b*length + pos
    w_ref : (3, c_in, c_out) weight ref; tap k multiplies x[pos + k - 1]
    returns (tb, length, c_out) f32, without bias.
    """
    y0 = jnp.dot(x2d, w_ref[0], preferred_element_type=jnp.float32).reshape(tb, length, c_out)
    y1 = jnp.dot(x2d, w_ref[1], preferred_element_type=jnp.float32).reshape(tb, length, c_out)
    y2 = jnp.dot(x2d, w_ref[2], preferred_element_type=jnp.float32).reshape(tb, length, c_out)
    zrow = jnp.zeros((tb, 1, c_out), jnp.float32)
    y0s = jnp.concatenate([zrow, y0[:, : length - 1, :]], axis=1)  # y0[pos-1], 0 at pos=0
    y2s = jnp.concatenate([y2[:, 1:, :], zrow], axis=1)            # y2[pos+1], 0 at pos=L-1
    return y0s + y1 + y2s


def conv_pool_kernel(x_ref, w1_ref, b1_ref, w2_ref, b2_ref, o_ref, h2_ref):
    # x_ref : (TB, L_IN, C_IN)  bf16  (native 45 channels, no padding)
    # w1_ref: (3, C_IN, C1) bf16   b1_ref: (1, C1) f32
    # w2_ref: (3, C1, C2)   bf16   b2_ref: (1, C2) f32
    # o_ref : (TB, L_POOL, C2) bf16    h2_ref: (TB, L_IN, C2) f32 scratch
    tb = x_ref.shape[0]

    # conv1 (45 -> 64), 'same'
    x2d = x_ref[...].reshape(tb * L_IN, C_IN)
    h1 = _conv3_same(x2d, w1_ref, tb, L_IN, C1) + b1_ref[...]

    # conv2 (64 -> 128), 'same'; bias is added after the pool
    # (per-channel constant: max(a+c, b+c) == max(a, b) + c).
    h1b = h1.astype(jnp.bfloat16).reshape(tb * L_IN, C1)
    h2_ref[...] = _conv3_same(h1b, w2_ref, tb, L_IN, C2)

    # MaxPool1d(2): pairwise max of even/odd rows via stride-2 sublane reads.
    ev = h2_ref[:, pl.ds(0, L_POOL, 2), :]
    od = h2_ref[:, pl.ds(1, L_POOL, 2), :]
    pooled = jnp.maximum(ev, od) + b2_ref[...]

    # Rows are (b, l)-major with channel minor == fc1's K order (l*128 + c).
    o_ref[...] = pooled.astype(jnp.bfloat16)


def mlp_kernel(flat_ref, wf1_ref, bf1_ref, wf2_ref, bf2_ref, wf3_ref, bf3_ref, o_ref):
    # fc1 + ReLU          (eval-mode BatchNorm1d pre-folded into wf2/bf2)
    h = jnp.dot(flat_ref[...], wf1_ref[...],
                preferred_element_type=jnp.float32) + bf1_ref[...]
    h = jnp.maximum(h, 0.0)
    # fc2 (BN folded) + ReLU
    h = jnp.dot(h.astype(jnp.bfloat16), wf2_ref[...],
                preferred_element_type=jnp.float32) + bf2_ref[...]
    h = jnp.maximum(h, 0.0)
    # fc3
    o_ref[...] = jnp.dot(h.astype(jnp.bfloat16), wf3_ref[...],
                         preferred_element_type=jnp.float32) + bf3_ref[...]


# --------------------------------------------------------------------------
# Parameters
# --------------------------------------------------------------------------
def init_params(key):
    ks = jax.random.split(key, 12)

    def w(k, shape, scale):
        return scale * jax.random.normal(k, shape, jnp.float32)

    return {
        # conv weights stored as (K, C_in, C_out) (= torch (C_out, C_in, K) transposed)
        "w1": w(ks[0], (3, C_IN, C1), 0.05),
        "b1": w(ks[1], (1, C1), 0.05),
        "w2": w(ks[2], (3, C1, C2), 0.05),
        "b2": w(ks[3], (1, C2), 0.05),
        # fc weights stored as (in, out) (= torch weight transposed);
        # fc1 input features indexed c*32 + l, matching torch's x.view(B, -1).
        "wf1": w(ks[4], (FC1_IN, FC1_OUT), 0.02),
        "bf1": w(ks[5], (1, FC1_OUT), 0.02),
        "gamma": 1.0 + 0.1 * jax.random.normal(ks[6], (1, FC1_OUT), jnp.float32),
        "beta": w(ks[7], (1, FC1_OUT), 0.1),
        "mu": w(ks[8], (1, FC1_OUT), 0.1),
        "var": jax.random.uniform(ks[9], (1, FC1_OUT), jnp.float32, 0.5, 1.5),
        "wf2": w(ks[10], (FC1_OUT, FC2_OUT), 0.05),
        "bf2": jnp.zeros((1, FC2_OUT), jnp.float32),
        "wf3": w(ks[11], (FC2_OUT, FC3_OUT), 0.05),
        "bf3": jnp.zeros((1, FC3_OUT), jnp.float32),
    }


def prepare_params(p):
    """One-time, host/XLA-side repack of torch-layout params into kernel layout."""
    # Fold torch's channel-major flatten (index c*32 + l) into a one-time row
    # permutation of wf1 so the kernel-side flatten (index l*128 + c) is free.
    wf1 = p["wf1"].reshape(C2, L_POOL, FC1_OUT).transpose(1, 0, 2)
    wf1 = wf1.reshape(FC1_IN, FC1_OUT).astype(jnp.bfloat16)
    # Fold eval-mode BatchNorm (applied after ReLU) into fc2:
    #   bn(r) = r*s + (beta - mu*s),  s = gamma * rsqrt(var + eps)
    #   fc2(bn(r)) = r @ (diag(s)·wf2) + ((beta - mu*s) @ wf2 + bf2)
    s = p["gamma"] * jax.lax.rsqrt(p["var"] + BN_EPS)               # (1, 256)
    wf2_f = (p["wf2"] * s.reshape(FC1_OUT, 1)).astype(jnp.bfloat16)
    bf2_f = (p["bf2"] + (p["beta"] - p["mu"] * s) @ p["wf2"]).astype(jnp.float32)
    return {
        "w1": p["w1"].astype(jnp.bfloat16), "b1": p["b1"].astype(jnp.float32),
        "w2": p["w2"].astype(jnp.bfloat16), "b2": p["b2"].astype(jnp.float32),
        "wf1": wf1, "bf1": p["bf1"].astype(jnp.float32),
        "wf2": wf2_f, "bf2": bf2_f,
        "wf3": p["wf3"].astype(jnp.bfloat16), "bf3": p["bf3"].astype(jnp.float32),
    }


# --------------------------------------------------------------------------
# Forward
# --------------------------------------------------------------------------
def _pick_tiles(batch):
    """Pad batch to a multiple of 16 and pick per-kernel batch tiles.

    TB_CONV: large M (TB*64 rows per matmul) but keep >=2 grid steps so
    v7x's two TensorCores both get work (no effect on v5e/v6e).
    TB_MLP : as many rows per step as possible (MXU M fill + full bf16
    (16,128) sublane packing of the (TB, 4096) flat block).
    """
    b_pad = max(16, pl.cdiv(batch, 16) * 16)

    def pick(cap, min_tiles):
        t, best = 8, 8
        while t <= cap and b_pad % t == 0:
            if t == 8 or b_pad // t >= min_tiles:
                best = t
            t *= 2
        return best

    return b_pad, pick(64, 2), pick(256, 1)


@jax.jit
def conv1d_model_forward(x_ncl, kp):
    """x_ncl: (B, 45, 64) float32 in NCW layout, like the torch module."""
    batch = x_ncl.shape[0]
    b_pad, tb_conv, tb_mlp = _pick_tiles(batch)

    # NCW -> NLC + bf16 cast (one fused XLA pass); pad only the batch.
    # No channel padding: the conv kernel contracts K=45 directly.
    x_blc = jnp.transpose(x_ncl, (0, 2, 1)).astype(jnp.bfloat16)
    x_blc = jnp.pad(x_blc, ((0, b_pad - batch), (0, 0), (0, 0)))

    pooled = pl.pallas_call(
        conv_pool_kernel,
        out_shape=jax.ShapeDtypeStruct((b_pad, L_POOL, C2), jnp.bfloat16),
        grid=(b_pad // tb_conv,),
        in_specs=[
            pl.BlockSpec((tb_conv, L_IN, C_IN), lambda b: (b, 0, 0)),
            pl.BlockSpec((3, C_IN, C1), lambda b: (0, 0, 0)),
            pl.BlockSpec((1, C1), lambda b: (0, 0)),
            pl.BlockSpec((3, C1, C2), lambda b: (0, 0, 0)),
            pl.BlockSpec((1, C2), lambda b: (0, 0)),
        ],
        out_specs=pl.BlockSpec((tb_conv, L_POOL, C2), lambda b: (b, 0, 0)),
        scratch_shapes=[pltpu.VMEM((tb_conv, L_IN, C2), jnp.float32)],
        compiler_params=pltpu.CompilerParams(dimension_semantics=("parallel",)),
    )(x_blc, kp["w1"], kp["b1"], kp["w2"], kp["b2"])

    # pooled rows are already in fc1's K order -> free, no-copy reshape.
    flat = pooled.reshape(b_pad, FC1_IN)

    out = pl.pallas_call(
        mlp_kernel,
        out_shape=jax.ShapeDtypeStruct((b_pad, FC3_OUT), jnp.float32),
        grid=(b_pad // tb_mlp,),
        in_specs=[
            pl.BlockSpec((tb_mlp, FC1_IN), lambda i: (i, 0)),
            pl.BlockSpec((FC1_IN, FC1_OUT), lambda i: (0, 0)),
            pl.BlockSpec((1, FC1_OUT), lambda i: (0, 0)),
            pl.BlockSpec((FC1_OUT, FC2_OUT), lambda i: (0, 0)),
            pl.BlockSpec((1, FC2_OUT), lambda i: (0, 0)),
            pl.BlockSpec((FC2_OUT, FC3_OUT), lambda i: (0, 0)),
            pl.BlockSpec((1, FC3_OUT), lambda i: (0, 0)),
        ],
        out_specs=pl.BlockSpec((tb_mlp, FC3_OUT), lambda i: (i, 0)),
        compiler_params=pltpu.CompilerParams(dimension_semantics=("parallel",)),
    )(flat, kp["wf1"], kp["bf1"], kp["wf2"], kp["bf2"], kp["wf3"], kp["bf3"])
    return out[:batch]


# --------------------------------------------------------------------------
# Pure-JAX f32 reference (matches the torch module in eval mode)
# --------------------------------------------------------------------------
def reference_forward(x_ncl, p):
    def conv1d_same(x, w_kio, b):
        w_oik = jnp.transpose(w_kio, (2, 1, 0))          # (C_out, C_in, K)
        y = jax.lax.conv_general_dilated(
            x, w_oik, window_strides=(1,), padding=((1, 1),),
            dimension_numbers=("NCH", "OIH", "NCH"))
        return y + b.reshape(1, -1, 1)

    h = conv1d_same(x_ncl, p["w1"], p["b1"])              # conv1 (B, 64, 64)
    h = conv1d_same(h, p["w2"], p["b2"])                  # conv2 (B, 128, 64)
    h = jnp.max(h.reshape(h.shape[0], C2, L_POOL, 2), -1)  # MaxPool1d(2)
    flat = h.reshape(h.shape[0], FC1_IN)                  # x.view(B, -1): c*32 + l
    h = jnp.maximum(flat @ p["wf1"] + p["bf1"], 0.0)      # fc1 + ReLU
    h = (h - p["mu"]) * p["gamma"] / jnp.sqrt(p["var"] + BN_EPS) + p["beta"]
    h = jnp.maximum(h @ p["wf2"] + p["bf2"], 0.0)         # fc2 + ReLU
    return h @ p["wf3"] + p["bf3"]                        # fc3


if __name__ == "__main__":
    key = jax.random.PRNGKey(0)
    pkey, xkey = jax.random.split(key)
    params = init_params(pkey)
    kparams = prepare_params(params)   # one-time repack (transpose / BN fold / bf16)

    B = 16
    x = jax.random.normal(xkey, (B, C_IN, L_IN), jnp.float32)  # NCW, like torch

    out = conv1d_model_forward(x, kparams)
    jax.block_until_ready(out)
    assert out.shape == (B, FC3_OUT) and out.dtype == jnp.float32

    ref = reference_forward(x, params)
    err = float(jnp.max(jnp.abs(out - ref)))
    assert err < 5e-2, f"kernel vs reference mismatch: max abs err = {err}"
    print("KERNEL_OK")
</pallas_src>

<mosaic_0001>
module attributes {stable_mosaic.version = 11 : i64} {
  func.func @conv_pool_kernel(%arg0: i32, %arg1: memref<8x64x45xbf16, #tpu.memory_space<vmem>>, %arg2: memref<3x45x64xbf16, #tpu.memory_space<vmem>>, %arg3: memref<1x64xf32, #tpu.memory_space<vmem>>, %arg4: memref<3x64x128xbf16, #tpu.memory_space<vmem>>, %arg5: memref<1x128xf32, #tpu.memory_space<vmem>>, %arg6: memref<8x32x128xbf16, #tpu.memory_space<vmem>>, %arg7: memref<8x64x128xf32, #tpu.memory_space<vmem>>) attributes {dimension_semantics = [#tpu.dimension_semantics<parallel>], iteration_bounds = array<i64: 2>, scalar_prefetch = 0 : i64, scratch_operands = 1 : i64, tpu.core_type = #tpu.core_type<tc>, window_params = [{transform_indices = @transform_0, window_bounds = array<i64: 8, 64, 45>}, {pipeline_mode = #tpu.pipeline_mode<synchronous>, transform_indices = @transform_1, window_bounds = array<i64: 3, 45, 64>}, {pipeline_mode = #tpu.pipeline_mode<synchronous>, transform_indices = @transform_2, window_bounds = array<i64: 1, 64>}, {pipeline_mode = #tpu.pipeline_mode<synchronous>, transform_indices = @transform_3, window_bounds = array<i64: 3, 64, 128>}, {pipeline_mode = #tpu.pipeline_mode<synchronous>, transform_indices = @transform_4, window_bounds = array<i64: 1, 128>}, {transform_indices = @transform_5, window_bounds = array<i64: 8, 32, 128>}]} {
    %c0 = arith.constant 0 : index
    %c0_0 = arith.constant 0 : index
    %c0_1 = arith.constant 0 : index
    %0 = vector.load %arg1[%c0, %c0_0, %c0_1] : memref<8x64x45xbf16, #tpu.memory_space<vmem>>, vector<8x64x45xbf16>
    %1 = vector.shape_cast %0 : vector<8x64x45xbf16> to vector<512x45xbf16>
    %c0_2 = arith.constant 0 : index
    %c0_3 = arith.constant 0 : index
    %c0_4 = arith.constant 0 : index
    %2 = vector.load %arg2[%c0_2, %c0_3, %c0_4] : memref<3x45x64xbf16, #tpu.memory_space<vmem>>, vector<1x45x64xbf16>
    %3 = vector.shape_cast %2 : vector<1x45x64xbf16> to vector<45x64xbf16>
    %cst = arith.constant dense<0.000000e+00> : vector<512x64xf32>
    %4 = tpu.matmul %1, %3, %cst {dimension_numbers = #tpu.dot_dimension_numbers<[1], [0], [0], [1], [0, 0, 1, 1], [], []>} : vector<512x45xbf16>, vector<45x64xbf16>, vector<512x64xf32> -> vector<512x64xf32>
    %5 = vector.shape_cast %4 : vector<512x64xf32> to vector<8x64x64xf32>
    %c1 = arith.constant 1 : index
    %c0_5 = arith.constant 0 : index
    %c0_6 = arith.constant 0 : index
    %6 = vector.load %arg2[%c1, %c0_5, %c0_6] : memref<3x45x64xbf16, #tpu.memory_space<vmem>>, vector<1x45x64xbf16>
    %7 = vector.shape_cast %6 : vector<1x45x64xbf16> to vector<45x64xbf16>
    %cst_7 = arith.constant dense<0.000000e+00> : vector<512x64xf32>
    %8 = tpu.matmul %1, %7, %cst_7 {dimension_numbers = #tpu.dot_dimension_numbers<[1], [0], [0], [1], [0, 0, 1, 1], [], []>} : vector<512x45xbf16>, vector<45x64xbf16>, vector<512x64xf32> -> vector<512x64xf32>
    %9 = vector.shape_cast %8 : vector<512x64xf32> to vector<8x64x64xf32>
    %c2 = arith.constant 2 : index
    %c0_8 = arith.constant 0 : index
    %c0_9 = arith.constant 0 : index
    %10 = vector.load %arg2[%c2, %c0_8, %c0_9] : memref<3x45x64xbf16, #tpu.memory_space<vmem>>, vector<1x45x64xbf16>
    %11 = vector.shape_cast %10 : vector<1x45x64xbf16> to vector<45x64xbf16>
    %cst_10 = arith.constant dense<0.000000e+00> : vector<512x64xf32>
    %12 = tpu.matmul %1, %11, %cst_10 {dimension_numbers = #tpu.dot_dimension_numbers<[1], [0], [0], [1], [0, 0, 1, 1], [], []>} : vector<512x45xbf16>, vector<45x64xbf16>, vector<512x64xf32> -> vector<512x64xf32>
    %13 = vector.shape_cast %12 : vector<512x64xf32> to vector<8x64x64xf32>
    %cst_11 = arith.constant 0.000000e+00 : f32
    %14 = vector.broadcast %cst_11 : f32 to vector<8x1x64xf32>
    %15 = vector.extract_strided_slice %5 {offsets = [0, 0, 0], sizes = [8, 63, 64], strides = [1, 1, 1]} : vector<8x64x64xf32> to vector<8x63x64xf32>
    %16 = tpu.concatenate %14, %15 in 1 : vector<8x1x64xf32>, vector<8x63x64xf32> -> vector<8x64x64xf32>
    %17 = vector.extract_strided_slice %13 {offsets = [0, 1, 0], sizes = [8, 63, 64], strides = [1, 1, 1]} : vector<8x64x64xf32> to vector<8x63x64xf32>
    %18 = tpu.concatenate %17, %14 in 1 : vector<8x63x64xf32>, vector<8x1x64xf32> -> vector<8x64x64xf32>
    %19 = arith.addf %16, %9 : vector<8x64x64xf32>
    %20 = arith.addf %19, %18 : vector<8x64x64xf32>
    %c0_12 = arith.constant 0 : index
    %c0_13 = arith.constant 0 : index
    %21 = vector.load %arg3[%c0_12, %c0_13] : memref<1x64xf32, #tpu.memory_space<vmem>>, vector<1x64xf32>
    %22 = vector.shape_cast %21 : vector<1x64xf32> to vector<1x1x64xf32>
    %23 = vector.broadcast %22 : vector<1x1x64xf32> to vector<8x64x64xf32>
    %24 = arith.addf %20, %23 : vector<8x64x64xf32>
    %25 = arith.truncf %24 : vector<8x64x64xf32> to vector<8x64x64xbf16>
    %26 = vector.shape_cast %25 : vector<8x64x64xbf16> to vector<512x64xbf16>
    %c0_14 = arith.constant 0 : index
    %c0_15 = arith.constant 0 : index
    %c0_16 = arith.constant 0 : index
    %27 = vector.load %arg4[%c0_14, %c0_15, %c0_16] : memref<3x64x128xbf16, #tpu.memory_space<vmem>>, vector<1x64x128xbf16>
    %28 = vector.shape_cast %27 : vector<1x64x128xbf16> to vector<64x128xbf16>
    %cst_17 = arith.constant dense<0.000000e+00> : vector<512x128xf32>
    %29 = tpu.matmul %26, %28, %cst_17 {dimension_numbers = #tpu.dot_dimension_numbers<[1], [0], [0], [1], [0, 0, 1, 1], [], []>} : vector<512x64xbf16>, vector<64x128xbf16>, vector<512x128xf32> -> vector<512x128xf32>
    %30 = vector.shape_cast %29 : vector<512x128xf32> to vector<8x64x128xf32>
    %c1_18 = arith.constant 1 : index
    %c0_19 = arith.constant 0 : index
    %c0_20 = arith.constant 0 : index
    %31 = vector.load %arg4[%c1_18, %c0_19, %c0_20] : memref<3x64x128xbf16, #tpu.memory_space<vmem>>, vector<1x64x128xbf16>
    %32 = vector.shape_cast %31 : vector<1x64x128xbf16> to vector<64x128xbf16>
    %cst_21 = arith.constant dense<0.000000e+00> : vector<512x128xf32>
    %33 = tpu.matmul %26, %32, %cst_21 {dimension_numbers = #tpu.dot_dimension_numbers<[1], [0], [0], [1], [0, 0, 1, 1], [], []>} : vector<512x64xbf16>, vector<64x128xbf16>, vector<512x128xf32> -> vector<512x128xf32>
    %34 = vector.shape_cast %33 : vector<512x128xf32> to vector<8x64x128xf32>
    %c2_22 = arith.constant 2 : index
    %c0_23 = arith.constant 0 : index
    %c0_24 = arith.constant 0 : index
    %35 = vector.load %arg4[%c2_22, %c0_23, %c0_24] : memref<3x64x128xbf16, #tpu.memory_space<vmem>>, vector<1x64x128xbf16>
    %36 = vector.shape_cast %35 : vector<1x64x128xbf16> to vector<64x128xbf16>
    %cst_25 = arith.constant dense<0.000000e+00> : vector<512x128xf32>
    %37 = tpu.matmul %26, %36, %cst_25 {dimension_numbers = #tpu.dot_dimension_numbers<[1], [0], [0], [1], [0, 0, 1, 1], [], []>} : vector<512x64xbf16>, vector<64x128xbf16>, vector<512x128xf32> -> vector<512x128xf32>
    %38 = vector.shape_cast %37 : vector<512x128xf32> to vector<8x64x128xf32>
    %cst_26 = arith.constant 0.000000e+00 : f32
    %39 = vector.broadcast %cst_26 : f32 to vector<8x1x128xf32>
    %40 = vector.extract_strided_slice %30 {offsets = [0, 0, 0], sizes = [8, 63, 128], strides = [1, 1, 1]} : vector<8x64x128xf32> to vector<8x63x128xf32>
    %41 = tpu.concatenate %39, %40 in 1 : vector<8x1x128xf32>, vector<8x63x128xf32> -> vector<8x64x128xf32>
    %42 = vector.extract_strided_slice %38 {offsets = [0, 1, 0], sizes = [8, 63, 128], strides = [1, 1, 1]} : vector<8x64x128xf32> to vector<8x63x128xf32>
    %43 = tpu.concatenate %42, %39 in 1 : vector<8x63x128xf32>, vector<8x1x128xf32> -> vector<8x64x128xf32>
    %44 = arith.addf %41, %34 : vector<8x64x128xf32>
    %45 = arith.addf %44, %43 : vector<8x64x128xf32>
    %c0_27 = arith.constant 0 : index
    %c0_28 = arith.constant 0 : index
    %c0_29 = arith.constant 0 : index
    %46 = vector.load %arg7[%c0_27, %c0_28, %c0_29] : memref<8x64x128xf32, #tpu.memory_space<vmem>>, vector<8x64x128xf32>
    tpu.vector_store %arg7[%c0_27, %c0_28, %c0_29], %45 {strides = array<i32>} : memref<8x64x128xf32, #tpu.memory_space<vmem>>, vector<8x64x128xf32>,
    %c0_30 = arith.constant 0 : index
    %c0_31 = arith.constant 0 : index
    %c0_32 = arith.constant 0 : index
    %47 = tpu.strided_load %arg7[%c0_30, %c0_31, %c0_32] {strides = array<i32: 1, 2, 1>} : memref<8x64x128xf32, #tpu.memory_space<vmem>>, vector<8x32x128xf32>
    %c0_33 = arith.constant 0 : index
    %c1_34 = arith.constant 1 : index
    %c0_35 = arith.constant 0 : index
    %48 = tpu.strided_load %arg7[%c0_33, %c1_34, %c0_35] {strides = array<i32: 1, 2, 1>} : memref<8x64x128xf32, #tpu.memory_space<vmem>>, vector<8x32x128xf32>
    %49 = arith.maximumf %47, %48 : vector<8x32x128xf32>
    %c0_36 = arith.constant 0 : index
    %c0_37 = arith.constant 0 : index
    %50 = vector.load %arg5[%c0_36, %c0_37] : memref<1x128xf32, #tpu.memory_space<vmem>>, vector<1x128xf32>
    %51 = vector.shape_cast %50 : vector<1x128xf32> to vector<1x1x128xf32>
    %52 = vector.broadcast %51 : vector<1x1x128xf32> to vector<8x32x128xf32>
    %53 = arith.addf %49, %52 : vector<8x32x128xf32>
    %54 = arith.truncf %53 : vector<8x32x128xf32> to vector<8x32x128xbf16>
    %c0_38 = arith.constant 0 : index
    %c0_39 = arith.constant 0 : index
    %c0_40 = arith.constant 0 : index
    %55 = vector.load %arg6[%c0_38, %c0_39, %c0_40] : memref<8x32x128xbf16, #tpu.memory_space<vmem>>, vector<8x32x128xbf16>
    tpu.vector_store %arg6[%c0_38, %c0_39, %c0_40], %54 {strides = array<i32>} : memref<8x32x128xbf16, #tpu.memory_space<vmem>>, vector<8x32x128xbf16>,
    return
  }
  func.func @transform_0(%arg0: i32) -> (i32, i32, i32) {
    %c0_i32 = arith.constant 0 : i32
    %c0_i32_0 = arith.constant 0 : i32
    %c0_i32_1 = arith.constant 0 : i32
    return %arg0, %c0_i32, %c0_i32_0 : i32, i32, i32
  }
  func.func @transform_1(%arg0: i32) -> (i32, i32, i32) {
    %c0_i32 = arith.constant 0 : i32
    %c0_i32_0 = arith.constant 0 : i32
    %c0_i32_1 = arith.constant 0 : i32
    %c0_i32_2 = arith.constant 0 : i32
    return %c0_i32, %c0_i32_0, %c0_i32_1 : i32, i32, i32
  }
  func.func @transform_2(%arg0: i32) -> (i32, i32) {
    %c0_i32 = arith.constant 0 : i32
    %c0_i32_0 = arith.constant 0 : i32
    %c0_i32_1 = arith.constant 0 : i32
    return %c0_i32, %c0_i32_0 : i32, i32
  }
  func.func @transform_3(%arg0: i32) -> (i32, i32, i32) {
    %c0_i32 = arith.constant 0 : i32
    %c0_i32_0 = arith.constant 0 : i32
    %c0_i32_1 = arith.constant 0 : i32
    %c0_i32_2 = arith.constant 0 : i32
    return %c0_i32, %c0_i32_0, %c0_i32_1 : i32, i32, i32
  }
  func.func @transform_4(%arg0: i32) -> (i32, i32) {
    %c0_i32 = arith.constant 0 : i32
    %c0_i32_0 = arith.constant 0 : i32
    %c0_i32_1 = arith.constant 0 : i32
    return %c0_i32, %c0_i32_0 : i32, i32
  }
  func.func @transform_5(%arg0: i32) -> (i32, i32, i32) {
    %c0_i32 = arith.constant 0 : i32
    %c0_i32_0 = arith.constant 0 : i32
    %c0_i32_1 = arith.constant 0 : i32
    return %arg0, %c0_i32, %c0_i32_0 : i32, i32, i32
  }
}

module attributes {stable_mosaic.version = 11 : i64} {
  func.func @mlp_kernel(%arg0: i32, %arg1: memref<16x4096xbf16, #tpu.memory_space<vmem>>, %arg2: memref<4096x256xbf16, #tpu.memory_space<vmem>>, %arg3: memref<1x256xf32, #tpu.memory_space<vmem>>, %arg4: memref<256x64xbf16, #tpu.memory_space<vmem>>, %arg5: memref<1x64xf32, #tpu.memory_space<vmem>>, %arg6: memref<64x2xbf16, #tpu.memory_space<vmem>>, %arg7: memref<1x2xf32, #tpu.memory_space<vmem>>, %arg8: memref<16x2xf32, #tpu.memory_space<vmem>>) attributes {dimension_semantics = [#tpu.dimension_semantics<parallel>], iteration_bounds = array<i64: 1>, scalar_prefetch = 0 : i64, scratch_operands = 0 : i64, tpu.core_type = #tpu.core_type<tc>, window_params = [{transform_indices = @transform_0, window_bounds = array<i64: 16, 4096>}, {pipeline_mode = #tpu.pipeline_mode<synchronous>, transform_indices = @transform_1, window_bounds = array<i64: 4096, 256>}, {pipeline_mode = #tpu.pipeline_mode<synchronous>, transform_indices = @transform_2, window_bounds = array<i64: 1, 256>}, {pipeline_mode = #tpu.pipeline_mode<synchronous>, transform_indices = @transform_3, window_bounds = array<i64: 256, 64>}, {pipeline_mode = #tpu.pipeline_mode<synchronous>, transform_indices = @transform_4, window_bounds = array<i64: 1, 64>}, {pipeline_mode = #tpu.pipeline_mode<synchronous>, transform_indices = @transform_5, window_bounds = array<i64: 64, 2>}, {pipeline_mode = #tpu.pipeline_mode<synchronous>, transform_indices = @transform_6, window_bounds = array<i64: 1, 2>}, {transform_indices = @transform_7, window_bounds = array<i64: 16, 2>}]} {
    %c0 = arith.constant 0 : index
    %c0_0 = arith.constant 0 : index
    %0 = vector.load %arg1[%c0, %c0_0] : memref<16x4096xbf16, #tpu.memory_space<vmem>>, vector<16x4096xbf16>
    %c0_1 = arith.constant 0 : index
    %c0_2 = arith.constant 0 : index
    %1 = vector.load %arg2[%c0_1, %c0_2] : memref<4096x256xbf16, #tpu.memory_space<vmem>>, vector<4096x256xbf16>
    %cst = arith.constant dense<0.000000e+00> : vector<16x256xf32>
    %2 = tpu.matmul %0, %1, %cst {dimension_numbers = #tpu.dot_dimension_numbers<[1], [0], [0], [1], [0, 0, 1, 1], [], []>} : vector<16x4096xbf16>, vector<4096x256xbf16>, vector<16x256xf32> -> vector<16x256xf32>
    %c0_3 = arith.constant 0 : index
    %c0_4 = arith.constant 0 : index
    %3 = vector.load %arg3[%c0_3, %c0_4] : memref<1x256xf32, #tpu.memory_space<vmem>>, vector<1x256xf32>
    %4 = vector.broadcast %3 : vector<1x256xf32> to vector<16x256xf32>
    %5 = arith.addf %2, %4 : vector<16x256xf32>
    %cst_5 = arith.constant 0.000000e+00 : f32
    %6 = vector.broadcast %cst_5 : f32 to vector<16x256xf32>
    %7 = arith.maximumf %5, %6 : vector<16x256xf32>
    %8 = arith.truncf %7 : vector<16x256xf32> to vector<16x256xbf16>
    %c0_6 = arith.constant 0 : index
    %c0_7 = arith.constant 0 : index
    %9 = vector.load %arg4[%c0_6, %c0_7] : memref<256x64xbf16, #tpu.memory_space<vmem>>, vector<256x64xbf16>
    %cst_8 = arith.constant dense<0.000000e+00> : vector<16x64xf32>
    %10 = tpu.matmul %8, %9, %cst_8 {dimension_numbers = #tpu.dot_dimension_numbers<[1], [0], [0], [1], [0, 0, 1, 1], [], []>} : vector<16x256xbf16>, vector<256x64xbf16>, vector<16x64xf32> -> vector<16x64xf32>
    %c0_9 = arith.constant 0 : index
    %c0_10 = arith.constant 0 : index
    %11 = vector.load %arg5[%c0_9, %c0_10] : memref<1x64xf32, #tpu.memory_space<vmem>>, vector<1x64xf32>
    %12 = vector.broadcast %11 : vector<1x64xf32> to vector<16x64xf32>
    %13 = arith.addf %10, %12 : vector<16x64xf32>
    %cst_11 = arith.constant 0.000000e+00 : f32
    %14 = vector.broadcast %cst_11 : f32 to vector<16x64xf32>
    %15 = arith.maximumf %13, %14 : vector<16x64xf32>
    %16 = arith.truncf %15 : vector<16x64xf32> to vector<16x64xbf16>
    %c0_12 = arith.constant 0 : index
    %c0_13 = arith.constant 0 : index
    %17 = vector.load %arg6[%c0_12, %c0_13] : memref<64x2xbf16, #tpu.memory_space<vmem>>, vector<64x2xbf16>
    %cst_14 = arith.constant dense<0.000000e+00> : vector<16x2xf32>
    %18 = tpu.matmul %16, %17, %cst_14 {dimension_numbers = #tpu.dot_dimension_numbers<[1], [0], [0], [1], [0, 0, 1, 1], [], []>} : vector<16x64xbf16>, vector<64x2xbf16>, vector<16x2xf32> -> vector<16x2xf32>
    %c0_15 = arith.constant 0 : index
    %c0_16 = arith.constant 0 : index
    %19 = vector.load %arg7[%c0_15, %c0_16] : memref<1x2xf32, #tpu.memory_space<vmem>>, vector<1x2xf32>
    %20 = vector.broadcast %19 : vector<1x2xf32> to vector<16x2xf32>
    %21 = arith.addf %18, %20 : vector<16x2xf32>
    %c0_17 = arith.constant 0 : index
    %c0_18 = arith.constant 0 : index
    %22 = vector.load %arg8[%c0_17, %c0_18] : memref<16x2xf32, #tpu.memory_space<vmem>>, vector<16x2xf32>
    tpu.vector_store %arg8[%c0_17, %c0_18], %21 {strides = array<i32>} : memref<16x2xf32, #tpu.memory_space<vmem>>, vector<16x2xf32>,
    return
  }
  func.func @transform_0(%arg0: i32) -> (i32, i32) {
    %c0_i32 = arith.constant 0 : i32
    %c0_i32_0 = arith.constant 0 : i32
    return %arg0, %c0_i32 : i32, i32
  }
  func.func @transform_1(%arg0: i32) -> (i32, i32) {
    %c0_i32 = arith.constant 0 : i32
    %c0_i32_0 = arith.constant 0 : i32
    %c0_i32_1 = arith.constant 0 : i32
    return %c0_i32, %c0_i32_0 : i32, i32
  }
  func.func @transform_2(%arg0: i32) -> (i32, i32) {
    %c0_i32 = arith.constant 0 : i32
    %c0_i32_0 = arith.constant 0 : i32
    %c0_i32_1 = arith.constant 0 : i32
    return %c0_i32, %c0_i32_0 : i32, i32
  }
  func.func @transform_3(%arg0: i32) -> (i32, i32) {
    %c0_i32 = arith.constant 0 : i32
    %c0_i32_0 = arith.constant 0 : i32
    %c0_i32_1 = arith.constant 0 : i32
    return %c0_i32, %c0_i32_0 : i32, i32
  }
  func.func @transform_4(%arg0: i32) -> (i32, i32) {
    %c0_i32 = arith.constant 0 : i32
    %c0_i32_0 = arith.constant 0 : i32
    %c0_i32_1 = arith.constant 0 : i32
    return %c0_i32, %c0_i32_0 : i32, i32
  }
  func.func @transform_5(%arg0: i32) -> (i32, i32) {
    %c0_i32 = arith.constant 0 : i32
    %c0_i32_0 = arith.constant 0 : i32
    %c0_i32_1 = arith.constant 0 : i32
    return %c0_i32, %c0_i32_0 : i32, i32
  }
  func.func @transform_6(%arg0: i32) -> (i32, i32) {
    %c0_i32 = arith.constant 0 : i32
    %c0_i32_0 = arith.constant 0 : i32
    %c0_i32_1 = arith.constant 0 : i32
    return %c0_i32, %c0_i32_0 : i32, i32
  }
  func.func @transform_7(%arg0: i32) -> (i32, i32) {
    %c0_i32 = arith.constant 0 : i32
    %c0_i32_0 = arith.constant 0 : i32
    return %arg0, %c0_i32 : i32, i32
  }
}

</mosaic_0001>

<bundles_post_ra>
// kernel: conv1d_model_forward.2
= control target key start
LH: loop header
LB: loop body
LE: loop exit
PB: predicated region body
PF: predicated region fallthrough
CT: control target
= control target key end

     0   :  { %10 = vsyncpa [#allocation4], 0  ;;  %s7754_s0 = inlined_call_operand.vmem [shape: bf16[16,64,45], index: 0, kind: input, shape index: {}]   ;;  %s7755_s1 = inlined_call_operand.hbm [shape: bf16[3,45,64], index: 1, kind: input, shape index: {}]   ;;  %s7756_s2 = inlined_call_operand.hbm [shape: f32[1,64], index: 2, kind: input, shape index: {}]   ;;  %s7757_s3 = inlined_call_operand.hbm [shape: bf16[3,64,128], index: 3, kind: input, shape index: {}]   ;;  %s7758_s4 = inlined_call_operand.hbm [shape: f32[1,128], index: 4, kind: input, shape index: {}]   ;;  %s7759_s5 = inlined_call_operand.vmem [shape: bf16[16,32,128], index: 5, kind: output, shape index: {}]  }
   0x1   :  { %11 = vsyncpa [#allocation6], 0 }
   0x2   :  { %12 = vsyncpa [#allocation9], 0  ;;  %s5864_s18 = smov 0  }
   0x3 LB: > { %s5827_s19 = smov [#allocation5]   ;;  %s4528_s21 = sadd.s32 4294967295, %s5825_s18   ;;  %s5825_s18 = sphi %s5864_s18, %s18_s18  }
   0x4   : > { %s185_s20 = sshll.u32 %s5827_s19, 4  ;;  %p4530_p0 = scmp.ge.s32.totalorder %s5825_s18, 1  ;;  %s186_s20 = int_to_ptr.vmem [resolvable:$true] %s185_s20 }
   0x5   : > { %p159_p1 = scmp.lt.s32.totalorder %s5825_s18, 3  ;;  %p5874_p2 = scmp.eq.s32.totalorder %s4528_s21, 0 }
   0x6   : > { %s5828_s24 = smov [#allocation3]   ;;  %s5829_s27 = smov [#allocation7]  }
   0x7   : > { %p5878_p3 = pnand %p4530_p0, %p159_p1  ;;  %s171_s25 = sshll.u32 %s5828_s24, 4  ;;  %s5884_s25 = int_to_ptr.vmem [resolvable:$true] %s171_s25 }
   0x8   : > { %s195_s28 = sshll.u32 %s5829_s27, 4  ;;  %s5830_s29 = smov [#allocation8]   ;;  %s5892_s28 = int_to_ptr.vmem [resolvable:$true] %s195_s28 }
   0x9   : > { %p5612_p4 = pneg %p5878_p3  ;;  %s5894_s30 = sshll.u32 %s5830_s29, 4  ;;  %s210_s30 = int_to_ptr.vmem [resolvable:$true] %s5894_s30 }
   0xa   : > { %s5714_s6 = scalar_lea.vmem %s186_s20, 16  ;;  %s5721_s7 = scalar_lea.vmem %s186_s20, 32 }
   0xb   : > { %p5888_p5 = pnand %p5874_p2, %p5612_p4  ;;  %p5715_p7 = scmp.ne.s32.totalorder %s186_s20, %s5714_s6 }
   0xc   : > { %p5722_p10 = scmp.lt.s32.totalorder %s186_s20, %s186_s20  ;;  %p5723_p11 = scmp.lt.s32.totalorder %s5721_s7, %s5714_s6 }
   0xd   : > { %p5705_p6 = pneg %p5888_p5 }
   0xe   : > { %p5724_p12 = por %p5723_p11, %p5722_p10 }
   0xf   : > { %p5717_p8 = pnand %p5715_p7, %p5705_p6 }
  0x11   : > { %p5718_p9 = pneg %p5717_p8 }
  0x13   : > { %p5725_p13 = pnand %p5724_p12, %p5718_p9 }
  0x15   : > { %5728 = shalt.err (!%p5725_p13)
}
  0x16   : > { %5618 = dma.hbm_to_vmem [thread:$0]  (!%p5888_p5), %s7756_s2, 16, %s186_s20, [#allocation6]  }
  0x17   : > { %s5740_s10 = scalar_lea.vmem %s5884_s25, 1152  ;;  %p5748_p7 = scmp.lt.s32.totalorder %s5884_s25, %s5884_s25 }
  0x18   : > { %p5741_p0 = scmp.ne.s32.totalorder %s5884_s25, %s5740_s10  ;;  %p5749_p8 = scmp.lt.s32.totalorder %s5740_s10, %s5740_s10 }
  0x1a   : > { %p5743_p1 = pnand %p5741_p0, %p5705_p6  ;;  %p5750_p9 = por %p5749_p8, %p5748_p7 }
  0x1c   : > { %p5744_p4 = pneg %p5743_p1 }
  0x1e   : > { %p5751_p10 = pnand %p5750_p9, %p5744_p4 }
  0x20   : > { %5754 = shalt.err (!%p5751_p10)
}
  0x21   : > { %s5831_s11 = smov 64   ;;  %s5832_s12 = smov 4  }
  0x22   : > { %5615 = dma.hbm_to_vmem [thread:$0]  (!%p5888_p5), %s7755_s1, 1152, %s5884_s25, [#allocation4], %s5831_s11, %s5831_s11, %s5832_s12  }
  0x23   : > { %s5766_s15 = scalar_lea.vmem %s5892_s28, 1536  ;;  %p5774_p0 = scmp.lt.s32.totalorder %s5892_s28, %s5892_s28 }
  0x24   : > { %p5767_p11 = scmp.ne.s32.totalorder %s5892_s28, %s5766_s15  ;;  %p5775_p1 = scmp.lt.s32.totalorder %s5766_s15, %s5766_s15 }
  0x26   : > { %p5769_p12 = pnand %p5767_p11, %p5705_p6  ;;  %p5776_p4 = por %p5775_p1, %p5774_p0 }
  0x28   : > { %p5770_p13 = pneg %p5769_p12 }
  0x2a   : > { %p5777_p7 = pnand %p5776_p4, %p5770_p13 }
  0x2c   : > { %5780 = shalt.err (!%p5777_p7)
}
  0x2d   : > { %5621 = dma.hbm_to_vmem [thread:$0]  (!%p5888_p5), %s7757_s3, 1536, %s5892_s28, [#allocation6], %s5831_s11, %s5831_s11, %s5832_s12  }
  0x2e   : > { %s5792_s19 = scalar_lea.vmem %s210_s30, 16  ;;  %s5799_s20 = scalar_lea.vmem %s210_s30, 32 }
  0x2f   : > { %p5793_p8 = scmp.ne.s32.totalorder %s210_s30, %s5792_s19  ;;  %p5800_p11 = scmp.lt.s32.totalorder %s210_s30, %s210_s30 }
  0x30   : > { %p5801_p12 = scmp.lt.s32.totalorder %s5799_s20, %s5792_s19 }
  0x31   : > { %p5795_p9 = pnand %p5793_p8, %p5705_p6 }
  0x32   : > { %p5802_p13 = por %p5801_p12, %p5800_p11 }
  0x33   : > { %p5796_p10 = pneg %p5795_p9 }
  0x35   : > { %p5803_p0 = pnand %p5802_p13, %p5796_p10 }
  0x37   : > { %5806 = shalt.err (!%p5803_p0)
}
  0x38   : > { %5624 = dma.hbm_to_vmem [thread:$0]  (!%p5888_p5), %s7758_s4, 16, %s210_s30, [#allocation9]  }
  0x39   : > { %232 = sbr.rel (%p5878_p3) target bundleno = 892 (0x37c), region = 40 }
  0x3e   : > { %5812 = dma.done.wait (%p5874_p2), [#allocation4], 1152  }
  0x3f   : > { %5814 = vsyncadd (%p5874_p2), [#allocation4], 4294966144 }
  0x40   : > { %5816 = dma.done.wait (%p5874_p2), [#allocation6], 1552  }
  0x41   : > { %5818 = vsyncadd (%p5874_p2), [#allocation6], 4294965744 }
  0x42   : > { %5820 = dma.done.wait (%p5874_p2), [#allocation9], 16  }
  0x43   : > { %5822 = vsyncadd (%p5874_p2), [#allocation9], 4294967280  ;;  %vm633_vm0 = vcmask 1045504   ;;  %s4541_s23 = sshll.u32 %s4528_s21, 3  ;;  %vm634_vm1 = vcmask 1046528   ;;  %v5833_v0 = vmov 65535  }
  0x44   : > { %p275_p3 = scmp.lt.s32.totalorder %s4541_s23, 15  ;;  %v635_v1 = vsel %vm633_vm0, 4294967295, %v5833_v0  ;;  %v5648_v3 = vld [vmem:[#allocation3 + $0x10] sm:$0x7f]   ;;  %v5649_v4 = vld [vmem:[#allocation3 + $0x28] sm:$0x7f]  }
  0x45   : > { %v636_v2 = vsel %vm634_vm1, %v635_v1, 0  ;;  %v5650_v6 = vld [vmem:[#allocation3 + $0x8] sm:$0xff]   ;;  %v5651_v8 = vld [vmem:[#allocation3 + $0x20] sm:$0xff]   ;;  %vm536_vm2 = vcmask 367616   ;;  %v5654_v11 = vld [vmem:[#allocation3 + $0x18] sm:$0xff]   ;;  %vm1625_vm3 = vcmask 1040384  }
  0x46   : > { %s8054_s23 = smov (!%p275_p3, %s4541_s23), 15  ;;  %v638_v5 = vand.u32 %v5648_v3, %v636_v2  ;;  %v954_v7 = vand.u32 %v5649_v4, %v636_v2  ;;  %v5652_v10 = vld [vmem:[#allocation3] sm:$0xff]   ;;  %v5667_v16 = vld [vmem:[#allocation3 + $0x38] sm:$0xff]   ;;  %v5678_v21 = vld [vmem:[#allocation3 + $0x30] sm:$0xff]   ;;  %vm2337_vm4 = vcmask 523264  }
  0x47   : > { %s4828_s26 = sshll.u32 %s8054_s23, 5  ;;  %v5656_v12 = vld [vmem:[#allocation3 + $0x40] sm:$0x7f]   ;;  %v5691_v49 = vld [vmem:[#allocation7 + $0x8] sm:$0xff]   ;;  %v5692_v50 = vld [vmem:[#allocation7] sm:$0xff]   ;;  %s4829_s21 = sshll.u32 %s8054_s23, 4 }
  0x48   : > { %s5964_s28 = scalar_lea.vmem %s7754_s0, %s4828_s26  ;;  %5170 = vmatprep.subr.bf16.mxu0 %v638_v5  ;;  %5240 = vmatprep.subr.bf16.mxu1 %v954_v7  ;;  %v1270_v13 = vand.u32 %v5656_v12, %v636_v2  ;;  %v5689_v40 = vld [vmem:[#allocation7 + $0x18] sm:$0xff]   ;;  %v5690_v48 = vld [vmem:[#allocation7 + $0x10] sm:$0xff]   ;;  %s7500_s6 = scalar_lea.vmem %s7759_s5, %s4829_s21 }
  0x49   : > { %5171 = vmatpush3.bf16.msra.mxu0 %v638_v5  ;;  %v5967_v9 = vld [vmem:[%s5964_s28] sm:$0xff]   ;;  %5241 = vmatpush3.bf16.msra.mxu1 %v954_v7  ;;  %v5974_v14 = vld [vmem:[%s5964_s28 + $0x8] sm:$0xff]   ;;  %v5977_v15 = vld [vmem:[%s5964_s28 + $0x10] sm:$0xff]  }
  0x4a   : > { %5172 = vmatprep.subr.bf16.mxu0 %v5650_v6  ;;  %5242 = vmatprep.subr.bf16.mxu1 %v5651_v8  ;;  %v5988_v17 = vld [vmem:[%s5964_s28 + $0x18] sm:$0xff]   ;;  %v5991_v18 = vld [vmem:[%s5964_s28 + $0x20] sm:$0xff]   ;;  %v6002_v19 = vld [vmem:[%s5964_s28 + $0x28] sm:$0xff]  }
  0x4b   : > { %5176 = vmatprep.mubr.msk.bf16.mxu0 %vm536_vm2, %v5967_v9  ;;  %5246 = vmatprep.mubr.msk.bf16.mxu1 %vm536_vm2, %v5967_v9  ;;  %v6005_v20 = vld [vmem:[%s5964_s28 + $0x30] sm:$0xff]   ;;  %v6016_v22 = vld [vmem:[%s5964_s28 + $0x38] sm:$0xff]   ;;  %v6019_v23 = vld [vmem:[%s5964_s28 + $0x40] sm:$0xff]  }
  0x4c   : > { %v6028_v24 = vld [vmem:[%s5964_s28 + $0x48] sm:$0xff]   ;;  %v6033_v25 = vld [vmem:[%s5964_s28 + $0x50] sm:$0xff]   ;;  %v6044_v26 = vld [vmem:[%s5964_s28 + $0x58] sm:$0xff]  }
  0x4d   : > { %5173 = vmatpush3.bf16.msra.mxu0 %v5650_v6  ;;  %5243 = vmatpush3.bf16.msra.mxu1 %v5651_v8  ;;  %v6047_v27 = vld [vmem:[%s5964_s28 + $0x60] sm:$0xff]   ;;  %v6058_v28 = vld [vmem:[%s5964_s28 + $0x68] sm:$0xff]   ;;  %v6061_v29 = vld [vmem:[%s5964_s28 + $0x70] sm:$0xff]  }
  0x4e   : > { %5174 = vmatprep.subr.bf16.mxu0 %v5652_v10  ;;  %5244 = vmatprep.subr.bf16.mxu1 %v5654_v11  ;;  %v6072_v30 = vld [vmem:[%s5964_s28 + $0x78] sm:$0xff]   ;;  %v6075_v31 = vld [vmem:[%s5964_s28 + $0x80] sm:$0xff]   ;;  %v6086_v32 = vld [vmem:[%s5964_s28 + $0x88] sm:$0xff]  }
  0x4f   : > { %v6089_v33 = vld [vmem:[%s5964_s28 + $0x90] sm:$0xff]   ;;  %v6100_v34 = vld [vmem:[%s5964_s28 + $0x98] sm:$0xff]   ;;  %v6103_v35 = vld [vmem:[%s5964_s28 + $0xa0] sm:$0xff]  }
  0x50   : > { %v6114_v36 = vld [vmem:[%s5964_s28 + $0xa8] sm:$0xff]   ;;  %v6117_v37 = vld [vmem:[%s5964_s28 + $0xb0] sm:$0xff]   ;;  %v6128_v38 = vld [vmem:[%s5964_s28 + $0xb8] sm:$0xff]  }
  0x51   : > { %5175 = vmatpush3.bf16.msra.mxu0 %v5652_v10  ;;  %5245 = vmatpush3.bf16.msra.mxu1 %v5654_v11  ;;  %v6131_v39 = vld [vmem:[%s5964_s28 + $0xc0] sm:$0xff]   ;;  %v6142_v41 = vld [vmem:[%s5964_s28 + $0xc8] sm:$0xff]   ;;  %v6145_v42 = vld [vmem:[%s5964_s28 + $0xd0] sm:$0xff]  }
  0x52   : > { %5310 = vmatprep.subr.bf16.mxu0 %v1270_v13  ;;  %5380 = vmatprep.subr.bf16.mxu1 %v5689_v40  ;;  %v6156_v43 = vld [vmem:[%s5964_s28 + $0xd8] sm:$0xff]   ;;  %v6159_v44 = vld [vmem:[%s5964_s28 + $0xe0] sm:$0xff]   ;;  %v6170_v45 = vld [vmem:[%s5964_s28 + $0xe8] sm:$0xff]  }
  0x53   : > { %v6173_v46 = vld [vmem:[%s5964_s28 + $0xf0] sm:$0xff]   ;;  %v6184_v47 = vld [vmem:[%s5964_s28 + $0xf8] sm:$0xff]   ;;  %v5693_v54 = vld [vmem:[#allocation7 + $0x38] sm:$0xff]  }
  0x54   : > { %5177 = vmatmul.mubr.msk.bf16.vlgmr.msra.gmra.mxu0 %vm536_vm2, %v5974_v14  ;;  %5247 = vmatmul.mubr.msk.bf16.vlgmr.msra.gmra.mxu1 %vm536_vm2, %v5974_v14  ;;  %v5694_v60 = vld [vmem:[#allocation7 + $0x30] sm:$0xff]   ;;  %v5695_v5 = vld [vmem:[#allocation7 + $0x28] sm:$0xff]  }
  0x55   : > { %5311 = vmatpush3.bf16.msra.mxu0 %v1270_v13  ;;  %5180 = vmatprep.mubr.msk.bf16.mxu0 %vm536_vm2, %v5977_v15 }
  0x56   : > { %5250 = vmatprep.mubr.msk.bf16.mxu1 %vm536_vm2, %v5977_v15  ;;  %5312 = vmatprep.subr.bf16.mxu0 %v5667_v16 }
  0x57   : > { %5381 = vmatpush3.bf16.msra.mxu1 %v5689_v40 }
  0x58   : > { %5382 = vmatprep.subr.bf16.mxu1 %v5690_v48 }
  0x59   : > { %5313 = vmatpush3.bf16.msra.mxu0 %v5667_v16 }
  0x5a   : > { %5314 = vmatprep.subr.bf16.mxu0 %v5678_v21 }
  0x5b   : > { %5383 = vmatpush3.bf16.msra.mxu1 %v5690_v48 }
  0x5c   : > { %5181 = vmatmul.mubr.msk.bf16.gmra.mxu0 %vm536_vm2, %v5988_v17  ;;  %5251 = vmatmul.mubr.msk.bf16.gmra.mxu1 %vm536_vm2, %v5988_v17 }
  0x5d   : > { %5184 = vmatprep.mubr.msk.bf16.mxu0 %vm536_vm2, %v5991_v18  ;;  %5254 = vmatprep.mubr.msk.bf16.mxu1 %vm536_vm2, %v5991_v18 }
  0x5e   : > { %5315 = vmatpush3.bf16.msra.mxu0 %v5678_v21  ;;  %5384 = vmatprep.subr.bf16.mxu1 %v5691_v49 }
  0x5f   : > { %5385 = vmatpush3.bf16.msra.mxu1 %v5691_v49  ;;  %5452 = vmatprep.subr.bf16.mxu0 %v5693_v54 }
  0x60   : > { %5386 = vmatprep.subr.bf16.mxu1 %v5692_v50 }
  0x63   : > { %5387 = vmatpush3.bf16.msra.mxu1 %v5692_v50 }
  0x64   : > { %5185 = vmatmul.mubr.msk.bf16.gmra.mxu0 %vm536_vm2, %v6002_v19  ;;  %5255 = vmatmul.mubr.msk.bf16.gmra.mxu1 %vm536_vm2, %v6002_v19 }
  0x65   : > { %5188 = vmatprep.mubr.msk.bf16.mxu0 %vm536_vm2, %v6005_v20  ;;  %5258 = vmatprep.mubr.msk.bf16.mxu1 %vm536_vm2, %v6005_v20 }
  0x6c   : > { %5189 = vmatmul.mubr.msk.bf16.gmra.mxu0 %vm536_vm2, %v6016_v22  ;;  %5259 = vmatmul.mubr.msk.bf16.gmra.mxu1 %vm536_vm2, %v6016_v22 }
  0x6d   : > { %5192 = vmatprep.mubr.msk.bf16.mxu0 %vm536_vm2, %v6019_v23  ;;  %5262 = vmatprep.mubr.msk.bf16.mxu1 %vm536_vm2, %v6019_v23 }
  0x74   : > { %5193 = vmatmul.mubr.msk.bf16.gmra.mxu0 %vm536_vm2, %v6028_v24  ;;  %5263 = vmatmul.mubr.msk.bf16.gmra.mxu1 %vm536_vm2, %v6028_v24 }
  0x75   : > { %5196 = vmatprep.mubr.msk.bf16.mxu0 %vm536_vm2, %v6033_v25  ;;  %5266 = vmatprep.mubr.msk.bf16.mxu1 %vm536_vm2, %v6033_v25 }
  0x7c   : > { %5197 = vmatmul.mubr.msk.bf16.gmra.mxu0 %vm536_vm2, %v6044_v26  ;;  %5267 = vmatmul.mubr.msk.bf16.gmra.mxu1 %vm536_vm2, %v6044_v26 }
  0x7d   : > { %5200 = vmatprep.mubr.msk.bf16.mxu0 %vm536_vm2, %v6047_v27  ;;  %5270 = vmatprep.mubr.msk.bf16.mxu1 %vm536_vm2, %v6047_v27 }
  0x84   : > { %5201 = vmatmul.mubr.msk.bf16.gmra.mxu0 %vm536_vm2, %v6058_v28  ;;  %5271 = vmatmul.mubr.msk.bf16.gmra.mxu1 %vm536_vm2, %v6058_v28 }
  0x85   : > { %5204 = vmatprep.mubr.msk.bf16.mxu0 %vm536_vm2, %v6061_v29  ;;  %5274 = vmatprep.mubr.msk.bf16.mxu1 %vm536_vm2, %v6061_v29 }
  0x8c   : > { %5205 = vmatmul.mubr.msk.bf16.gmra.mxu0 %vm536_vm2, %v6072_v30  ;;  %5275 = vmatmul.mubr.msk.bf16.gmra.mxu1 %vm536_vm2, %v6072_v30 }
  0x8d   : > { %5208 = vmatprep.mubr.msk.bf16.mxu0 %vm536_vm2, %v6075_v31  ;;  %5278 = vmatprep.mubr.msk.bf16.mxu1 %vm536_vm2, %v6075_v31 }
  0x94   : > { %5209 = vmatmul.mubr.msk.bf16.gmra.mxu0 %vm536_vm2, %v6086_v32  ;;  %5279 = vmatmul.mubr.msk.bf16.gmra.mxu1 %vm536_vm2, %v6086_v32 }
  0x95   : > { %5212 = vmatprep.mubr.msk.bf16.mxu0 %vm536_vm2, %v6089_v33  ;;  %5282 = vmatprep.mubr.msk.bf16.mxu1 %vm536_vm2, %v6089_v33 }
  0x9c   : > { %5213 = vmatmul.mubr.msk.bf16.gmra.mxu0 %vm536_vm2, %v6100_v34  ;;  %5283 = vmatmul.mubr.msk.bf16.gmra.mxu1 %vm536_vm2, %v6100_v34 }
  0x9d   : > { %5216 = vmatprep.mubr.msk.bf16.mxu0 %vm536_vm2, %v6103_v35  ;;  %5286 = vmatprep.mubr.msk.bf16.mxu1 %vm536_vm2, %v6103_v35 }
  0xa4   : > { %5217 = vmatmul.mubr.msk.bf16.gmra.mxu0 %vm536_vm2, %v6114_v36  ;;  %5287 = vmatmul.mubr.msk.bf16.gmra.mxu1 %vm536_vm2, %v6114_v36 }
  0xa5   : > { %5220 = vmatprep.mubr.msk.bf16.mxu0 %vm536_vm2, %v6117_v37  ;;  %5290 = vmatprep.mubr.msk.bf16.mxu1 %vm536_vm2, %v6117_v37 }
  0xac   : > { %5221 = vmatmul.mubr.msk.bf16.gmra.mxu0 %vm536_vm2, %v6128_v38  ;;  %5291 = vmatmul.mubr.msk.bf16.gmra.mxu1 %vm536_vm2, %v6128_v38 }
  0xad   : > { %5224 = vmatprep.mubr.msk.bf16.mxu0 %vm536_vm2, %v6131_v39  ;;  %5294 = vmatprep.mubr.msk.bf16.mxu1 %vm536_vm2, %v6131_v39 }
  0xb4   : > { %5225 = vmatmul.mubr.msk.bf16.gmra.mxu0 %vm536_vm2, %v6142_v41  ;;  %5295 = vmatmul.mubr.msk.bf16.gmra.mxu1 %vm536_vm2, %v6142_v41 }
  0xb5   : > { %5228 = vmatprep.mubr.msk.bf16.mxu0 %vm536_vm2, %v6145_v42  ;;  %5298 = vmatprep.mubr.msk.bf16.mxu1 %vm536_vm2, %v6145_v42 }
  0xbc   : > { %5229 = vmatmul.mubr.msk.bf16.gmra.mxu0 %vm536_vm2, %v6156_v43  ;;  %5299 = vmatmul.mubr.msk.bf16.gmra.mxu1 %vm536_vm2, %v6156_v43 }
  0xbd   : > { %5232 = vmatprep.mubr.msk.bf16.mxu0 %vm536_vm2, %v6159_v44  ;;  %5302 = vmatprep.mubr.msk.bf16.mxu1 %vm536_vm2, %v6159_v44 }
  0xc4   : > { %5233 = vmatmul.mubr.msk.bf16.gmra.mxu0 %vm536_vm2, %v6170_v45  ;;  %5303 = vmatmul.mubr.msk.bf16.gmra.mxu1 %vm536_vm2, %v6170_v45 }
  0xc5   : > { %5236 = vmatprep.mubr.msk.bf16.mxu0 %vm536_vm2, %v6173_v46  ;;  %5306 = vmatprep.mubr.msk.bf16.mxu1 %vm536_vm2, %v6173_v46 }
  0xcc   : > { %5237 = vmatmul.mubr.msk.bf16.gmra.mxu0 %vm536_vm2, %v6184_v47  ;;  %5307 = vmatmul.mubr.msk.bf16.gmra.mxu1 %vm536_vm2, %v6184_v47 }
  0xcd   : > { %5316 = vmatprep.mubr.msk.bf16.mxu0 %vm536_vm2, %v5967_v9 }
  0xd4   : > { %5317 = vmatmul.mubr.msk.bf16.vlgmr.msra.gmra.mxu0 %vm536_vm2, %v5974_v14 }
  0xd5   : > { %5320 = vmatprep.mubr.msk.bf16.mxu0 %vm536_vm2, %v5977_v15  ;;  %5453 = vmatpush3.bf16.msra.mxu0 %v5693_v54  ;;  %v5696_v15 = vld [vmem:[#allocation7 + $0x20] sm:$0xff]  }
  0xd6   : > { %5454 = vmatprep.subr.bf16.mxu0 %v5694_v60 }
  0xd9   : > { %5455 = vmatpush3.bf16.msra.mxu0 %v5694_v60 }
  0xda   : > { %5456 = vmatprep.subr.bf16.mxu0 %v5695_v5 }
  0xdc   : > { %5321 = vmatmul.mubr.msk.bf16.gmra.mxu0 %vm536_vm2, %v5988_v17 }
  0xdd   : > { %5324 = vmatprep.mubr.msk.bf16.mxu0 %vm536_vm2, %v5991_v18  ;;  %5457 = vmatpush3.bf16.msra.mxu0 %v5695_v5 }
  0xde   : > { %5458 = vmatprep.subr.bf16.mxu0 %v5696_v15 }
  0xe1   : > { %5459 = vmatpush3.bf16.msra.mxu0 %v5696_v15 }
  0xe4   : > { %5325 = vmatmul.mubr.msk.bf16.gmra.mxu0 %vm536_vm2, %v6002_v19 }
  0xe5   : > { %5328 = vmatprep.mubr.msk.bf16.mxu0 %vm536_vm2, %v6005_v20 }
  0xec   : > { %5329 = vmatmul.mubr.msk.bf16.gmra.mxu0 %vm536_vm2, %v6016_v22 }
  0xed   : > { %5332 = vmatprep.mubr.msk.bf16.mxu0 %vm536_vm2, %v6019_v23 }
  0xf4   : > { %5333 = vmatmul.mubr.msk.bf16.gmra.mxu0 %vm536_vm2, %v6028_v24 }
  0xf5   : > { %5336 = vmatprep.mubr.msk.bf16.mxu0 %vm536_vm2, %v6033_v25 }
  0xfc   : > { %5337 = vmatmul.mubr.msk.bf16.gmra.mxu0 %vm536_vm2, %v6044_v26 }
  0xfd   : > { %5340 = vmatprep.mubr.msk.bf16.mxu0 %vm536_vm2, %v6047_v27 }
 0x104   : > { %5341 = vmatmul.mubr.msk.bf16.gmra.mxu0 %vm536_vm2, %v6058_v28 }
 0x105   : > { %5344 = vmatprep.mubr.msk.bf16.mxu0 %vm536_vm2, %v6061_v29 }
 0x10c   : > { %5345 = vmatmul.mubr.msk.bf16.gmra.mxu0 %vm536_vm2, %v6072_v30 }
 0x10d   : > { %5348 = vmatprep.mubr.msk.bf16.mxu0 %vm536_vm2, %v6075_v31 }
 0x114   : > { %v5178_v51 = vpop.f32.mrf.mxu0  ;;  %5349 = vmatmul.mubr.msk.bf16.gmra.mxu0 %vm536_vm2, %v6086_v32  ;;  %v6230_v53 = vpop.f32.mrf.mxu1 }
 0x115   : > { %5352 = vmatprep.mubr.msk.bf16.mxu0 %vm536_vm2, %v6089_v33  ;;  %v1629_v56 = vrot.slane %v5178_v51, 7 }
 0x116   : > { %v6228_v52 = vpop.f32.mrf.mxu0  ;;  %v6232_v58 = vpop.f32.mrf.mxu1 }
 0x117   : > { %v7767_v61 = vrot.slane %v6228_v52, 7 }
 0x118   : > { %v5179_v55 = vpop.f32.mrf.mxu0  ;;  %v6250_v3 = vpop.f32.mrf.mxu1 }
 0x119   : > { %v1631_v57 = vrot.slane %v5179_v55, 7 }
 0x11a   : > { %v677_v59 = vpop.f32.mrf.mxu0  ;;  %v6255_v11 = vpop.f32.mrf.mxu1 }
 0x11b   : > { %v1627_v62 = vrot.slane %v677_v59, 7  ;;  %v6236_v63 = vsel %vm1625_vm3, %v1629_v56, %v1631_v57 }
 0x11c   : > { %v5182_v0 = vpop.f32.mrf.mxu0  ;;  %5353 = vmatmul.mubr.msk.bf16.gmra.mxu0 %vm536_vm2, %v6100_v34  ;;  %v6270_v19 = vpop.f32.mrf.mxu1  ;;  %v6294_v34 = vld [vmem:[#allocation7 + $0x58] sm:$0xff]  }
 0x11d   : > { %v6241_v1 = vsel %vm1625_vm3, %v1627_v62, %v1629_v56  ;;  %v6246_v2 = vsel %vm1625_vm3, %v7767_v61, %v1627_v62  ;;  %5356 = vmatprep.mubr.msk.bf16.mxu0 %vm536_vm2, %v6103_v35  ;;  %v1637_v8 = vrot.slane %v5182_v0, 7  ;;  %5524 = vmatprep.subr.bf16.mxu1 %v6294_v34 }
 0x11e   : > { %v690_v4 = vpop.f32.mrf.mxu0  ;;  %v6274_v24 = vpop.f32.mrf.mxu1 }
 0x11f   : > { %v1633_v6 = vrot.slane %v690_v4, 7 }
 0x120   : > { %v5183_v7 = vpop.f32.mrf.mxu0  ;;  %v6292_v32 = vpop.f32.mrf.mxu1 }
 0x121   : > { %v1639_v9 = vrot.slane %v5183_v7, 7  ;;  %v6253_v10 = vsel %vm1625_vm3, %v1631_v57, %v1633_v6 }
 0x122   : > { %v693_v12 = vpop.f32.mrf.mxu0  ;;  %v6300_v48 = vpop.f32.mrf.mxu1 }
 0x123   : > { %v1635_v13 = vrot.slane %v693_v12, 7  ;;  %v6258_v14 = vsel %vm1625_vm3, %v1637_v8, %v1639_v9 }
 0x124   : > { %v5186_v16 = vpop.f32.mrf.mxu0  ;;  %5357 = vmatmul.mubr.msk.bf16.gmra.mxu0 %vm536_vm2, %v6114_v36  ;;  %v6317_v56 = vpop.f32.mrf.mxu1 }
 0x125   : > { %v6263_v17 = vsel %vm1625_vm3, %v1635_v13, %v1637_v8  ;;  %v6266_v18 = vsel %vm1625_vm3, %v1633_v6, %v1635_v13  ;;  %5360 = vmatprep.mubr.msk.bf16.mxu0 %vm536_vm2, %v6117_v37  ;;  %v1644_v22 = vrot.slane %v5186_v16, 7 }
 0x126   : > { %v6272_v20 = vpop.f32.mrf.mxu0  ;;  %v6322_v0 = vpop.f32.mrf.mxu1 }
 0x127   : > { %v7766_v26 = vrot.slane %v6272_v20, 7 }
 0x128   : > { %v5187_v21 = vpop.f32.mrf.mxu0 }
 0x129   : > { %v1646_v23 = vrot.slane %v5187_v21, 7 }
 0x12a   : > { %v709_v25 = vpop.f32.mrf.mxu0 }
 0x12b   : > { %v1642_v27 = vrot.slane %v709_v25, 7  ;;  %v6278_v28 = vsel %vm1625_vm3, %v1644_v22, %v1646_v23 }
 0x12c   : > { %v5190_v29 = vpop.f32.mrf.mxu0  ;;  %5361 = vmatmul.mubr.msk.bf16.gmra.mxu0 %vm536_vm2, %v6128_v38 }
 0x12d   : > { %v6283_v30 = vsel %vm1625_vm3, %v1642_v27, %v1644_v22  ;;  %v6288_v31 = vsel %vm1625_vm3, %v7766_v26, %v1642_v27  ;;  %5364 = vmatprep.mubr.msk.bf16.mxu0 %vm536_vm2, %v6131_v39  ;;  %v1652_v37 = vrot.slane %v5190_v29, 7 }
 0x12e   : > { %v722_v33 = vpop.f32.mrf.mxu0 }
 0x12f   : > { %v1648_v35 = vrot.slane %v722_v33, 7 }
 0x130   : > { %v5191_v36 = vpop.f32.mrf.mxu0 }
 0x131   : > { %v1654_v38 = vrot.slane %v5191_v36, 7  ;;  %v6298_v40 = vsel %vm1625_vm3, %v1646_v23, %v1648_v35 }
 0x132   : > { %v725_v49 = vpop.f32.mrf.mxu0 }
 0x133   : > { %v1650_v50 = vrot.slane %v725_v49, 7  ;;  %v6303_v39 = vsel %vm1625_vm3, %v1652_v37, %v1654_v38 }
 0x134   : > { %v6305_v51 = vpop.f32.mrf.mxu0  ;;  %5365 = vmatmul.mubr.msk.bf16.gmra.mxu0 %vm536_vm2, %v6142_v41 }
 0x135   : > { %v6310_v54 = vsel %vm1625_vm3, %v1650_v50, %v1652_v37  ;;  %v6313_v55 = vsel %vm1625_vm3, %v1648_v35, %v1650_v50  ;;  %5368 = vmatprep.mubr.msk.bf16.mxu0 %vm536_vm2, %v6145_v42  ;;  %v7764_v60 = vrot.slane %v6305_v51, 7  ;;  %v6337_v42 = vpop.f32.mrf.mxu1 }
 0x136   : > { %v6319_v57 = vpop.f32.mrf.mxu0 }
 0x137   : > { %v6348_v15 = vpop.f32.mrf.mxu1 }
 0x138   : > { %v5195_v59 = vpop.f32.mrf.mxu0 }
 0x139   : > { %v1661_v62 = vrot.slane %v5195_v59, 7  ;;  %v6363_v21 = vpop.f32.mrf.mxu1 }
 0x13a   : > { %v6324_v41 = vpop.f32.mrf.mxu0 }
 0x13b   : > { %v6329_v4 = vsel %vm1625_vm3, %v7764_v60, %v1661_v62  ;;  %v6368_v29 = vpop.f32.mrf.mxu1 }
 0x13c   : > { %v6331_v5 = vpop.f32.mrf.mxu0  ;;  %5369 = vmatmul.mubr.msk.bf16.gmra.mxu0 %vm536_vm2, %v6156_v43 }
 0x13d   : > { %5372 = vmatprep.mubr.msk.bf16.mxu0 %vm536_vm2, %v6159_v44  ;;  %v7763_v9 = vrot.slane %v6331_v5, 7 }
 0x13e   : > { %v6339_v6 = vpop.f32.mrf.mxu0 }
 0x13f   : > { %v7761_v7 = vrot.slane %v6339_v6, 7 }
 0x140   : > { %v5199_v8 = vpop.f32.mrf.mxu0 }
 0x141   : > { %v1669_v12 = vrot.slane %v5199_v8, 7  ;;  %v6346_v13 = vsel %vm1625_vm3, %v1661_v62, %v7761_v7 }
 0x142   : > { %v6350_v43 = vpop.f32.mrf.mxu0 }
 0x143   : > { %v6355_v44 = vsel %vm1625_vm3, %v7763_v9, %v1669_v12 }
 0x144   : > { %v6357_v16 = vpop.f32.mrf.mxu0  ;;  %5373 = vmatmul.mubr.msk.bf16.gmra.mxu0 %vm536_vm2, %v6170_v45 }
 0x145   : > { %7811 = vst [vmem:[#allocation13_spill] sm:$0xff] %v6357_v16  ;;  %5376 = vmatprep.mubr.msk.bf16.mxu0 %vm536_vm2, %v6173_v46  ;;  %v7760_v25 = vrot.slane %v6357_v16, 7  ;;  %v6381_v46 = vpop.f32.mrf.mxu1 }
 0x146   : > { %v6365_v22 = vpop.f32.mrf.mxu0 }
 0x147   : > { %7812 = vst [vmem:[#allocation14_spill] sm:$0xff] %v6365_v22  ;;  %v6392_v62 = vpop.f32.mrf.mxu1 }
 0x148   : > { %v5203_v23 = vpop.f32.mrf.mxu0 }
 0x149   : > { %v1676_v27 = vrot.slane %v5203_v23, 7  ;;  %v6403_v23 = vpop.f32.mrf.mxu1 }
 0x14a   : > { %v6370_v33 = vpop.f32.mrf.mxu0 }
 0x14b   : > { %7813 = vst [vmem:[#allocation15_spill] sm:$0xff] %v6370_v33  ;;  %v6375_v35 = vsel %vm1625_vm3, %v7760_v25, %v1676_v27 }
 0x14c   : > { %7814 = vst [vmem:[#allocation16_spill] sm:$0xff] %v6375_v35  ;;  %v6377_v45 = vpop.f32.mrf.mxu0  ;;  %5377 = vmatmul.mubr.msk.bf16.gmra.mxu0 %vm536_vm2, %v6184_v47 }
 0x14d   : > { %7815 = vst [vmem:[#allocation17_spill] sm:$0xff] %v6377_v45  ;;  %v7765_v49 = vrot.slane %v6377_v45, 7 }
 0x14e   : > { %v6383_v36 = vpop.f32.mrf.mxu0 }
 0x14f   : > { %7816 = vst [vmem:[#allocation18_spill] sm:$0xff] %v6383_v36  ;;  %v7762_v37 = vrot.slane %v6383_v36, 7 }
 0x150   : > { %v5207_v38 = vpop.f32.mrf.mxu0 }
 0x151   : > { %v1684_v50 = vrot.slane %v5207_v38, 7  ;;  %v6390_v59 = vsel %vm1625_vm3, %v1676_v27, %v7762_v37  ;;  %v6408_v37 = vpop.f32.mrf.mxu1 }
 0x152   : > { %7817 = vst [vmem:[#allocation19_spill] sm:$0xff] %v6390_v59  ;;  %v6394_v8 = vpop.f32.mrf.mxu0 }
 0x153   : > { %7818 = vst [vmem:[#allocation20_spill] sm:$0xff] %v6394_v8  ;;  %v6399_v47 = vsel %vm1625_vm3, %v7765_v49, %v1684_v50  ;;  %v6419_v49 = vpop.f32.mrf.mxu1 }
 0x154   : > { %7819 = vst [vmem:[#allocation21_spill] sm:$0xff] %v6399_v47  ;;  %v6401_v12 = vpop.f32.mrf.mxu0 }
 0x155   : > { %7820 = vst [vmem:[#allocation22_spill] sm:$0xff] %v6401_v12  ;;  %v7769_v7 = vrot.slane %v6401_v12, 7  ;;  %v6430_v12 = vpop.f32.mrf.mxu1 }
 0x156   : > { %v6405_v25 = vpop.f32.mrf.mxu0 }
 0x157   : > { %7821 = vst [vmem:[#allocation23_spill] sm:$0xff] %v6405_v25  ;;  %v6441_v59 = vpop.f32.mrf.mxu1 }
 0x158   : > { %v5211_v38 = vpop.f32.mrf.mxu0 }
 0x159   : > { %v1691_v27 = vrot.slane %v5211_v38, 7 }
 0x15a   : > { %v6410_v9 = vpop.f32.mrf.mxu0 }
 0x15b   : > { %7822 = vst [vmem:[#allocation24_spill] sm:$0xff] %v6410_v9  ;;  %v6415_v60 = vsel %vm1625_vm3, %v7769_v7, %v1691_v27 }
 0x15c   : > { %7823 = vst [vmem:[#allocation25_spill] sm:$0xff] %v6415_v60  ;;  %v6417_v50 = vpop.f32.mrf.mxu0 }
 0x15d   : > { %7824 = vst [vmem:[#allocation26_spill] sm:$0xff] %v6417_v50  ;;  %v7775_v38 = vrot.slane %v6417_v50, 7 }
 0x15e   : > { %v6421_v26 = vpop.f32.mrf.mxu0 }
 0x15f   : > { %7825 = vst [vmem:[#allocation27_spill] sm:$0xff] %v6421_v26  ;;  %v7773_v61 = vrot.slane %v6421_v26, 7 }
 0x160   : > { %v5215_v25 = vpop.f32.mrf.mxu0 }
 0x161   : > { %v1699_v47 = vrot.slane %v5215_v25, 7  ;;  %v6428_v9 = vsel %vm1625_vm3, %v1691_v27, %v7773_v61  ;;  %v6446_v61 = vpop.f32.mrf.mxu1 }
 0x162   : > { %7826 = vst [vmem:[#allocation28_spill] sm:$0xff] %v6428_v9  ;;  %v6432_v7 = vpop.f32.mrf.mxu0 }
 0x163   : > { %7827 = vst [vmem:[#allocation29_spill] sm:$0xff] %v6432_v7  ;;  %v6437_v60 = vsel %vm1625_vm3, %v7775_v38, %v1699_v47  ;;  %v6457_v38 = vpop.f32.mrf.mxu1 }
 0x164   : > { %7828 = vst [vmem:[#allocation30_spill] sm:$0xff] %v6437_v60  ;;  %v6439_v36 = vpop.f32.mrf.mxu0  ;;  %7834 = vst [vmem:[#allocation36_spill] sm:$0xff] %v6457_v38 }
 0x165   : > { %7829 = vst [vmem:[#allocation31_spill] sm:$0xff] %v6439_v36  ;;  %v7777_v26 = vrot.slane %v6439_v36, 7  ;;  %v6468_v36 = vpop.f32.mrf.mxu1 }
 0x166   : > { %v6443_v45 = vpop.f32.mrf.mxu0  ;;  %7837 = vst [vmem:[#allocation39_spill] sm:$0xff] %v6468_v36 }
 0x167   : > { %7830 = vst [vmem:[#allocation32_spill] sm:$0xff] %v6443_v45  ;;  %v6479_v8 = vpop.f32.mrf.mxu1 }
 0x168   : > { %v5219_v25 = vpop.f32.mrf.mxu0  ;;  %7841 = vst [vmem:[#allocation43_spill] sm:$0xff] %v6479_v8 }
 0x169   : > { %v1706_v27 = vrot.slane %v5219_v25, 7 }
 0x16a   : > { %v6448_v9 = vpop.f32.mrf.mxu0 }
 0x16b   : > { %7831 = vst [vmem:[#allocation33_spill] sm:$0xff] %v6448_v9  ;;  %v6453_v50 = vsel %vm1625_vm3, %v7777_v26, %v1706_v27 }
 0x16c   : > { %7832 = vst [vmem:[#allocation34_spill] sm:$0xff] %v6453_v50  ;;  %v6455_v47 = vpop.f32.mrf.mxu0 }
 0x16d   : > { %7833 = vst [vmem:[#allocation35_spill] sm:$0xff] %v6455_v47  ;;  %v7782_v25 = vrot.slane %v6455_v47, 7 }
 0x16e   : > { %v6459_v60 = vpop.f32.mrf.mxu0 }
 0x16f   : > { %7835 = vst [vmem:[#allocation37_spill] sm:$0xff] %v6459_v60  ;;  %v7780_v45 = vrot.slane %v6459_v60, 7 }
 0x170   : > { %v5223_v7 = vpop.f32.mrf.mxu0 }
 0x171   : > { %v1714_v35 = vrot.slane %v5223_v7, 7  ;;  %v6466_v9 = vsel %vm1625_vm3, %v1706_v27, %v7780_v45  ;;  %v6484_v45 = vpop.f32.mrf.mxu1 }
 0x172   : > { %7836 = vst [vmem:[#allocation38_spill] sm:$0xff] %v6466_v9  ;;  %v6470_v26 = vpop.f32.mrf.mxu0  ;;  %7843 = vst [vmem:[#allocation45_spill] sm:$0xff] %v6484_v45 }
 0x173   : > { %7838 = vst [vmem:[#allocation40_spill] sm:$0xff] %v6470_v26  ;;  %v6475_v50 = vsel %vm1625_vm3, %v7782_v25, %v1714_v35  ;;  %v6495_v25 = vpop.f32.mrf.mxu1 }
 0x174   : > { %7839 = vst [vmem:[#allocation41_spill] sm:$0xff] %v6475_v50  ;;  %v6477_v16 = vpop.f32.mrf.mxu0  ;;  %7847 = vst [vmem:[#allocation49_spill] sm:$0xff] %v6495_v25 }
 0x175   : > { %7840 = vst [vmem:[#allocation42_spill] sm:$0xff] %v6477_v16  ;;  %v7784_v60 = vrot.slane %v6477_v16, 7  ;;  %v6506_v16 = vpop.f32.mrf.mxu1 }
 0x176   : > { %v6481_v33 = vpop.f32.mrf.mxu0  ;;  %7850 = vst [vmem:[#allocation52_spill] sm:$0xff] %v6506_v16 }
 0x177   : > { %7842 = vst [vmem:[#allocation44_spill] sm:$0xff] %v6481_v33  ;;  %v6517_v45 = vpop.f32.mrf.mxu1 }
 0x178   : > { %v5227_v7 = vpop.f32.mrf.mxu0  ;;  %7854 = vst [vmem:[#allocation56_spill] sm:$0xff] %v6517_v45 }
 0x179   : > { %v1721_v27 = vrot.slane %v5227_v7, 7 }
 0x17a   : > { %v6486_v9 = vpop.f32.mrf.mxu0 }
 0x17b   : > { %7844 = vst [vmem:[#allocation46_spill] sm:$0xff] %v6486_v9  ;;  %v6491_v47 = vsel %vm1625_vm3, %v7784_v60, %v1721_v27 }
 0x17c   : > { %7845 = vst [vmem:[#allocation47_spill] sm:$0xff] %v6491_v47  ;;  %v6493_v35 = vpop.f32.mrf.mxu0 }
 0x17d   : > { %7846 = vst [vmem:[#allocation48_spill] sm:$0xff] %v6493_v35  ;;  %v7788_v7 = vrot.slane %v6493_v35, 7 }
 0x17e   : > { %v6497_v50 = vpop.f32.mrf.mxu0 }
 0x17f   : > { %7848 = vst [vmem:[#allocation50_spill] sm:$0xff] %v6497_v50  ;;  %v7786_v33 = vrot.slane %v6497_v50, 7 }
 0x180   : > { %v5231_v26 = vpop.f32.mrf.mxu0 }
 0x181   : > { %v1729_v8 = vrot.slane %v5231_v26, 7  ;;  %v6504_v9 = vsel %vm1625_vm3, %v1721_v27, %v7786_v33  ;;  %v6522_v33 = vpop.f32.mrf.mxu1 }
 0x182   : > { %7849 = vst [vmem:[#allocation51_spill] sm:$0xff] %v6504_v9  ;;  %v6508_v60 = vpop.f32.mrf.mxu0  ;;  %7856 = vst [vmem:[#allocation58_spill] sm:$0xff] %v6522_v33 }
 0x183   : > { %7851 = vst [vmem:[#allocation53_spill] sm:$0xff] %v6508_v60  ;;  %v6513_v47 = vsel %vm1625_vm3, %v7788_v7, %v1729_v8  ;;  %v6533_v7 = vpop.f32.mrf.mxu1 }
 0x184   : > { %7852 = vst [vmem:[#allocation54_spill] sm:$0xff] %v6513_v47  ;;  %v6515_v25 = vpop.f32.mrf.mxu0  ;;  %7860 = vst [vmem:[#allocation62_spill] sm:$0xff] %v6533_v7 }
 0x185   : > { %7853 = vst [vmem:[#allocation55_spill] sm:$0xff] %v6515_v25  ;;  %v7790_v50 = vrot.slane %v6515_v25, 7  ;;  %v6544_v25 = vpop.f32.mrf.mxu1 }
 0x186   : > { %v6519_v22 = vpop.f32.mrf.mxu0  ;;  %7863 = vst [vmem:[#allocation65_spill] sm:$0xff] %v6544_v25 }
 0x187   : > { %7855 = vst [vmem:[#allocation57_spill] sm:$0xff] %v6519_v22  ;;  %v6553_v33 = vpop.f32.mrf.mxu1 }
 0x188   : > { %v5235_v26 = vpop.f32.mrf.mxu0  ;;  %7866 = vst [vmem:[#allocation68_spill] sm:$0xff] %v6553_v33 }
 0x189   : > { %v1736_v27 = vrot.slane %v5235_v26, 7 }
 0x18a   : > { %v6524_v9 = vpop.f32.mrf.mxu0 }
 0x18b   : > { %7857 = vst [vmem:[#allocation59_spill] sm:$0xff] %v6524_v9  ;;  %v6529_v35 = vsel %vm1625_vm3, %v7790_v50, %v1736_v27 }
 0x18c   : > { %7858 = vst [vmem:[#allocation60_spill] sm:$0xff] %v6529_v35  ;;  %v6531_v8 = vpop.f32.mrf.mxu0 }
 0x18d   : > { %7859 = vst [vmem:[#allocation61_spill] sm:$0xff] %v6531_v8  ;;  %v7794_v26 = vrot.slane %v6531_v8, 7 }
 0x18e   : > { %v6535_v47 = vpop.f32.mrf.mxu0 }
 0x18f   : > { %7861 = vst [vmem:[#allocation63_spill] sm:$0xff] %v6535_v47  ;;  %v7792_v22 = vrot.slane %v6535_v47, 7 }
 0x190   : > { %v5239_v60 = vpop.f32.mrf.mxu0 }
 0x191   : > { %v1744_v45 = vrot.slane %v5239_v60, 7  ;;  %v6542_v9 = vsel %vm1625_vm3, %v1736_v27, %v7792_v22  ;;  %v7867_v60 = vrot.slane %v6228_v52, 7  ;;  %v6558_v22 = vpop.f32.mrf.mxu1  ;;  %v2076_v52 = vadd.f32 %v6230_v53, %v6241_v1 }
 0x192   : > { %7862 = vst [vmem:[#allocation64_spill] sm:$0xff] %v6542_v9  ;;  %v6546_v50 = vpop.f32.mrf.mxu0  ;;  %7868 = vst [vmem:[#allocation69_spill] sm:$0xff] %v6558_v22 }
 0x193   : > { %7864 = vst [vmem:[#allocation66_spill] sm:$0xff] %v6546_v50  ;;  %v6551_v35 = vsel %vm1625_vm3, %v7794_v26, %v1744_v45  ;;  %v1810_v47 = vsel %vm1625_vm3, 0.0, %v7867_v60  ;;  %v2075_v45 = vadd.f32 %v6246_v2, %v6255_v11  ;;  %v6568_v33 = vpop.f32.mrf.mxu1  ;;  %v2077_v2 = vadd.f32 %v6250_v3, %v6236_v63 }
 0x194   : > { %7865 = vst [vmem:[#allocation67_spill] sm:$0xff] %v6551_v35  ;;  %v5318_v7 = vpop.f32.mrf.mxu0  ;;  %v2074_v8 = vadd.f32 %v1810_v47, %v6232_v58  ;;  %v6570_v58 = vld [vmem:[#allocation5] ss:$0 sm:$0xff]  ;;  %v2078_v11 = vadd.f32 %v6253_v10, %v6274_v24 }
 0x195   : > { %v1885_v9 = vrot.slane %v5318_v7, 1  ;;  %v6583_v63 = vpop.f32.mrf.mxu1 }
 0x196   : > { %v1306_v16 = vpop.f32.mrf.mxu0 }
 0x197   : > { %v1882_v50 = vrot.slane %v1306_v16, 1 }
 0x198   : > { %v5319_v36 = vpop.f32.mrf.mxu0 }
 0x199   : > { %v1887_v27 = vrot.slane %v5319_v36, 1 }
 0x19a   : > { %v1309_v25 = vpop.f32.mrf.mxu0 }
 0x19b   : > { %v1883_v38 = vrot.slane %v1309_v25, 1  ;;  %v1888_v26 = vsel %vm634_vm1, %v1885_v9, %v1887_v27 }
 0x19c   : > { %v5322_v35 = vpop.f32.mrf.mxu0  ;;  %v2140_v22 = vadd.f32 %v2076_v52, %v1888_v26  ;;  %v2080_v26 = vadd.f32 %v6270_v19, %v6263_v17 }
 0x19d   : > { %v1884_v60 = vsel %vm634_vm1, %v1882_v50, %v1883_v38  ;;  %v1886_v36 = vsel %vm634_vm1, %v1883_v38, %v1885_v9  ;;  %v1893_v50 = vrot.slane %v5322_v35, 1 }
 0x19e   : > { %v2138_v7 = vadd.f32 %v2074_v8, %v1884_v60  ;;  %v2139_v16 = vadd.f32 %v2075_v45, %v1886_v36  ;;  %v1322_v25 = vpop.f32.mrf.mxu0  ;;  %v2081_v45 = vadd.f32 %v6292_v32, %v6258_v14  ;;  %v2211_v52 = vadd.f32 %v6570_v58, %v2140_v22 }
 0x19f   : > { %v1889_v47 = vrot.slane %v1322_v25, 1  ;;  %v2079_v14 = vadd.f32 %v6266_v18, %v6300_v48  ;;  %v7869_v48 = vrot.slane %v6272_v20, 7  ;;  %v2083_v20 = vadd.f32 %v6288_v31, %v6348_v15 }
 0x1a0   : > { %v2209_v53 = vadd.f32 %v6570_v58, %v2138_v7  ;;  %v2210_v1 = vadd.f32 %v6570_v58, %v2139_v16  ;;  %v5323_v9 = vpop.f32.mrf.mxu0  ;;  %v6599_v16 = vpop.f32.mrf.mxu1  ;;  %v2084_v31 = vadd.f32 %v6317_v56, %v6283_v30  ;;  %v2085_v15 = vadd.f32 %v6337_v42, %v6278_v28 }
 0x1a1   : > { %v1890_v38 = vsel %vm634_vm1, %v1887_v27, %v1889_v47  ;;  %v1895_v8 = vrot.slane %v5323_v9, 1 }
 0x1a2   : > { %v2141_v3 = vadd.f32 %v2077_v2, %v1890_v38  ;;  %v1325_v10 = vpop.f32.mrf.mxu0  ;;  %v6585_v24 = vpack.c.bf16 %v2210_v1, %v2209_v53  ;;  %v5698_v38 = vld [vmem:[#allocation7 + $0x50] sm:$0xff]  }
 0x1a3   : > { %v1896_v35 = vsel %vm634_vm1, %v1893_v50, %v1895_v8  ;;  %v2066_v27 = vsel %vm634_vm1, %v1895_v8, 0.0  ;;  %v1891_v60 = vrot.slane %v1325_v10, 1 }
 0x1a4   : > { %v2212_v36 = vadd.f32 %v6570_v58, %v2141_v3  ;;  %v2144_v7 = vadd.f32 %v2080_v26, %v1896_v35  ;;  %v2145_v17 = vadd.f32 %v2081_v45, %v2066_v27  ;;  %v5326_v19 = vpop.f32.mrf.mxu0  ;;  %5388 = vmatprep.mubr.msk.bf16.mxu1 %vm2337_vm4, %v6585_v24  ;;  %5460 = vmatprep.mubr.msk.bf16.mxu0 %vm2337_vm4, %v6585_v24 }
 0x1a5   : > { %v1892_v32 = vsel %vm634_vm1, %v1889_v47, %v1891_v60  ;;  %v1894_v22 = vsel %vm634_vm1, %v1891_v60, %v1893_v50  ;;  %v1811_v47 = vsel %vm1625_vm3, 0.0, %v7869_v48  ;;  %v6617_v50 = vpop.f32.mrf.mxu1 }
 0x1a6   : > { %v6601_v25 = vpack.c.bf16 %v2212_v36, %v2211_v52  ;;  %v2215_v2 = vadd.f32 %v6570_v58, %v2144_v7  ;;  %v2216_v53 = vadd.f32 %v6570_v58, %v2145_v17  ;;  %v2142_v1 = vadd.f32 %v2078_v11, %v1892_v32  ;;  %v1338_v9 = vpop.f32.mrf.mxu0  ;;  %v5699_v36 = vld [vmem:[#allocation7 + $0x48] sm:$0xff]  }
 0x1a7   : > { %v2143_v8 = vadd.f32 %v2079_v14, %v1894_v22  ;;  %v1900_v52 = vrot.slane %v5326_v19, 1  ;;  %v1897_v35 = vrot.slane %v1338_v9, 1  ;;  %v2082_v7 = vadd.f32 %v1811_v47, %v6322_v0  ;;  %v6630_v19 = vpop.f32.mrf.mxu1 }
 0x1a8   : > { %v2213_v26 = vadd.f32 %v6570_v58, %v2142_v1  ;;  %v5327_v45 = vpop.f32.mrf.mxu0  ;;  %5389 = vmatmul.mubr.msk.bf16.vlgmr.msra.gmra.mxu1 %vm2337_vm4, %v6601_v25  ;;  %5461 = vmatmul.mubr.msk.bf16.vlgmr.msra.gmra.mxu0 %vm2337_vm4, %v6601_v25  ;;  %v6610_v18 = vpack.c.bf16 %v2216_v53, %v2215_v2  ;;  %v5700_v1 = vld [vmem:[#allocation7 + $0x40] sm:$0xff]   ;;  %v2086_v9 = vadd.f32 %v6298_v40, %v6368_v29 }
 0x1a9   : > { %v2214_v11 = vadd.f32 %v6570_v58, %v2143_v8  ;;  %5525 = vmatpush3.bf16.msra.mxu1 %v6294_v34  ;;  %v1902_v3 = vrot.slane %v5327_v45, 1  ;;  %v2089_v40 = vadd.f32 %v6381_v46, %v6303_v39  ;;  %v6650_v29 = vpop.f32.mrf.mxu1 }
 0x1aa   : > { %v1341_v10 = vpop.f32.mrf.mxu0  ;;  %5526 = vmatprep.subr.bf16.mxu1 %v5698_v38 }
 0x1ab   : > { %v1898_v27 = vrot.slane %v1341_v10, 1  ;;  %v6619_v60 = vpack.c.bf16 %v2214_v11, %v2213_v26  ;;  %v1903_v32 = vsel %vm634_vm1, %v1900_v52, %v1902_v3  ;;  %v2087_v10 = vadd.f32 %v6313_v55, %v6392_v62 }
 0x1ac   : > { %v5330_v17 = vpop.f32.mrf.mxu0  ;;  %v2148_v30 = vadd.f32 %v2084_v31, %v1903_v32  ;;  %v1657_v55 = vrot.slane %v6324_v41, 7 }
 0x1ad   : > { %v1899_v14 = vsel %vm634_vm1, %v1897_v35, %v1898_v27  ;;  %v1901_v34 = vsel %vm634_vm1, %v1898_v27, %v1900_v52  ;;  %5392 = vmatprep.mubr.msk.bf16.mxu1 %vm2337_vm4, %v6619_v60  ;;  %5464 = vmatprep.mubr.msk.bf16.mxu0 %vm2337_vm4, %v6619_v60  ;;  %v1908_v56 = vrot.slane %v5330_v17, 1 }
 0x1ae   : > { %v2146_v22 = vadd.f32 %v2082_v7, %v1899_v14  ;;  %v2147_v0 = vadd.f32 %v2083_v20, %v1901_v34  ;;  %v1354_v2 = vpop.f32.mrf.mxu0  ;;  %5527 = vmatpush3.bf16.msra.mxu1 %v5698_v38  ;;  %v2088_v38 = vadd.f32 %v6363_v21, %v6310_v54  ;;  %v1656_v54 = vrot.slane %v6319_v57, 7  ;;  %v6668_v57 = vpop.f32.mrf.mxu1 }
 0x1af   : > { %v1904_v53 = vrot.slane %v1354_v2, 1  ;;  %5528 = vmatprep.subr.bf16.mxu1 %v5699_v36  ;;  %v2219_v62 = vadd.f32 %v6570_v58, %v2148_v30 }
 0x1b0   : > { %v2217_v8 = vadd.f32 %v6570_v58, %v2146_v22  ;;  %v2218_v26 = vadd.f32 %v6570_v58, %v2147_v0  ;;  %v5331_v45 = vpop.f32.mrf.mxu0  ;;  %5393 = vmatmul.mubr.msk.bf16.gmra.mxu1 %vm2337_vm4, %v6610_v18  ;;  %5465 = vmatmul.mubr.msk.bf16.gmra.mxu0 %vm2337_vm4, %v6610_v18 }
 0x1b1   : > { %v1905_v28 = vsel %vm634_vm1, %v1902_v3, %v1904_v53  ;;  %v1910_v42 = vrot.slane %v5331_v45, 1  ;;  %v1665_v45 = vrot.slane %v6350_v43, 7 }
 0x1b2   : > { %v2149_v48 = vadd.f32 %v2085_v15, %v1905_v28  ;;  %v1357_v47 = vpop.f32.mrf.mxu0  ;;  %v6652_v11 = vpack.c.bf16 %v2218_v26, %v2217_v8  ;;  %5529 = vmatpush3.bf16.msra.mxu1 %v5699_v36  ;;  %v1812_v15 = vsel %vm1625_vm3, 0.0, %v1656_v54 }
 0x1b3   : > { %v1911_v52 = vsel %vm634_vm1, %v1908_v56, %v1910_v42  ;;  %v2067_v3 = vsel %vm634_vm1, %v1910_v42, 0.0  ;;  %v1906_v35 = vrot.slane %v1357_v47, 1  ;;  %5530 = vmatprep.subr.bf16.mxu1 %v5700_v1  ;;  %v2090_v42 = vadd.f32 %v1812_v15, %v6408_v37 }
 0x1b4   : > { %v2220_v39 = vadd.f32 %v6570_v58, %v2149_v48  ;;  %v2152_v21 = vadd.f32 %v2088_v38, %v1911_v52  ;;  %v2153_v46 = vadd.f32 %v2089_v40, %v2067_v3  ;;  %v5334_v27 = vpop.f32.mrf.mxu0  ;;  %5396 = vmatprep.mubr.msk.bf16.mxu1 %vm2337_vm4, %v6652_v11  ;;  %5468 = vmatprep.mubr.msk.bf16.mxu0 %vm2337_vm4, %v6652_v11  ;;  %v7870_v38 = vrot.slane %v6305_v51, 7 }
 0x1b5   : > { %v1907_v36 = vsel %vm634_vm1, %v1904_v53, %v1906_v35  ;;  %v1909_v7 = vsel %vm634_vm1, %v1906_v35, %v1908_v56  ;;  %v1658_v53 = vsel %vm1625_vm3, %v1656_v54, %v1657_v55  ;;  %v1915_v30 = vrot.slane %v5334_v27, 1 }
 0x1b6   : > { %v2223_v20 = vadd.f32 %v6570_v58, %v2152_v21  ;;  %v2224_v17 = vadd.f32 %v6570_v58, %v2153_v46  ;;  %v2150_v14 = vadd.f32 %v2086_v9, %v1907_v36  ;;  %v2151_v34 = vadd.f32 %v2087_v10, %v1909_v7  ;;  %v1370_v32 = vpop.f32.mrf.mxu0  ;;  %5531 = vmatpush3.bf16.msra.mxu1 %v5700_v1  ;;  %v6684_v1 = vpop.f32.mrf.mxu1 }
 0x1b7   : > { %v6672_v22 = vpack.c.bf16 %v2220_v39, %v2219_v62  ;;  %v1912_v56 = vrot.slane %v1370_v32, 1  ;;  %v1660_v40 = vsel %vm1625_vm3, %v1657_v55, %v7870_v38  ;;  %v2091_v48 = vadd.f32 %v1658_v53, %v6430_v12 }
 0x1b8   : > { %v2221_v41 = vadd.f32 %v6570_v58, %v2150_v14  ;;  %v2222_v0 = vadd.f32 %v6570_v58, %v2151_v34  ;;  %v5335_v2 = vpop.f32.mrf.mxu0  ;;  %v6676_v31 = vpack.c.bf16 %v2224_v17, %v2223_v20  ;;  %v6700_v52 = vpop.f32.mrf.mxu1  ;;  %v2092_v12 = vadd.f32 %v6403_v23, %v1660_v40 }
 0x1b9   : > { %5397 = vmatmul.mubr.msk.bf16.gmra.mxu1 %vm2337_vm4, %v6672_v22  ;;  %5469 = vmatmul.mubr.msk.bf16.gmra.mxu0 %vm2337_vm4, %v6672_v22  ;;  %v1917_v9 = vrot.slane %v5335_v2, 1  ;;  %v2093_v54 = vadd.f32 %v6419_v49, %v6329_v4  ;;  %v7871_v39 = vrot.slane %v6331_v5, 7  ;;  %v2094_v27 = vadd.f32 %v6346_v13, %v6446_v61 }
 0x1ba   : > { %v1373_v8 = vpop.f32.mrf.mxu0  ;;  %v6686_v26 = vpack.c.bf16 %v2222_v0, %v2221_v41  ;;  %v7872_v55 = vrot.slane %v6339_v6, 7  ;;  %v7873_v6 = vld [vmem:[#allocation36_spill] sm:$0xff]  ;;  %v6724_v49 = vpop.f32.mrf.mxu1  ;;  %v7874_v41 = vld [vmem:[#allocation39_spill] sm:$0xff] }
 0x1bb   : > { %v1913_v28 = vrot.slane %v1373_v8, 1  ;;  %v1918_v37 = vsel %vm634_vm1, %v1915_v30, %v1917_v9  ;;  %v1668_v21 = vsel %vm1625_vm3, %v1665_v45, %v7871_v39  ;;  %v2097_v13 = vadd.f32 %v7873_v6, %v6355_v44  ;;  %v7879_v6 = vld [vmem:[#allocation13_spill] sm:$0xff] }
 0x1bc   : > { %v5338_v47 = vpop.f32.mrf.mxu0  ;;  %5400 = vmatprep.mubr.msk.bf16.mxu1 %vm2337_vm4, %v6686_v26  ;;  %5472 = vmatprep.mubr.msk.bf16.mxu0 %vm2337_vm4, %v6686_v26  ;;  %v1666_v62 = vsel %vm1625_vm3, %v7872_v55, %v1665_v45  ;;  %v2156_v20 = vadd.f32 %v2092_v12, %v1918_v37  ;;  %v2096_v61 = vadd.f32 %v6441_v59, %v1668_v21 }
 0x1bd   : > { %v1914_v43 = vsel %vm634_vm1, %v1912_v56, %v1913_v28  ;;  %v1916_v10 = vsel %vm634_vm1, %v1913_v28, %v1915_v30  ;;  %v1923_v17 = vrot.slane %v5338_v47, 1  ;;  %v2095_v0 = vadd.f32 %v1666_v62, %v7874_v41  ;;  %v7876_v56 = vld [vmem:[#allocation15_spill] sm:$0xff] }
 0x1be   : > { %v2154_v51 = vadd.f32 %v2090_v42, %v1914_v43  ;;  %v2155_v3 = vadd.f32 %v2091_v48, %v1916_v10  ;;  %v1386_v35 = vpop.f32.mrf.mxu0  ;;  %v1672_v28 = vrot.slane %v7876_v56, 7  ;;  %v2227_v42 = vadd.f32 %v6570_v58, %v2156_v20  ;;  %v6741_v48 = vpop.f32.mrf.mxu1  ;;  %v7883_v56 = vld [vmem:[#allocation16_spill] sm:$0xff] }
 0x1bf   : > { %v1919_v46 = vrot.slane %v1386_v35, 1 }
 0x1c0   : > { %v2225_v36 = vadd.f32 %v6570_v58, %v2154_v51  ;;  %v2226_v7 = vadd.f32 %v6570_v58, %v2155_v3  ;;  %v5339_v23 = vpop.f32.mrf.mxu0 }
 0x1c1   : > { %v1920_v4 = vsel %vm634_vm1, %v1917_v9, %v1919_v46  ;;  %v1925_v5 = vrot.slane %v5339_v23, 1  ;;  %5401 = vmatmul.mubr.msk.bf16.gmra.mxu1 %vm2337_vm4, %v6676_v31  ;;  %5473 = vmatmul.mubr.msk.bf16.gmra.mxu0 %vm2337_vm4, %v6676_v31  ;;  %v7875_v9 = vld [vmem:[#allocation14_spill] sm:$0xff] }
 0x1c2   : > { %v2157_v14 = vadd.f32 %v2093_v54, %v1920_v4  ;;  %v1389_v34 = vpop.f32.mrf.mxu0  ;;  %v6726_v32 = vpack.c.bf16 %v2226_v7, %v2225_v36  ;;  %v1671_v8 = vrot.slane %v7875_v9, 7  ;;  %v7877_v7 = vld [vmem:[#allocation20_spill] sm:$0xff] }
 0x1c3   : > { %v1926_v2 = vsel %vm634_vm1, %v1923_v17, %v1925_v5  ;;  %v2068_v15 = vsel %vm634_vm1, %v1925_v5, 0.0  ;;  %v1921_v53 = vrot.slane %v1389_v34, 1  ;;  %v1680_v23 = vrot.slane %v7877_v7, 7  ;;  %v7878_v5 = vld [vmem:[#allocation45_spill] sm:$0xff]  ;;  %v7881_v34 = vld [vmem:[#allocation52_spill] sm:$0xff] }
 0x1c4   : > { %v2228_v59 = vadd.f32 %v6570_v58, %v2157_v14  ;;  %v2160_v45 = vadd.f32 %v2096_v61, %v1926_v2  ;;  %v2161_v30 = vadd.f32 %v2097_v13, %v2068_v15  ;;  %v5342_v44 = vpop.f32.mrf.mxu0  ;;  %5404 = vmatprep.mubr.msk.bf16.mxu1 %vm2337_vm4, %v6726_v32  ;;  %5476 = vmatprep.mubr.msk.bf16.mxu0 %vm2337_vm4, %v6726_v32  ;;  %v1813_v21 = vsel %vm1625_vm3, 0.0, %v1671_v8 }
 0x1c5   : > { %v1922_v38 = vsel %vm634_vm1, %v1919_v46, %v1921_v53  ;;  %v1924_v40 = vsel %vm634_vm1, %v1921_v53, %v1923_v17  ;;  %v1673_v46 = vsel %vm1625_vm3, %v1671_v8, %v1672_v28  ;;  %v1930_v20 = vrot.slane %v5342_v44, 1 }
 0x1c6   : > { %v2231_v47 = vadd.f32 %v6570_v58, %v2160_v45  ;;  %v2232_v43 = vadd.f32 %v6570_v58, %v2161_v30  ;;  %v2158_v10 = vadd.f32 %v2094_v27, %v1922_v38  ;;  %v2159_v37 = vadd.f32 %v2095_v0, %v1924_v40  ;;  %v1402_v51 = vpop.f32.mrf.mxu0  ;;  %v6757_v27 = vpop.f32.mrf.mxu1  ;;  %v7882_v30 = vld [vmem:[#allocation43_spill] sm:$0xff]  ;;  %v7885_v38 = vld [vmem:[#allocation17_spill] sm:$0xff] }
 0x1c7   : > { %v6745_v3 = vpack.c.bf16 %v2228_v59, %v2227_v42  ;;  %v1927_v17 = vrot.slane %v1402_v51, 1  ;;  %v2098_v61 = vadd.f32 %v1813_v21, %v7878_v5  ;;  %v7880_v13 = vrot.slane %v7879_v6, 7  ;;  %v7891_v5 = vld [vmem:[#allocation56_spill] sm:$0xff]  ;;  %v7892_v6 = vld [vmem:[#allocation21_spill] sm:$0xff] }
 0x1c8   : > { %v2229_v35 = vadd.f32 %v6570_v58, %v2158_v10  ;;  %v2230_v12 = vadd.f32 %v6570_v58, %v2159_v37  ;;  %v5343_v54 = vpop.f32.mrf.mxu0  ;;  %v6749_v39 = vpack.c.bf16 %v2232_v43, %v2231_v47  ;;  %v2099_v41 = vadd.f32 %v1673_v46, %v7881_v34  ;;  %v6773_v53 = vpop.f32.mrf.mxu1  ;;  %v7887_v10 = vld [vmem:[#allocation58_spill] sm:$0xff]  ;;  %v7888_v37 = vld [vmem:[#allocation19_spill] sm:$0xff] }
 0x1c9   : > { %5405 = vmatmul.mubr.msk.bf16.gmra.mxu1 %vm2337_vm4, %v6745_v3  ;;  %5477 = vmatmul.mubr.msk.bf16.gmra.mxu0 %vm2337_vm4, %v6745_v3  ;;  %v1932_v55 = vrot.slane %v5343_v54, 1  ;;  %v1675_v14 = vsel %vm1625_vm3, %v1672_v28, %v7880_v13  ;;  %v7884_v28 = vld [vmem:[#allocation49_spill] sm:$0xff]  ;;  %v7886_v40 = vrot.slane %v7885_v38, 7  ;;  %v2102_v51 = vadd.f32 %v7888_v37, %v7887_v10 }
 0x1ca   : > { %v1405_v62 = vpop.f32.mrf.mxu0  ;;  %v6759_v36 = vpack.c.bf16 %v2230_v12, %v2229_v35  ;;  %v2100_v44 = vadd.f32 %v7882_v30, %v1675_v14  ;;  %v2101_v42 = vadd.f32 %v7884_v28, %v7883_v56  ;;  %v7889_v35 = vld [vmem:[#allocation18_spill] sm:$0xff]  ;;  %v6797_v14 = vpop.f32.mrf.mxu1 }
 0x1cb   : > { %v1928_v4 = vrot.slane %v1405_v62, 1  ;;  %v1933_v9 = vsel %vm634_vm1, %v1930_v20, %v1932_v55  ;;  %v1683_v47 = vsel %vm1625_vm3, %v1680_v23, %v7886_v40  ;;  %v7890_v12 = vrot.slane %v7889_v35, 7 }
 0x1cc   : > { %v5346_v0 = vpop.f32.mrf.mxu0  ;;  %5408 = vmatprep.mubr.msk.bf16.mxu1 %vm2337_vm4, %v6759_v36  ;;  %5480 = vmatprep.mubr.msk.bf16.mxu0 %vm2337_vm4, %v6759_v36  ;;  %v2164_v7 = vadd.f32 %v2100_v44, %v1933_v9  ;;  %v6814_v37 = vpop.f32.mrf.mxu1 }
 0x1cd   : > { %v1929_v2 = vsel %vm634_vm1, %v1927_v17, %v1928_v4  ;;  %v1931_v15 = vsel %vm634_vm1, %v1928_v4, %v1930_v20  ;;  %v1681_v54 = vsel %vm1625_vm3, %v7890_v12, %v1680_v23  ;;  %v1938_v20 = vrot.slane %v5346_v0, 1  ;;  %v7893_v23 = vld [vmem:[#allocation62_spill] sm:$0xff]  ;;  %v7894_v0 = vld [vmem:[#allocation65_spill] sm:$0xff] }
 0x1ce   : > { %v2162_v8 = vadd.f32 %v2098_v61, %v1929_v2  ;;  %v2163_v59 = vadd.f32 %v2099_v41, %v1931_v15  ;;  %v1418_v45 = vpop.f32.mrf.mxu0  ;;  %v2104_v61 = vadd.f32 %v7891_v5, %v1683_v47  ;;  %v2105_v13 = vadd.f32 %v7893_v23, %v7892_v6 }
 0x1cf   : > { %v1934_v43 = vrot.slane %v1418_v45, 1  ;;  %v2235_v40 = vadd.f32 %v6570_v58, %v2164_v7 }
 0x1d0   : > { %v2233_v21 = vadd.f32 %v6570_v58, %v2162_v8  ;;  %v2234_v46 = vadd.f32 %v6570_v58, %v2163_v59  ;;  %v5347_v62 = vpop.f32.mrf.mxu0  ;;  %v7895_v59 = vld [vmem:[#allocation23_spill] sm:$0xff] }
 0x1d1   : > { %v1935_v17 = vsel %vm634_vm1, %v1932_v55, %v1934_v43  ;;  %v1940_v4 = vrot.slane %v5347_v62, 1  ;;  %5409 = vmatmul.mubr.msk.bf16.gmra.mxu1 %vm2337_vm4, %v6749_v39  ;;  %5481 = vmatmul.mubr.msk.bf16.gmra.mxu0 %vm2337_vm4, %v6749_v39  ;;  %v2103_v55 = vadd.f32 %v1681_v54, %v7894_v0  ;;  %v1686_v45 = vrot.slane %v7895_v59, 7 }
 0x1d2   : > { %v2165_v34 = vadd.f32 %v2101_v42, %v1935_v17  ;;  %v1421_v41 = vpop.f32.mrf.mxu0  ;;  %v6799_v2 = vpack.c.bf16 %v2234_v46, %v2233_v21  ;;  %v7896_v42 = vld [vmem:[#allocation24_spill] sm:$0xff] }
 0x1d3   : > { %v1941_v15 = vsel %vm634_vm1, %v1938_v20, %v1940_v4  ;;  %v2069_v9 = vsel %vm634_vm1, %v1940_v4, 0.0  ;;  %v1936_v8 = vrot.slane %v1421_v41, 1  ;;  %v1687_v38 = vrot.slane %v7896_v42, 7 }
 0x1d4   : > { %v2236_v30 = vadd.f32 %v6570_v58, %v2165_v34  ;;  %v2168_v44 = vadd.f32 %v2104_v61, %v1941_v15  ;;  %v2169_v56 = vadd.f32 %v2105_v13, %v2069_v9  ;;  %v5350_v28 = vpop.f32.mrf.mxu0  ;;  %5412 = vmatprep.mubr.msk.bf16.mxu1 %vm2337_vm4, %v6799_v2  ;;  %5484 = vmatprep.mubr.msk.bf16.mxu0 %vm2337_vm4, %v6799_v2  ;;  %v7897_v13 = vld [vmem:[#allocation29_spill] sm:$0xff] }
 0x1d5   : > { %v1937_v47 = vsel %vm634_vm1, %v1934_v43, %v1936_v8  ;;  %v1939_v10 = vsel %vm634_vm1, %v1936_v8, %v1938_v20  ;;  %v1814_v43 = vsel %vm1625_vm3, 0.0, %v1686_v45  ;;  %v1688_v20 = vsel %vm1625_vm3, %v1686_v45, %v1687_v38  ;;  %v7898_v15 = vld [vmem:[#allocation69_spill] sm:$0xff]  ;;  %v7899_v8 = vld [vmem:[#allocation22_spill] sm:$0xff] }
 0x1d6   : > { %v2239_v35 = vadd.f32 %v6570_v58, %v2168_v44  ;;  %v2240_v12 = vadd.f32 %v6570_v58, %v2169_v56  ;;  %v2166_v54 = vadd.f32 %v2102_v51, %v1937_v47  ;;  %v2167_v21 = vadd.f32 %v2103_v55, %v1939_v10  ;;  %v1434_v46 = vpop.f32.mrf.mxu0  ;;  %v6830_v51 = vpop.f32.mrf.mxu1 }
 0x1d7   : > { %v6818_v62 = vpack.c.bf16 %v2236_v30, %v2235_v40  ;;  %v1695_v34 = vrot.slane %v7897_v13, 7  ;;  %v1945_v41 = vrot.slane %v5350_v28, 1  ;;  %v1942_v0 = vrot.slane %v1434_v46, 1 }
 0x1d8   : > { %v2237_v17 = vadd.f32 %v6570_v58, %v2166_v54  ;;  %v2238_v4 = vadd.f32 %v6570_v58, %v2167_v21  ;;  %v5351_v7 = vpop.f32.mrf.mxu0  ;;  %v6822_v5 = vpack.c.bf16 %v2240_v12, %v2239_v35  ;;  %v2106_v9 = vadd.f32 %v1814_v43, %v7898_v15  ;;  %v6846_v42 = vpop.f32.mrf.mxu1  ;;  %v7901_v35 = vld [vmem:[#allocation68_spill] sm:$0xff]  ;;  %v7902_v12 = vld [vmem:[#allocation25_spill] sm:$0xff]  ;;  %v7903_v21 = vld [vmem:[#allocation26_spill] sm:$0xff] }
 0x1d9   : > { %5413 = vmatmul.mubr.msk.bf16.gmra.mxu1 %vm2337_vm4, %v6818_v62  ;;  %5485 = vmatmul.mubr.msk.bf16.gmra.mxu0 %vm2337_vm4, %v6818_v62  ;;  %v1947_v61 = vrot.slane %v5351_v7, 1  ;;  %v7900_v59 = vrot.slane %v7899_v8, 7  ;;  %v2107_v30 = vadd.f32 %v1688_v20, %v6583_v63  ;;  %v2109_v54 = vadd.f32 %v6568_v33, %v7902_v12  ;;  %v7905_v7 = vld [vmem:[#allocation28_spill] sm:$0xff]  ;;  %v7906_v20 = vld [vmem:[#allocation27_spill] sm:$0xff]  ;;  %v7910_v12 = vld [vmem:[#allocation33_spill] sm:$0xff] }
 0x1da   : > { %v1437_v6 = vpop.f32.mrf.mxu0  ;;  %v6832_v23 = vpack.c.bf16 %v2238_v4, %v2237_v17  ;;  %v7904_v46 = vrot.slane %v7903_v21, 7  ;;  %v2110_v43 = vadd.f32 %v7905_v7, %v6617_v50 }
 0x1db   : > { %v1943_v55 = vrot.slane %v1437_v6, 1  ;;  %v1690_v45 = vsel %vm1625_vm3, %v1687_v38, %v7900_v59  ;;  %v1948_v40 = vsel %vm634_vm1, %v1945_v41, %v1947_v61  ;;  %v7907_v6 = vrot.slane %v7906_v20, 7  ;;  %v7908_v59 = vld [vmem:[#allocation30_spill] sm:$0xff] }
 0x1dc   : > { %v5354_v44 = vpop.f32.mrf.mxu0  ;;  %5416 = vmatprep.mubr.msk.bf16.mxu1 %vm2337_vm4, %v6832_v23  ;;  %5488 = vmatprep.mubr.msk.bf16.mxu0 %vm2337_vm4, %v6832_v23  ;;  %v2108_v63 = vadd.f32 %v7901_v35, %v1690_v45  ;;  %v1698_v17 = vsel %vm1625_vm3, %v1695_v34, %v7904_v46  ;;  %v6870_v45 = vpop.f32.mrf.mxu1 }
 0x1dd   : > { %v1944_v56 = vsel %vm634_vm1, %v1942_v0, %v1943_v55  ;;  %v1946_v28 = vsel %vm634_vm1, %v1943_v55, %v1945_v41  ;;  %v1696_v13 = vsel %vm1625_vm3, %v7907_v6, %v1695_v34  ;;  %v2112_v50 = vadd.f32 %v6599_v16, %v1698_v17 }
 0x1de   : > { %v2170_v47 = vadd.f32 %v2106_v9, %v1944_v56  ;;  %v2171_v10 = vadd.f32 %v2107_v30, %v1946_v28  ;;  %v1450_v38 = vpop.f32.mrf.mxu0  ;;  %v2172_v15 = vadd.f32 %v2108_v63, %v1948_v40  ;;  %v1953_v9 = vrot.slane %v5354_v44, 1  ;;  %v6887_v17 = vpop.f32.mrf.mxu1 }
 0x1df   : > { %v1949_v4 = vrot.slane %v1450_v38, 1  ;;  %v2113_v34 = vadd.f32 %v6630_v19, %v7908_v59 }
 0x1e0   : > { %v2241_v41 = vadd.f32 %v6570_v58, %v2170_v47  ;;  %v2242_v0 = vadd.f32 %v6570_v58, %v2171_v10  ;;  %v5355_v55 = vpop.f32.mrf.mxu0  ;;  %v7909_v10 = vld [vmem:[#allocation32_spill] sm:$0xff] }
 0x1e1   : > { %v1950_v33 = vsel %vm634_vm1, %v1947_v61, %v1949_v4  ;;  %v1955_v8 = vrot.slane %v5355_v55, 1  ;;  %5417 = vmatmul.mubr.msk.bf16.gmra.mxu1 %vm2337_vm4, %v6822_v5  ;;  %5489 = vmatmul.mubr.msk.bf16.gmra.mxu0 %vm2337_vm4, %v6822_v5  ;;  %v2111_v61 = vadd.f32 %v1696_v13, %v6650_v29  ;;  %v1701_v38 = vrot.slane %v7909_v10, 7  ;;  %v7912_v10 = vld [vmem:[#allocation31_spill] sm:$0xff] }
 0x1e2   : > { %v2173_v30 = vadd.f32 %v2109_v54, %v1950_v33  ;;  %v1453_v56 = vpop.f32.mrf.mxu0  ;;  %v6872_v28 = vpack.c.bf16 %v2242_v0, %v2241_v41  ;;  %v1702_v29 = vrot.slane %v7910_v12, 7  ;;  %v2243_v54 = vadd.f32 %v6570_v58, %v2172_v15 }
 0x1e3   : > { %v1956_v44 = vsel %vm634_vm1, %v1953_v9, %v1955_v8  ;;  %v2070_v40 = vsel %vm634_vm1, %v1955_v8, 0.0  ;;  %v1951_v47 = vrot.slane %v1453_v56, 1 }
 0x1e4   : > { %v2244_v16 = vadd.f32 %v6570_v58, %v2173_v30  ;;  %v2176_v35 = vadd.f32 %v2112_v50, %v1956_v44  ;;  %v2177_v63 = vadd.f32 %v2113_v34, %v2070_v40  ;;  %v5358_v19 = vpop.f32.mrf.mxu0  ;;  %5420 = vmatprep.mubr.msk.bf16.mxu1 %vm2337_vm4, %v6872_v28  ;;  %5492 = vmatprep.mubr.msk.bf16.mxu0 %vm2337_vm4, %v6872_v28  ;;  %v7911_v30 = vld [vmem:[#allocation40_spill] sm:$0xff] }
 0x1e5   : > { %v1952_v21 = vsel %vm634_vm1, %v1949_v4, %v1951_v47  ;;  %v1954_v46 = vsel %vm634_vm1, %v1951_v47, %v1953_v9  ;;  %v1815_v4 = vsel %vm1625_vm3, 0.0, %v1701_v38  ;;  %v1703_v9 = vsel %vm1625_vm3, %v1701_v38, %v1702_v29 }
 0x1e6   : > { %v2247_v7 = vadd.f32 %v6570_v58, %v2176_v35  ;;  %v2248_v20 = vadd.f32 %v6570_v58, %v2177_v63  ;;  %v2174_v6 = vadd.f32 %v2110_v43, %v1952_v21  ;;  %v2175_v13 = vadd.f32 %v2111_v61, %v1954_v46  ;;  %v1466_v41 = vpop.f32.mrf.mxu0  ;;  %v6903_v43 = vpop.f32.mrf.mxu1 }
 0x1e7   : > { %v6891_v0 = vpack.c.bf16 %v2244_v16, %v2243_v54  ;;  %v1710_v56 = vrot.slane %v7911_v30, 7  ;;  %v1960_v61 = vrot.slane %v5358_v19, 1  ;;  %v1957_v44 = vrot.slane %v1466_v41, 1 }
 0x1e8   : > { %v2245_v55 = vadd.f32 %v6570_v58, %v2174_v6  ;;  %v2246_v33 = vadd.f32 %v6570_v58, %v2175_v13  ;;  %v5359_v15 = vpop.f32.mrf.mxu0  ;;  %v6895_v8 = vpack.c.bf16 %v2248_v20, %v2247_v7  ;;  %v2114_v47 = vadd.f32 %v1815_v4, %v6684_v1  ;;  %v6919_v54 = vpop.f32.mrf.mxu1  ;;  %v7914_v7 = vld [vmem:[#allocation34_spill] sm:$0xff]  ;;  %v7915_v6 = vld [vmem:[#allocation35_spill] sm:$0xff]  ;;  %v7918_v4 = vld [vmem:[#allocation37_spill] sm:$0xff] }
 0x1e9   : > { %5421 = vmatmul.mubr.msk.bf16.gmra.mxu1 %vm2337_vm4, %v6891_v0  ;;  %5493 = vmatmul.mubr.msk.bf16.gmra.mxu0 %vm2337_vm4, %v6891_v0  ;;  %v1962_v50 = vrot.slane %v5359_v15, 1  ;;  %v7913_v38 = vrot.slane %v7912_v10, 7  ;;  %v2115_v35 = vadd.f32 %v1703_v9, %v6724_v49  ;;  %v2117_v20 = vadd.f32 %v6700_v52, %v7914_v7  ;;  %v7920_v10 = vld [vmem:[#allocation41_spill] sm:$0xff]  ;;  %v7922_v7 = vld [vmem:[#allocation46_spill] sm:$0xff] }
 0x1ea   : > { %v1469_v59 = vpop.f32.mrf.mxu0  ;;  %v6905_v34 = vpack.c.bf16 %v2246_v33, %v2245_v55  ;;  %v7916_v13 = vrot.slane %v7915_v6, 7  ;;  %v7917_v33 = vld [vmem:[#allocation38_spill] sm:$0xff]  ;;  %v7919_v9 = vrot.slane %v7918_v4, 7 }
 0x1eb   : > { %v1958_v40 = vrot.slane %v1469_v59, 1  ;;  %v1705_v16 = vsel %vm1625_vm3, %v1702_v29, %v7913_v38  ;;  %v1963_v1 = vsel %vm634_vm1, %v1960_v61, %v1962_v50  ;;  %v2118_v15 = vadd.f32 %v7917_v33, %v6757_v27  ;;  %v6943_v38 = vpop.f32.mrf.mxu1 }
 0x1ec   : > { %v5362_v63 = vpop.f32.mrf.mxu0  ;;  %5424 = vmatprep.mubr.msk.bf16.mxu1 %vm2337_vm4, %v6905_v34  ;;  %5496 = vmatprep.mubr.msk.bf16.mxu0 %vm2337_vm4, %v6905_v34  ;;  %v2116_v49 = vadd.f32 %v6668_v57, %v1705_v16  ;;  %v1713_v41 = vsel %vm1625_vm3, %v1710_v56, %v7916_v13  ;;  %v1711_v59 = vsel %vm1625_vm3, %v7919_v9, %v1710_v56 }
 0x1ed   : > { %v1959_v12 = vsel %vm634_vm1, %v1957_v44, %v1958_v40  ;;  %v1961_v19 = vsel %vm634_vm1, %v1958_v40, %v1960_v61  ;;  %v1968_v40 = vrot.slane %v5362_v63, 1  ;;  %v2120_v27 = vadd.f32 %v6741_v48, %v1713_v41  ;;  %v6960_v41 = vpop.f32.mrf.mxu1 }
 0x1ee   : > { %v2178_v21 = vadd.f32 %v2114_v47, %v1959_v12  ;;  %v2179_v46 = vadd.f32 %v2115_v35, %v1961_v19  ;;  %v1482_v29 = vpop.f32.mrf.mxu0  ;;  %v2180_v44 = vadd.f32 %v2116_v49, %v1963_v1  ;;  %v2121_v56 = vadd.f32 %v6773_v53, %v7920_v10 }
 0x1ef   : > { %v1964_v55 = vrot.slane %v1482_v29, 1 }
 0x1f0   : > { %v2249_v30 = vadd.f32 %v6570_v58, %v2178_v21  ;;  %v2250_v61 = vadd.f32 %v6570_v58, %v2179_v46  ;;  %v5363_v57 = vpop.f32.mrf.mxu0  ;;  %v7921_v21 = vld [vmem:[#allocation44_spill] sm:$0xff] }
 0x1f1   : > { %v1965_v52 = vsel %vm634_vm1, %v1962_v50, %v1964_v55  ;;  %v1970_v47 = vrot.slane %v5363_v57, 1  ;;  %5425 = vmatmul.mubr.msk.bf16.gmra.mxu1 %vm2337_vm4, %v6895_v8  ;;  %5497 = vmatmul.mubr.msk.bf16.gmra.mxu0 %vm2337_vm4, %v6895_v8  ;;  %v2119_v50 = vadd.f32 %v1711_v59, %v6797_v14  ;;  %v1716_v46 = vrot.slane %v7921_v21, 7 }
 0x1f2   : > { %v2181_v16 = vadd.f32 %v2117_v20, %v1965_v52  ;;  %v1485_v35 = vpop.f32.mrf.mxu0  ;;  %v6945_v12 = vpack.c.bf16 %v2250_v61, %v2249_v30  ;;  %v1717_v14 = vrot.slane %v7922_v7, 7  ;;  %v2251_v20 = vadd.f32 %v6570_v58, %v2180_v44 }
 0x1f3   : > { %v1971_v63 = vsel %vm634_vm1, %v1968_v40, %v1970_v47  ;;  %v2071_v19 = vsel %vm634_vm1, %v1970_v47, 0.0  ;;  %v1966_v1 = vrot.slane %v1485_v35, 1 }
 0x1f4   : > { %v2252_v48 = vadd.f32 %v6570_v58, %v2181_v16  ;;  %v2184_v29 = vadd.f32 %v2120_v27, %v1971_v63  ;;  %v2185_v49 = vadd.f32 %v2121_v56, %v2071_v19  ;;  %v5366_v53 = vpop.f32.mrf.mxu0  ;;  %5428 = vmatprep.mubr.msk.bf16.mxu1 %vm2337_vm4, %v6945_v12  ;;  %5500 = vmatprep.mubr.msk.bf16.mxu0 %vm2337_vm4, %v6945_v12  ;;  %v6979_v16 = vpop.f32.mrf.mxu1  ;;  %v7925_v19 = vld [vmem:[#allocation53_spill] sm:$0xff] }
 0x1f5   : > { %v1967_v6 = vsel %vm634_vm1, %v1964_v55, %v1966_v1  ;;  %v1969_v13 = vsel %vm634_vm1, %v1966_v1, %v1968_v40  ;;  %v1816_v55 = vsel %vm1625_vm3, 0.0, %v1716_v46  ;;  %v1718_v40 = vsel %vm1625_vm3, %v1716_v46, %v1717_v14 }
 0x1f6   : > { %v2255_v33 = vadd.f32 %v6570_v58, %v2184_v29  ;;  %v2256_v4 = vadd.f32 %v6570_v58, %v2185_v49  ;;  %v2182_v9 = vadd.f32 %v2118_v15, %v1967_v6  ;;  %v2183_v59 = vadd.f32 %v2119_v50, %v1969_v13  ;;  %v1498_v30 = vpop.f32.mrf.mxu0  ;;  %v7923_v15 = vld [vmem:[#allocation42_spill] sm:$0xff]  ;;  %v6994_v6 = vpop.f32.mrf.mxu1 }
 0x1f7   : > { %v6964_v61 = vpack.c.bf16 %v2252_v48, %v2251_v20  ;;  %v7924_v10 = vrot.slane %v7923_v15, 7  ;;  %v1975_v35 = vrot.slane %v5366_v53, 1  ;;  %v1725_v1 = vrot.slane %v7925_v19, 7 }
 0x1f8   : > { %v2253_v57 = vadd.f32 %v6570_v58, %v2182_v9  ;;  %v2254_v52 = vadd.f32 %v6570_v58, %v2183_v59  ;;  %v5367_v44 = vpop.f32.mrf.mxu0  ;;  %v6968_v47 = vpack.c.bf16 %v2256_v4, %v2255_v33  ;;  %v1972_v21 = vrot.slane %v1498_v30, 1  ;;  %v7926_v33 = vld [vmem:[#allocation48_spill] sm:$0xff]  ;;  %v7928_v59 = vld [vmem:[#allocation50_spill] sm:$0xff] }
 0x1f9   : > { %v1977_v27 = vrot.slane %v5367_v44, 1  ;;  %5429 = vmatmul.mubr.msk.bf16.gmra.mxu1 %vm2337_vm4, %v6964_v61  ;;  %5501 = vmatmul.mubr.msk.bf16.gmra.mxu0 %vm2337_vm4, %v6964_v61  ;;  %v1720_v56 = vsel %vm1625_vm3, %v1717_v14, %v7924_v10  ;;  %v2122_v48 = vadd.f32 %v1816_v55, %v6830_v51  ;;  %v2123_v29 = vadd.f32 %v1718_v40, %v6870_v45  ;;  %v7931_v40 = vld [vmem:[#allocation51_spill] sm:$0xff] }
 0x1fa   : > { %v1501_v50 = vpop.f32.mrf.mxu0  ;;  %v6981_v63 = vpack.c.bf16 %v2254_v52, %v2253_v57  ;;  %v2124_v53 = vadd.f32 %v6814_v37, %v1720_v56  ;;  %v7927_v4 = vrot.slane %v7926_v33, 7  ;;  %v7929_v30 = vrot.slane %v7928_v59, 7  ;;  %v7930_v37 = vld [vmem:[#allocation47_spill] sm:$0xff] }
 0x1fb   : > { %v1973_v46 = vrot.slane %v1501_v50, 1  ;;  %v1978_v49 = vsel %vm634_vm1, %v1975_v35, %v1977_v27  ;;  %v2125_v55 = vadd.f32 %v6846_v42, %v7930_v37  ;;  %v2126_v15 = vadd.f32 %v7931_v40, %v6903_v43  ;;  %v7932_v50 = vld [vmem:[#allocation54_spill] sm:$0xff]  ;;  %v7934_v33 = vld [vmem:[#allocation59_spill] sm:$0xff] }
 0x1fc   : > { %v5370_v7 = vpop.f32.mrf.mxu0  ;;  %5432 = vmatprep.mubr.msk.bf16.mxu1 %vm2337_vm4, %v6981_v63  ;;  %5504 = vmatprep.mubr.msk.bf16.mxu0 %vm2337_vm4, %v6981_v63  ;;  %v1728_v9 = vsel %vm1625_vm3, %v1725_v1, %v7927_v4  ;;  %v1726_v57 = vsel %vm1625_vm3, %v7929_v30, %v1725_v1  ;;  %v2188_v52 = vadd.f32 %v2124_v53, %v1978_v49  ;;  %v1732_v4 = vrot.slane %v7934_v33, 7 }
 0x1fd   : > { %v1974_v14 = vsel %vm634_vm1, %v1972_v21, %v1973_v46  ;;  %v1976_v20 = vsel %vm634_vm1, %v1973_v46, %v1975_v35  ;;  %v2129_v19 = vadd.f32 %v6919_v54, %v7932_v50  ;;  %v1983_v21 = vrot.slane %v5370_v7, 1 }
 0x1fe   : > { %v2186_v51 = vadd.f32 %v2122_v48, %v1974_v14  ;;  %v2187_v13 = vadd.f32 %v2123_v29, %v1976_v20  ;;  %v1514_v45 = vpop.f32.mrf.mxu0  ;;  %v2128_v42 = vadd.f32 %v6887_v17, %v1728_v9  ;;  %v2127_v43 = vadd.f32 %v1726_v57, %v6943_v38  ;;  %v1217_v48 = vpop.f32.mrf.mxu1  ;;  %v7933_v17 = vld [vmem:[#allocation57_spill] sm:$0xff] }
 0x1ff   : > { %v1979_v44 = vrot.slane %v1514_v45, 1  ;;  %v2259_v54 = vadd.f32 %v6570_v58, %v2188_v52  ;;  %v1731_v38 = vrot.slane %v7933_v17, 7 }
 0x200   : > { %v2257_v10 = vadd.f32 %v6570_v58, %v2186_v51  ;;  %v2258_v56 = vadd.f32 %v6570_v58, %v2187_v13  ;;  %v5371_v35 = vpop.f32.mrf.mxu0  ;;  %v5308_v30 = vpop.f32.mrf.mxu1 }
 0x201   : > { %v1980_v46 = vsel %vm634_vm1, %v1977_v27, %v1979_v44  ;;  %v1985_v1 = vrot.slane %v5371_v35, 1  ;;  %5433 = vmatmul.mubr.msk.bf16.gmra.mxu1 %vm2337_vm4, %v6968_v47  ;;  %5505 = vmatmul.mubr.msk.bf16.gmra.mxu0 %vm2337_vm4, %v6968_v47 }
 0x202   : > { %v2189_v29 = vadd.f32 %v2125_v55, %v1980_v46  ;;  %v1517_v49 = vpop.f32.mrf.mxu0  ;;  %v7017_v53 = vpack.c.bf16 %v2258_v56, %v2257_v10 }
 0x203   : > { %v1986_v27 = vsel %vm634_vm1, %v1983_v21, %v1985_v1  ;;  %v2072_v7 = vsel %vm634_vm1, %v1985_v1, 0.0  ;;  %v1981_v14 = vrot.slane %v1517_v49, 1 }
 0x204   : > { %v2260_v20 = vadd.f32 %v6570_v58, %v2189_v29  ;;  %v2192_v51 = vadd.f32 %v2128_v42, %v1986_v27  ;;  %v2193_v13 = vadd.f32 %v2129_v19, %v2072_v7  ;;  %v5374_v45 = vpop.f32.mrf.mxu0  ;;  %5436 = vmatprep.mubr.msk.bf16.mxu1 %vm2337_vm4, %v7017_v53  ;;  %5508 = vmatprep.mubr.msk.bf16.mxu0 %vm2337_vm4, %v7017_v53  ;;  %v1817_v19 = vsel %vm1625_vm3, 0.0, %v1731_v38 }
 0x205   : > { %v1982_v9 = vsel %vm634_vm1, %v1979_v44, %v1981_v14  ;;  %v1984_v59 = vsel %vm634_vm1, %v1981_v14, %v1983_v21  ;;  %v1733_v44 = vsel %vm1625_vm3, %v1731_v38, %v1732_v4  ;;  %v1990_v29 = vrot.slane %v5374_v45, 1 }
 0x206   : > { %v7031_v57 = vpack.c.bf16 %v2260_v20, %v2259_v54  ;;  %v2263_v52 = vadd.f32 %v6570_v58, %v2192_v51  ;;  %v2264_v37 = vadd.f32 %v6570_v58, %v2193_v13  ;;  %v2190_v55 = vadd.f32 %v2126_v15, %v1982_v9  ;;  %v1530_v40 = vpop.f32.mrf.mxu0  ;;  %v7935_v15 = vld [vmem:[#allocation55_spill] sm:$0xff]  ;;  %v7937_v54 = vld [vmem:[#allocation66_spill] sm:$0xff] }
 0x207   : > { %v2191_v10 = vadd.f32 %v2127_v43, %v1984_v59  ;;  %v7936_v1 = vrot.slane %v7935_v15, 7  ;;  %v1230_v43 = vpop.f32.mrf.mxu1  ;;  %v1740_v27 = vrot.slane %v7937_v54, 7  ;;  %v1987_v7 = vrot.slane %v1530_v40, 1 }
 0x208   : > { %v7035_v56 = vpack.c.bf16 %v2264_v37, %v2263_v52  ;;  %v2261_v35 = vadd.f32 %v6570_v58, %v2190_v55  ;;  %v5375_v50 = vpop.f32.mrf.mxu0  ;;  %v2130_v51 = vadd.f32 %v1817_v19, %v6979_v16  ;;  %v2131_v13 = vadd.f32 %v1733_v44, %v1217_v48  ;;  %v7938_v48 = vld [vmem:[#allocation61_spill] sm:$0xff] }
 0x209   : > { %v2262_v21 = vadd.f32 %v6570_v58, %v2191_v10  ;;  %v1992_v46 = vrot.slane %v5375_v50, 1  ;;  %5437 = vmatmul.mubr.msk.bf16.gmra.mxu1 %vm2337_vm4, %v7031_v57  ;;  %5509 = vmatmul.mubr.msk.bf16.gmra.mxu0 %vm2337_vm4, %v7031_v57  ;;  %v1735_v42 = vsel %vm1625_vm3, %v1732_v4, %v7936_v1  ;;  %v5309_v45 = vpop.f32.mrf.mxu1  ;;  %v7939_v37 = vrot.slane %v7938_v48, 7  ;;  %v7940_v10 = vld [vmem:[#allocation60_spill] sm:$0xff]  ;;  %v7942_v1 = vld [vmem:[#allocation67_spill] sm:$0xff] }
 0x20a   : > { %v1533_v49 = vpop.f32.mrf.mxu0  ;;  %v2132_v33 = vadd.f32 %v6960_v41, %v1735_v42  ;;  %v7941_v50 = vld [vmem:[#allocation64_spill] sm:$0xff]  ;;  %v2137_v42 = vadd.f32 %v5309_v45, %v7942_v1 }
 0x20b   : > { %v1988_v14 = vrot.slane %v1533_v49, 1  ;;  %v7049_v20 = vpack.c.bf16 %v2262_v21, %v2261_v35  ;;  %v1993_v17 = vsel %vm634_vm1, %v1990_v29, %v1992_v46  ;;  %v1743_v55 = vsel %vm1625_vm3, %v1740_v27, %v7939_v37 }
 0x20c   : > { %v5378_v38 = vpop.f32.mrf.mxu0  ;;  %v2196_v40 = vadd.f32 %v2132_v33, %v1993_v17  ;;  %v2133_v35 = vadd.f32 %v6994_v6, %v7940_v10  ;;  %v2134_v19 = vadd.f32 %v7941_v50, %v1230_v43  ;;  %v2136_v6 = vadd.f32 %v5308_v30, %v1743_v55  ;;  %v7943_v43 = vld [vmem:[#allocation63_spill] sm:$0xff] }
 0x20d   : > { %v1989_v9 = vsel %vm634_vm1, %v1987_v7, %v1988_v14  ;;  %v1991_v4 = vsel %vm634_vm1, %v1988_v14, %v1990_v29  ;;  %5440 = vmatprep.mubr.msk.bf16.mxu1 %vm2337_vm4, %v7049_v20  ;;  %5512 = vmatprep.mubr.msk.bf16.mxu0 %vm2337_vm4, %v7049_v20  ;;  %v1998_v29 = vrot.slane %v5378_v38, 1  ;;  %v1233_v7 = vpop.f32.mrf.mxu1  ;;  %v7944_v14 = vrot.slane %v7943_v43, 7  ;;  %v5701_v38 = vld [vmem:[#allocation5] ss:$0 sm:$0xff] }
 0x20e   : > { %v2194_v59 = vadd.f32 %v2130_v51, %v1989_v9  ;;  %v2195_v52 = vadd.f32 %v2131_v13, %v1991_v4  ;;  %v1546_v16 = vpop.f32.mrf.mxu0  ;;  %v2267_v33 = vadd.f32 %v5701_v38, %v2196_v40 }
 0x20f   : > { %v1994_v41 = vrot.slane %v1546_v16, 1  ;;  %v1741_v51 = vsel %vm1625_vm3, %v7944_v14, %v1740_v27 }
 0x210   : > { %v2265_v44 = vadd.f32 %v6570_v58, %v2194_v59  ;;  %v2266_v21 = vadd.f32 %v6570_v58, %v2195_v52  ;;  %v5379_v15 = vpop.f32.mrf.mxu0  ;;  %v2135_v30 = vadd.f32 %v1741_v51, %v1233_v7 }
 0x211   : > { %v1995_v49 = vsel %vm634_vm1, %v1992_v46, %v1994_v41  ;;  %v2000_v54 = vrot.slane %v5379_v15, 1  ;;  %5441 = vmatmul.mubr.msk.bf16.gmra.mxu1 %vm2337_vm4, %v7035_v56  ;;  %5513 = vmatmul.mubr.msk.bf16.gmra.mxu0 %vm2337_vm4, %v7035_v56 }
 0x212   : > { %v2197_v58 = vadd.f32 %v2133_v35, %v1995_v49  ;;  %v1549_v13 = vpop.f32.mrf.mxu0  ;;  %v7077_v17 = vpack.c.bf16 %v2266_v21, %v2265_v44 }
 0x213   : > { %v2001_v46 = vsel %vm634_vm1, %v1998_v29, %v2000_v54  ;;  %v2073_v9 = vsel %vm634_vm1, %v2000_v54, 0.0  ;;  %v1996_v4 = vrot.slane %v1549_v13, 1 }
 0x214   : > { %v2268_v45 = vadd.f32 %v5701_v38, %v2197_v58  ;;  %v2200_v59 = vadd.f32 %v2136_v6, %v2001_v46  ;;  %v2201_v52 = vadd.f32 %v2137_v42, %v2073_v9  ;;  %5444 = vmatprep.mubr.msk.bf16.mxu1 %vm2337_vm4, %v7077_v17  ;;  %5516 = vmatprep.mubr.msk.bf16.mxu0 %vm2337_vm4, %v7077_v17 }
 0x215   : > { %v1997_v27 = vsel %vm634_vm1, %v1994_v41, %v1996_v4  ;;  %v1999_v16 = vsel %vm634_vm1, %v1996_v4, %v1998_v29 }
 0x216   : > { %v7087_v48 = vpack.c.bf16 %v2268_v45, %v2267_v33  ;;  %v2271_v37 = vadd.f32 %v5701_v38, %v2200_v59  ;;  %v2272_v55 = vadd.f32 %v5701_v38, %v2201_v52  ;;  %v2198_v40 = vadd.f32 %v2134_v19, %v1997_v27 }
 0x217   : > { %v2199_v10 = vadd.f32 %v2135_v30, %v1999_v16 }
 0x218   : > { %v7089_v35 = vpack.c.bf16 %v2272_v55, %v2271_v37  ;;  %v2269_v50 = vadd.f32 %v5701_v38, %v2198_v40 }
 0x219   : > { %v2270_v44 = vadd.f32 %v5701_v38, %v2199_v10  ;;  %5445 = vmatmul.mubr.msk.bf16.gmra.mxu1 %vm2337_vm4, %v7087_v48  ;;  %5517 = vmatmul.mubr.msk.bf16.gmra.mxu0 %vm2337_vm4, %v7087_v48 }
 0x21b   : > { %v7095_v21 = vpack.c.bf16 %v2270_v44, %v2269_v50 }
 0x21d   : > { %5448 = vmatprep.mubr.msk.bf16.mxu1 %vm2337_vm4, %v7095_v21  ;;  %5520 = vmatprep.mubr.msk.bf16.mxu0 %vm2337_vm4, %v7095_v21 }
 0x221   : > { %5449 = vmatmul.mubr.msk.bf16.gmra.mxu1 %vm2337_vm4, %v7089_v35  ;;  %5521 = vmatmul.mubr.msk.bf16.gmra.mxu0 %vm2337_vm4, %v7089_v35 }
 0x222   : > { %5532 = vmatprep.mubr.msk.bf16.mxu1 %vm2337_vm4, %v6585_v24 }
 0x229   : > { %5533 = vmatmul.mubr.msk.bf16.vlgmr.msra.gmra.mxu1 %vm2337_vm4, %v6601_v25 }
 0x22a   : > { %5536 = vmatprep.mubr.msk.bf16.mxu1 %vm2337_vm4, %v6619_v60 }
 0x231   : > { %5537 = vmatmul.mubr.msk.bf16.gmra.mxu1 %vm2337_vm4, %v6610_v18 }
 0x232   : > { %5540 = vmatprep.mubr.msk.bf16.mxu1 %vm2337_vm4, %v6652_v11 }
 0x239   : > { %5541 = vmatmul.mubr.msk.bf16.gmra.mxu1 %vm2337_vm4, %v6672_v22 }
 0x23a   : > { %5544 = vmatprep.mubr.msk.bf16.mxu1 %vm2337_vm4, %v6686_v26 }
 0x241   : > { %5545 = vmatmul.mubr.msk.bf16.gmra.mxu1 %vm2337_vm4, %v6676_v31 }
 0x242   : > { %5548 = vmatprep.mubr.msk.bf16.mxu1 %vm2337_vm4, %v6726_v32 }
 0x249   : > { %5549 = vmatmul.mubr.msk.bf16.gmra.mxu1 %vm2337_vm4, %v6745_v3 }
 0x24a   : > { %5552 = vmatprep.mubr.msk.bf16.mxu1 %vm2337_vm4, %v6759_v36 }
 0x251   : > { %5553 = vmatmul.mubr.msk.bf16.gmra.mxu1 %vm2337_vm4, %v6749_v39 }
 0x252   : > { %5556 = vmatprep.mubr.msk.bf16.mxu1 %vm2337_vm4, %v6799_v2 }
 0x259   : > { %5557 = vmatmul.mubr.msk.bf16.gmra.mxu1 %vm2337_vm4, %v6818_v62 }
 0x25a   : > { %5560 = vmatprep.mubr.msk.bf16.mxu1 %vm2337_vm4, %v6832_v23 }
 0x261   : > { %5561 = vmatmul.mubr.msk.bf16.gmra.mxu1 %vm2337_vm4, %v6822_v5 }
 0x262   : > { %5564 = vmatprep.mubr.msk.bf16.mxu1 %vm2337_vm4, %v6872_v28 }
 0x268   : > { %v5390_v24 = vpop.f32.mrf.mxu1  ;;  %v7145_v18 = vpop.f32.mrf.mxu0 }
 0x269   : > { %5565 = vmatmul.mubr.msk.bf16.gmra.mxu1 %vm2337_vm4, %v6891_v0  ;;  %v3434_v11 = vrot.slane %v5390_v24, 7 }
 0x26a   : > { %5568 = vmatprep.mubr.msk.bf16.mxu1 %vm2337_vm4, %v6905_v34  ;;  %v7143_v25 = vpop.f32.mrf.mxu1  ;;  %v7151_v39 = vpop.f32.mrf.mxu0 }
 0x26b   : > { %v7798_v26 = vrot.slane %v7143_v25, 7 }
 0x26c   : > { %v5391_v60 = vpop.f32.mrf.mxu1  ;;  %v7165_v28 = vpop.f32.mrf.mxu0 }
 0x26d   : > { %v3436_v22 = vrot.slane %v5391_v60, 7 }
 0x26e   : > { %v2471_v31 = vpop.f32.mrf.mxu1  ;;  %v7173_v29 = vpop.f32.mrf.mxu0 }
 0x26f   : > { %v7149_v32 = vsel %vm1625_vm3, %v3434_v11, %v3436_v22  ;;  %v3432_v3 = vrot.slane %v2471_v31, 7 }
 0x270   : > { %v5394_v36 = vpop.f32.mrf.mxu1  ;;  %v7187_v6 = vpop.f32.mrf.mxu0 }
 0x271   : > { %v7154_v2 = vsel %vm1625_vm3, %v3432_v3, %v3434_v11  ;;  %v7159_v62 = vsel %vm1625_vm3, %v7798_v26, %v3432_v3  ;;  %5569 = vmatmul.mubr.msk.bf16.gmra.mxu1 %vm2337_vm4, %v6895_v8  ;;  %v3442_v34 = vrot.slane %v5394_v36, 7 }
 0x272   : > { %5572 = vmatprep.mubr.msk.bf16.mxu1 %vm2337_vm4, %v6945_v12  ;;  %v2484_v5 = vpop.f32.mrf.mxu1  ;;  %v7189_v58 = vpop.f32.mrf.mxu0 }
 0x273   : > { %v3438_v23 = vrot.slane %v2484_v5, 7 }
 0x274   : > { %v5395_v0 = vpop.f32.mrf.mxu1  ;;  %v7207_v4 = vpop.f32.mrf.mxu0 }
 0x275   : > { %v7168_v41 = vsel %vm1625_vm3, %v3436_v22, %v3438_v23  ;;  %v3444_v19 = vrot.slane %v5395_v0, 7 }
 0x276   : > { %v2487_v15 = vpop.f32.mrf.mxu1  ;;  %v7212_v16 = vpop.f32.mrf.mxu0 }
 0x277   : > { %v7171_v1 = vsel %vm1625_vm3, %v3442_v34, %v3444_v19  ;;  %v3440_v42 = vrot.slane %v2487_v15, 7 }
 0x279   : > { %v7176_v8 = vsel %vm1625_vm3, %v3440_v42, %v3442_v34  ;;  %v7179_v12 = vsel %vm1625_vm3, %v3438_v23, %v3440_v42  ;;  %v5398_v49 = vpop.f32.mrf.mxu1  ;;  %5573 = vmatmul.mubr.msk.bf16.gmra.mxu1 %vm2337_vm4, %v6964_v61  ;;  %v7229_v44 = vpop.f32.mrf.mxu0 }
 0x27a   : > { %5576 = vmatprep.mubr.msk.bf16.mxu1 %vm2337_vm4, %v6981_v63  ;;  %v3449_v43 = vrot.slane %v5398_v49, 7 }
 0x27b   : > { %v7185_v54 = vpop.f32.mrf.mxu1  ;;  %v7231_v31 = vpop.f32.mrf.mxu0 }
 0x27c   : > { %v7797_v13 = vrot.slane %v7185_v54, 7 }
 0x27d   : > { %v5399_v7 = vpop.f32.mrf.mxu1  ;;  %v7249_v34 = vpop.f32.mrf.mxu0 }
 0x27e   : > { %v3451_v14 = vrot.slane %v5399_v7, 7 }
 0x27f   : > { %v2503_v51 = vpop.f32.mrf.mxu1 }
 0x280   : > { %v7193_v38 = vsel %vm1625_vm3, %v3449_v43, %v3451_v14  ;;  %v3447_v33 = vrot.slane %v2503_v51, 7 }
 0x281   : > { %v5402_v61 = vpop.f32.mrf.mxu1  ;;  %5577 = vmatmul.mubr.msk.bf16.gmra.mxu1 %vm2337_vm4, %v6968_v47 }
 0x282   : > { %v7198_v63 = vsel %vm1625_vm3, %v3447_v33, %v3449_v43  ;;  %v7203_v46 = vsel %vm1625_vm3, %v7797_v13, %v3447_v33  ;;  %5580 = vmatprep.mubr.msk.bf16.mxu1 %vm2337_vm4, %v7017_v53  ;;  %v3457_v52 = vrot.slane %v5402_v61, 7  ;;  %v7254_v43 = vpop.f32.mrf.mxu0 }
 0x283   : > { %v2516_v9 = vpop.f32.mrf.mxu1 }
 0x284   : > { %v3453_v45 = vrot.slane %v2516_v9, 7 }
 0x285   : > { %v5403_v59 = vpop.f32.mrf.mxu1 }
 0x286   : > { %v7210_v30 = vsel %vm1625_vm3, %v3451_v14, %v3453_v45  ;;  %v3459_v47 = vrot.slane %v5403_v59, 7 }
 0x287   : > { %v2519_v27 = vpop.f32.mrf.mxu1 }
 0x288   : > { %v7215_v37 = vsel %vm1625_vm3, %v3457_v52, %v3459_v47  ;;  %v3455_v55 = vrot.slane %v2519_v27, 7 }
 0x289   : > { %v5406_v40 = vpop.f32.mrf.mxu1  ;;  %5581 = vmatmul.mubr.msk.bf16.gmra.mxu1 %vm2337_vm4, %v7031_v57 }
 0x28a   : > { %v7220_v53 = vsel %vm1625_vm3, %v3455_v55, %v3457_v52  ;;  %v7223_v10 = vsel %vm1625_vm3, %v3453_v45, %v3455_v55  ;;  %5584 = vmatprep.mubr.msk.bf16.mxu1 %vm2337_vm4, %v7049_v20  ;;  %v3464_v60 = vrot.slane %v5406_v40, 7  ;;  %v7271_v45 = vpop.f32.mrf.mxu0 }
 0x28b   : > { %v7227_v50 = vpop.f32.mrf.mxu1 }
 0x28c   : > { %v7796_v57 = vrot.slane %v7227_v50, 7  ;;  %v7273_v55 = vpop.f32.mrf.mxu0 }
 0x28d   : > { %v5407_v24 = vpop.f32.mrf.mxu1 }
 0x28e   : > { %v3466_v11 = vrot.slane %v5407_v24, 7 }
 0x28f   : > { %v2535_v22 = vpop.f32.mrf.mxu1 }
 0x290   : > { %v7235_v3 = vsel %vm1625_vm3, %v3464_v60, %v3466_v11  ;;  %v3462_v36 = vrot.slane %v2535_v22, 7 }
 0x291   : > { %v5410_v5 = vpop.f32.mrf.mxu1  ;;  %5585 = vmatmul.mubr.msk.bf16.gmra.mxu1 %vm2337_vm4, %v7035_v56 }
 0x292   : > { %v7240_v20 = vsel %vm1625_vm3, %v3462_v36, %v3464_v60  ;;  %v7245_v23 = vsel %vm1625_vm3, %v7796_v57, %v3462_v36  ;;  %5588 = vmatprep.mubr.msk.bf16.mxu1 %vm2337_vm4, %v7077_v17  ;;  %v3472_v42 = vrot.slane %v5410_v5, 7  ;;  %v7289_v36 = vpop.f32.mrf.mxu0 }
 0x293   : > { %v2548_v0 = vpop.f32.mrf.mxu1 }
 0x294   : > { %v3468_v19 = vrot.slane %v2548_v0, 7 }
 0x295   : > { %v5411_v15 = vpop.f32.mrf.mxu1 }
 0x296   : > { %v7252_v49 = vsel %vm1625_vm3, %v3466_v11, %v3468_v19  ;;  %v3474_v56 = vrot.slane %v5411_v15, 7 }
 0x297   : > { %v2551_v7 = vpop.f32.mrf.mxu1 }
 0x298   : > { %v7257_v14 = vsel %vm1625_vm3, %v3472_v42, %v3474_v56  ;;  %v3470_v51 = vrot.slane %v2551_v7, 7 }
 0x299   : > { %v5414_v33 = vpop.f32.mrf.mxu1  ;;  %5589 = vmatmul.mubr.msk.bf16.gmra.mxu1 %vm2337_vm4, %v7087_v48 }
 0x29a   : > { %v7262_v17 = vsel %vm1625_vm3, %v3470_v51, %v3472_v42  ;;  %v7265_v61 = vsel %vm1625_vm3, %v3468_v19, %v3470_v51  ;;  %5592 = vmatprep.mubr.msk.bf16.mxu1 %vm2337_vm4, %v7095_v21  ;;  %v3479_v52 = vrot.slane %v5414_v33, 7 }
 0x29b   : > { %7945 = vst [vmem:[#allocation36_spill] sm:$0xff] %v7265_v61  ;;  %v7269_v9 = vpop.f32.mrf.mxu1 }
 0x29c   : > { %7946 = vst [vmem:[#allocation39_spill] sm:$0xff] %v7269_v9  ;;  %v7795_v48 = vrot.slane %v7269_v9, 7 }
 0x29d   : > { %v5415_v59 = vpop.f32.mrf.mxu1 }
 0x29e   : > { %v3481_v47 = vrot.slane %v5415_v59, 7 }
 0x29f   : > { %v2567_v27 = vpop.f32.mrf.mxu1 }
 0x2a0   : > { %v7277_v40 = vsel %vm1625_vm3, %v3479_v52, %v3481_v47  ;;  %v3477_v24 = vrot.slane %v2567_v27, 7 }
 0x2a1   : > { %7947 = vst [vmem:[#allocation14_spill] sm:$0xff] %v7277_v40  ;;  %v5418_v60 = vpop.f32.mrf.mxu1  ;;  %5593 = vmatmul.mubr.msk.bf16.gmra.mxu1 %vm2337_vm4, %v7089_v35  ;;  %v7294_v35 = vpop.f32.mrf.mxu0 }
 0x2a2   : > { %v7282_v21 = vsel %vm1625_vm3, %v3477_v24, %v3479_v52  ;;  %v7287_v11 = vsel %vm1625_vm3, %v7795_v48, %v3477_v24  ;;  %v3487_v19 = vrot.slane %v5418_v60, 7 }
 0x2a3   : > { %7948 = vst [vmem:[#allocation15_spill] sm:$0xff] %v7282_v21  ;;  %7949 = vst [vmem:[#allocation20_spill] sm:$0xff] %v7287_v11  ;;  %v2580_v22 = vpop.f32.mrf.mxu1  ;;  %v7307_v24 = vpop.f32.mrf.mxu0 }
 0x2a4   : > { %v3483_v5 = vrot.slane %v2580_v22, 7 }
 0x2a5   : > { %v5419_v0 = vpop.f32.mrf.mxu1  ;;  %v7309_v48 = vpop.f32.mrf.mxu0 }
 0x2a6   : > { %v7292_v15 = vsel %vm1625_vm3, %v3481_v47, %v3483_v5  ;;  %v3489_v42 = vrot.slane %v5419_v0, 7 }
 0x2a7   : > { %7950 = vst [vmem:[#allocation45_spill] sm:$0xff] %v7292_v15  ;;  %v2583_v56 = vpop.f32.mrf.mxu1 }
 0x2a8   : > { %v7297_v7 = vsel %vm1625_vm3, %v3487_v19, %v3489_v42  ;;  %v3485_v51 = vrot.slane %v2583_v56, 7 }
 0x2a9   : > { %7951 = vst [vmem:[#allocation13_spill] sm:$0xff] %v7297_v7  ;;  %v5422_v33 = vpop.f32.mrf.mxu1 }
 0x2aa   : > { %v7300_v59 = vsel %vm1625_vm3, %v3485_v51, %v3487_v19  ;;  %v7303_v52 = vsel %vm1625_vm3, %v3483_v5, %v3485_v51  ;;  %v3494_v60 = vrot.slane %v5422_v33, 7 }
 0x2ab   : > { %7952 = vst [vmem:[#allocation52_spill] sm:$0xff] %v7300_v59  ;;  %7953 = vst [vmem:[#allocation43_spill] sm:$0xff] %v7303_v52  ;;  %v7305_v27 = vpop.f32.mrf.mxu1 }
 0x2ac   : > { %7954 = vst [vmem:[#allocation16_spill] sm:$0xff] %v7305_v27  ;;  %v7800_v42 = vrot.slane %v7305_v27, 7 }
 0x2ad   : > { %v5423_v47 = vpop.f32.mrf.mxu1 }
 0x2ae   : > { %v3496_v22 = vrot.slane %v5423_v47, 7  ;;  %v7323_v47 = vpop.f32.mrf.mxu0 }
 0x2af   : > { %v2599_v0 = vpop.f32.mrf.mxu1 }
 0x2b0   : > { %v7313_v56 = vsel %vm1625_vm3, %v3494_v60, %v3496_v22  ;;  %v3492_v19 = vrot.slane %v2599_v0, 7  ;;  %v7328_v59 = vpop.f32.mrf.mxu0 }
 0x2b1   : > { %7955 = vst [vmem:[#allocation49_spill] sm:$0xff] %v7313_v56  ;;  %v5426_v57 = vpop.f32.mrf.mxu1 }
 0x2b2   : > { %v7316_v5 = vsel %vm1625_vm3, %v3492_v19, %v3494_v60  ;;  %v7321_v51 = vsel %vm1625_vm3, %v7800_v42, %v3492_v19  ;;  %v3502_v52 = vrot.slane %v5426_v57, 7  ;;  %v7341_v57 = vpop.f32.mrf.mxu0 }
 0x2b3   : > { %7956 = vst [vmem:[#allocation17_spill] sm:$0xff] %v7316_v5  ;;  %7957 = vst [vmem:[#allocation58_spill] sm:$0xff] %v7321_v51  ;;  %v2612_v33 = vpop.f32.mrf.mxu1 }
 0x2b4   : > { %v3498_v13 = vrot.slane %v2612_v33, 7  ;;  %v7343_v7 = vpop.f32.mrf.mxu0 }
 0x2b5   : > { %v5427_v26 = vpop.f32.mrf.mxu1 }
 0x2b6   : > { %v7326_v15 = vsel %vm1625_vm3, %v3496_v22, %v3498_v13  ;;  %v3504_v56 = vrot.slane %v5427_v26, 7 }
 0x2b7   : > { %7958 = vst [vmem:[#allocation19_spill] sm:$0xff] %v7326_v15  ;;  %v2615_v0 = vpop.f32.mrf.mxu1 }
 0x2b8   : > { %v7331_v60 = vsel %vm1625_vm3, %v3502_v52, %v3504_v56  ;;  %v3500_v5 = vrot.slane %v2615_v0, 7 }
 0x2b9   : > { %7959 = vst [vmem:[#allocation18_spill] sm:$0xff] %v7331_v60  ;;  %v5430_v27 = vpop.f32.mrf.mxu1 }
 0x2ba   : > { %v7334_v19 = vsel %vm1625_vm3, %v3500_v5, %v3502_v52  ;;  %v7337_v42 = vsel %vm1625_vm3, %v3498_v13, %v3500_v5  ;;  %v3509_v26 = vrot.slane %v5430_v27, 7 }
 0x2bb   : > { %7960 = vst [vmem:[#allocation56_spill] sm:$0xff] %v7334_v19  ;;  %7961 = vst [vmem:[#allocation21_spill] sm:$0xff] %v7337_v42  ;;  %v7339_v33 = vpop.f32.mrf.mxu1 }
 0x2bc   : > { %7962 = vst [vmem:[#allocation62_spill] sm:$0xff] %v7339_v33  ;;  %v7802_v56 = vrot.slane %v7339_v33, 7 }
 0x2bd   : > { %v5431_v22 = vpop.f32.mrf.mxu1 }
 0x2be   : > { %v3511_v15 = vrot.slane %v5431_v22, 7  ;;  %v7357_v22 = vpop.f32.mrf.mxu0 }
 0x2bf   : > { %v2631_v51 = vpop.f32.mrf.mxu1 }
 0x2c0   : > { %v7347_v0 = vsel %vm1625_vm3, %v3509_v26, %v3511_v15  ;;  %v3507_v52 = vrot.slane %v2631_v51, 7  ;;  %v7362_v21 = vpop.f32.mrf.mxu0 }
 0x2c1   : > { %7963 = vst [vmem:[#allocation65_spill] sm:$0xff] %v7347_v0  ;;  %v5434_v19 = vpop.f32.mrf.mxu1 }
 0x2c2   : > { %v7350_v13 = vsel %vm1625_vm3, %v3507_v52, %v3509_v26  ;;  %v7355_v5 = vsel %vm1625_vm3, %v7802_v56, %v3507_v52  ;;  %v3517_v40 = vrot.slane %v5434_v19, 7  ;;  %v7375_v19 = vpop.f32.mrf.mxu0 }
 0x2c3   : > { %7964 = vst [vmem:[#allocation23_spill] sm:$0xff] %v7350_v13  ;;  %7965 = vst [vmem:[#allocation24_spill] sm:$0xff] %v7355_v5  ;;  %v2644_v27 = vpop.f32.mrf.mxu1 }
 0x2c4   : > { %v3513_v42 = vrot.slane %v2644_v27, 7  ;;  %7971 = vst [vmem:[#allocation26_spill] sm:$0xff] %v7375_v19  ;;  %v7377_v9 = vpop.f32.mrf.mxu0 }
 0x2c5   : > { %v5435_v60 = vpop.f32.mrf.mxu1  ;;  %7972 = vst [vmem:[#allocation28_spill] sm:$0xff] %v7377_v9 }
 0x2c6   : > { %v7360_v11 = vsel %vm1625_vm3, %v3511_v15, %v3513_v42  ;;  %v3519_v0 = vrot.slane %v5435_v60, 7 }
 0x2c7   : > { %7966 = vst [vmem:[#allocation29_spill] sm:$0xff] %v7360_v11  ;;  %v2647_v51 = vpop.f32.mrf.mxu1 }
 0x2c8   : > { %v7365_v26 = vsel %vm1625_vm3, %v3517_v40, %v3519_v0  ;;  %v3515_v13 = vrot.slane %v2647_v51, 7 }
 0x2c9   : > { %7967 = vst [vmem:[#allocation69_spill] sm:$0xff] %v7365_v26  ;;  %v5438_v33 = vpop.f32.mrf.mxu1 }
 0x2ca   : > { %v7368_v52 = vsel %vm1625_vm3, %v3515_v13, %v3517_v40  ;;  %v7371_v56 = vsel %vm1625_vm3, %v3513_v42, %v3515_v13  ;;  %v3524_v60 = vrot.slane %v5438_v33, 7 }
 0x2cb   : > { %7968 = vst [vmem:[#allocation22_spill] sm:$0xff] %v7368_v52  ;;  %7969 = vst [vmem:[#allocation68_spill] sm:$0xff] %v7371_v56  ;;  %v7373_v27 = vpop.f32.mrf.mxu1 }
 0x2cc   : > { %7970 = vst [vmem:[#allocation25_spill] sm:$0xff] %v7373_v27  ;;  %v7805_v0 = vrot.slane %v7373_v27, 7 }
 0x2cd   : > { %v5439_v15 = vpop.f32.mrf.mxu1 }
 0x2ce   : > { %v3526_v11 = vrot.slane %v5439_v15, 7  ;;  %v7391_v15 = vpop.f32.mrf.mxu0 }
 0x2cf   : > { %v2663_v5 = vpop.f32.mrf.mxu1  ;;  %7976 = vst [vmem:[#allocation33_spill] sm:$0xff] %v7391_v15 }
 0x2d0   : > { %v7381_v51 = vsel %vm1625_vm3, %v3524_v60, %v3526_v11  ;;  %v3522_v40 = vrot.slane %v2663_v5, 7  ;;  %v7396_v61 = vpop.f32.mrf.mxu0 }
 0x2d1   : > { %7973 = vst [vmem:[#allocation27_spill] sm:$0xff] %v7381_v51  ;;  %v5442_v52 = vpop.f32.mrf.mxu1  ;;  %7978 = vst [vmem:[#allocation31_spill] sm:$0xff] %v7396_v61 }
 0x2d2   : > { %v7384_v42 = vsel %vm1625_vm3, %v3522_v40, %v3524_v60  ;;  %v7389_v13 = vsel %vm1625_vm3, %v7805_v0, %v3522_v40  ;;  %v3532_v9 = vrot.slane %v5442_v52, 7  ;;  %v7409_v52 = vpop.f32.mrf.mxu0 }
 0x2d3   : > { %7974 = vst [vmem:[#allocation30_spill] sm:$0xff] %v7384_v42  ;;  %7975 = vst [vmem:[#allocation32_spill] sm:$0xff] %v7389_v13  ;;  %v2676_v33 = vpop.f32.mrf.mxu1 }
 0x2d4   : > { %v3528_v56 = vrot.slane %v2676_v33, 7  ;;  %7983 = vst [vmem:[#allocation41_spill] sm:$0xff] %v7409_v52  ;;  %v7411_v15 = vpop.f32.mrf.mxu0 }
 0x2d5   : > { %v5443_v26 = vpop.f32.mrf.mxu1  ;;  %7984 = vst [vmem:[#allocation44_spill] sm:$0xff] %v7411_v15 }
 0x2d6   : > { %v7394_v19 = vsel %vm1625_vm3, %v3526_v11, %v3528_v56  ;;  %v3534_v51 = vrot.slane %v5443_v26, 7 }
 0x2d7   : > { %7977 = vst [vmem:[#allocation40_spill] sm:$0xff] %v7394_v19  ;;  %v2679_v5 = vpop.f32.mrf.mxu1 }
 0x2d8   : > { %v7399_v60 = vsel %vm1625_vm3, %v3532_v9, %v3534_v51  ;;  %v3530_v42 = vrot.slane %v2679_v5, 7 }
 0x2d9   : > { %7979 = vst [vmem:[#allocation34_spill] sm:$0xff] %v7399_v60  ;;  %v5446_v27 = vpop.f32.mrf.mxu1 }
 0x2da   : > { %v7402_v40 = vsel %vm1625_vm3, %v3530_v42, %v3532_v9  ;;  %v7405_v0 = vsel %vm1625_vm3, %v3528_v56, %v3530_v42  ;;  %v3539_v26 = vrot.slane %v5446_v27, 7 }
 0x2db   : > { %7980 = vst [vmem:[#allocation35_spill] sm:$0xff] %v7402_v40  ;;  %7981 = vst [vmem:[#allocation38_spill] sm:$0xff] %v7405_v0  ;;  %v7407_v33 = vpop.f32.mrf.mxu1 }
 0x2dc   : > { %7982 = vst [vmem:[#allocation37_spill] sm:$0xff] %v7407_v33  ;;  %v7807_v51 = vrot.slane %v7407_v33, 7 }
 0x2dd   : > { %v5447_v11 = vpop.f32.mrf.mxu1 }
 0x2de   : > { %v3541_v19 = vrot.slane %v5447_v11, 7  ;;  %v7425_v11 = vpop.f32.mrf.mxu0 }
 0x2df   : > { %v2695_v13 = vpop.f32.mrf.mxu1 }
 0x2e0   : > { %v7415_v5 = vsel %vm1625_vm3, %v3539_v26, %v3541_v19  ;;  %v3537_v9 = vrot.slane %v2695_v13, 7  ;;  %v7430_v61 = vpop.f32.mrf.mxu0 }
 0x2e1   : > { %7985 = vst [vmem:[#allocation46_spill] sm:$0xff] %v7415_v5  ;;  %v5450_v40 = vpop.f32.mrf.mxu1  ;;  %7989 = vst [vmem:[#allocation50_spill] sm:$0xff] %v7430_v61 }
 0x2e2   : > { %v7418_v56 = vsel %vm1625_vm3, %v3537_v9, %v3539_v26  ;;  %v7423_v42 = vsel %vm1625_vm3, %v7807_v51, %v3537_v9  ;;  %v3547_v15 = vrot.slane %v5450_v40, 7  ;;  %v7441_v40 = vpop.f32.mrf.mxu0 }
 0x2e3   : > { %7986 = vst [vmem:[#allocation42_spill] sm:$0xff] %v7418_v56  ;;  %7987 = vst [vmem:[#allocation53_spill] sm:$0xff] %v7423_v42  ;;  %v2708_v27 = vpop.f32.mrf.mxu1 }
 0x2e4   : > { %v3543_v0 = vrot.slane %v2708_v27, 7  ;;  %7993 = vst [vmem:[#allocation57_spill] sm:$0xff] %v7441_v40 }
 0x2e5   : > { %v5451_v60 = vpop.f32.mrf.mxu1 }
 0x2e6   : > { %v7428_v52 = vsel %vm1625_vm3, %v3541_v19, %v3543_v0  ;;  %v3549_v5 = vrot.slane %v5451_v60, 7  ;;  %v7994_v60 = vrot.slane %v7143_v25, 7 }
 0x2e7   : > { %7988 = vst [vmem:[#allocation48_spill] sm:$0xff] %v7428_v52  ;;  %v2711_v13 = vpop.f32.mrf.mxu1 }
 0x2e8   : > { %v7433_v26 = vsel %vm1625_vm3, %v3547_v15, %v3549_v5  ;;  %v3545_v56 = vrot.slane %v2711_v13, 7  ;;  %v3615_v52 = vsel %vm1625_vm3, 0.0, %v7994_v60  ;;  %v3881_v5 = vadd.f32 %v7145_v18, %v7154_v2 }
 0x2e9   : > { %7990 = vst [vmem:[#allocation47_spill] sm:$0xff] %v7433_v26  ;;  %v5534_v33 = vpop.f32.mrf.mxu1  ;;  %v7448_v26 = vpop.f32.mrf.mxu0 }
 0x2ea   : > { %v7436_v9 = vsel %vm1625_vm3, %v3545_v56, %v3547_v15  ;;  %v7439_v51 = vsel %vm1625_vm3, %v3543_v0, %v3545_v56  ;;  %v3690_v42 = vrot.slane %v5534_v33, 1  ;;  %7995 = vst [vmem:[#allocation59_spill] sm:$0xff] %v7448_v26 }
 0x2eb   : > { %7991 = vst [vmem:[#allocation51_spill] sm:$0xff] %v7436_v9  ;;  %7992 = vst [vmem:[#allocation54_spill] sm:$0xff] %v7439_v51  ;;  %v3112_v27 = vpop.f32.mrf.mxu1  ;;  %v3879_v51 = vadd.f32 %v3615_v52, %v7151_v39  ;;  %v3880_v9 = vadd.f32 %v7159_v62, %v7173_v29  ;;  %v7456_v26 = vpop.f32.mrf.mxu0 }
 0x2ec   : > { %v3687_v15 = vrot.slane %v3112_v27, 1 }
 0x2ed   : > { %v5535_v19 = vpop.f32.mrf.mxu1 }
 0x2ee   : > { %v3692_v61 = vrot.slane %v5535_v19, 1 }
 0x2ef   : > { %v3115_v13 = vpop.f32.mrf.mxu1 }
 0x2f0   : > { %v3693_v0 = vsel %vm634_vm1, %v3690_v42, %v3692_v61  ;;  %v3688_v56 = vrot.slane %v3115_v13, 1  ;;  %v3882_v13 = vadd.f32 %v7165_v28, %v7149_v32 }
 0x2f1   : > { %v3945_v25 = vadd.f32 %v3881_v5, %v3693_v0  ;;  %v5538_v40 = vpop.f32.mrf.mxu1 }
 0x2f2   : > { %v3689_v33 = vsel %vm634_vm1, %v3687_v15, %v3688_v56  ;;  %v3691_v19 = vsel %vm634_vm1, %v3688_v56, %v3690_v42  ;;  %v3698_v62 = vrot.slane %v5538_v40, 1  ;;  %v3886_v42 = vadd.f32 %v7207_v4, %v7171_v1  ;;  %v7465_v15 = vpop.f32.mrf.mxu0 }
 0x2f3   : > { %4009 = vst [vmem:[#allocation2 + $0x10] sm:$0xff] %v3945_v25  ;;  %v3943_v18 = vadd.f32 %v3879_v51, %v3689_v33  ;;  %v3944_v2 = vadd.f32 %v3880_v9, %v3691_v19  ;;  %v3128_v60 = vpop.f32.mrf.mxu1  ;;  %v3885_v51 = vadd.f32 %v7187_v6, %v7176_v8  ;;  %v3883_v40 = vadd.f32 %v7168_v41, %v7189_v58 }
 0x2f4   : > { %v3694_v27 = vrot.slane %v3128_v60, 1  ;;  %v7996_v58 = vrot.slane %v7185_v54, 7 }
 0x2f5   : > { %4007 = vst [vmem:[#allocation2] sm:$0xff] %v3943_v18  ;;  %4008 = vst [vmem:[#allocation2 + $0x8] sm:$0xff] %v3944_v2  ;;  %v5539_v39 = vpop.f32.mrf.mxu1  ;;  %v7475_v18 = vpop.f32.mrf.mxu0 }
 0x2f6   : > { %v3695_v29 = vsel %vm634_vm1, %v3692_v61, %v3694_v27  ;;  %v3700_v52 = vrot.slane %v5539_v39, 1  ;;  %v3884_v61 = vadd.f32 %v7179_v12, %v7212_v16  ;;  %v3616_v16 = vsel %vm1625_vm3, 0.0, %v7996_v58 }
 0x2f7   : > { %v3946_v9 = vadd.f32 %v3882_v13, %v3695_v29  ;;  %v3131_v5 = vpop.f32.mrf.mxu1  ;;  %v3889_v39 = vadd.f32 %v7229_v44, %v7198_v63 }
 0x2f8   : > { %v3701_v0 = vsel %vm634_vm1, %v3698_v62, %v3700_v52  ;;  %v3871_v32 = vsel %vm634_vm1, %v3700_v52, 0.0  ;;  %v3696_v28 = vrot.slane %v3131_v5, 1  ;;  %v7484_v52 = vpop.f32.mrf.mxu0 }
 0x2f9   : > { %4010 = vst [vmem:[#allocation2 + $0x18] sm:$0xff] %v3946_v9  ;;  %v3949_v1 = vadd.f32 %v3885_v51, %v3701_v0  ;;  %v3950_v4 = vadd.f32 %v3886_v42, %v3871_v32  ;;  %v5542_v56 = vpop.f32.mrf.mxu1  ;;  %v3887_v0 = vadd.f32 %v3616_v16, %v7231_v31  ;;  %v3888_v32 = vadd.f32 %v7203_v46, %v7254_v43 }
 0x2fa   : > { %v3697_v8 = vsel %vm634_vm1, %v3694_v27, %v3696_v28  ;;  %v3699_v6 = vsel %vm634_vm1, %v3696_v28, %v3698_v62  ;;  %v3705_v27 = vrot.slane %v5542_v56, 1  ;;  %v7482_v62 = vld [vmem:[#allocation8] ss:$0 sm:$0xff]  ;;  %v7495_v46 = vpop.f32.mrf.mxu0 }
 0x2fb   : > { %4013 = vst [vmem:[#allocation2 + $0x30] sm:$0xff] %v3949_v1  ;;  %4014 = vst [vmem:[#allocation2 + $0x38] sm:$0xff] %v3950_v4  ;;  %v3947_v25 = vadd.f32 %v3883_v40, %v3697_v8  ;;  %v3948_v33 = vadd.f32 %v3884_v61, %v3699_v6  ;;  %v3144_v19 = vpop.f32.mrf.mxu1 }
 0x2fc   : > { %v4071_v2 = vld [vmem:[#allocation2] ss:$2 sm:$0xff]  ;;  %v4135_v41 = vld [vmem:[#allocation2 + $0x1] ss:$2 sm:$0xff]  ;;  %v3702_v9 = vrot.slane %v3144_v19, 1 }
 0x2fd   : > { %4011 = vst [vmem:[#allocation2 + $0x20] sm:$0xff] %v3947_v25  ;;  %4012 = vst [vmem:[#allocation2 + $0x28] sm:$0xff] %v3948_v33  ;;  %v5543_v12 = vpop.f32.mrf.mxu1  ;;  %v4198_v60 = vmax.f32 %v4071_v2, %v4135_v41  ;;  %v3890_v41 = vadd.f32 %v7249_v34, %v7193_v38 }
 0x2fe   : > { %v3707_v13 = vrot.slane %v5543_v12, 1 }
 0x2ff   : > { %v3147_v29 = vpop.f32.mrf.mxu1  ;;  %v4237_v44 = vadd.f32 %v7482_v62, %v4198_v60  ;;  %v3894_v60 = vadd.f32 %v7289_v36, %v7215_v37 }
 0x300   : > { %v4073_v42 = vld [vmem:[#allocation2 + $0x10] ss:$2 sm:$0xff]  ;;  %v4137_v51 = vld [vmem:[#allocation2 + $0x11] ss:$2 sm:$0xff]  ;;  %v3708_v5 = vsel %vm634_vm1, %v3705_v27, %v3707_v13  ;;  %v3703_v54 = vrot.slane %v3147_v29, 1 }
 0x301   : > { %v4199_v28 = vmax.f32 %v4073_v42, %v4137_v51  ;;  %v3953_v40 = vadd.f32 %v3889_v39, %v3708_v5  ;;  %v5546_v63 = vpop.f32.mrf.mxu1  ;;  %v3893_v42 = vadd.f32 %v7271_v45, %v7220_v53  ;;  %v3891_v5 = vadd.f32 %v7210_v30, %v7273_v55 }
 0x302   : > { %v4077_v61 = vld [vmem:[#allocation2 + $0x30] ss:$2 sm:$0xff]  ;;  %v4141_v1 = vld [vmem:[#allocation2 + $0x31] ss:$2 sm:$0xff]  ;;  %v3704_v4 = vsel %vm634_vm1, %v3702_v9, %v3703_v54  ;;  %v3706_v56 = vsel %vm634_vm1, %v3703_v54, %v3705_v27  ;;  %v3713_v27 = vrot.slane %v5546_v63, 1  ;;  %v7514_v54 = vpop.f32.mrf.mxu0  ;;  %v3892_v53 = vadd.f32 %v7223_v10, %v7294_v35 }
 0x303   : > { %v4238_v8 = vadd.f32 %v7482_v62, %v4199_v28  ;;  %v4201_v6 = vmax.f32 %v4077_v61, %v4141_v1  ;;  %4017 = vst [vmem:[#allocation2 + $0x50] sm:$0xff] %v3953_v40  ;;  %v3951_v31 = vadd.f32 %v3887_v0, %v3704_v4  ;;  %v3952_v25 = vadd.f32 %v3888_v32, %v3706_v56  ;;  %v3160_v33 = vpop.f32.mrf.mxu1 }
 0x304   : > { %v4075_v43 = vld [vmem:[#allocation2 + $0x20] ss:$2 sm:$0xff]  ;;  %v4139_v19 = vld [vmem:[#allocation2 + $0x21] ss:$2 sm:$0xff]  ;;  %v3709_v2 = vrot.slane %v3160_v33, 1  ;;  %v7523_v61 = vpop.f32.mrf.mxu0  ;;  %v7997_v35 = vrot.slane %v7227_v50, 7  ;;  %v3896_v50 = vadd.f32 %v7245_v23, %v7328_v59 }
 0x305   : > { %v4865_v12 = vpack.c.bf16 %v4238_v8, %v4237_v44  ;;  %v4200_v58 = vmax.f32 %v4075_v43, %v4139_v19  ;;  %4015 = vst [vmem:[#allocation2 + $0x40] sm:$0xff] %v3951_v31  ;;  %4016 = vst [vmem:[#allocation2 + $0x48] sm:$0xff] %v3952_v25  ;;  %v5547_v16 = vpop.f32.mrf.mxu1  ;;  %v4240_v51 = vadd.f32 %v7482_v62, %v4201_v6 }
 0x306   : > { %v3710_v39 = vsel %vm634_vm1, %v3707_v13, %v3709_v2  ;;  %v3715_v29 = vrot.slane %v5547_v16, 1  ;;  %v3617_v56 = vsel %vm1625_vm3, 0.0, %v7997_v35  ;;  %v3897_v25 = vadd.f32 %v7307_v24, %v7240_v20  ;;  %v7530_v43 = vpop.f32.mrf.mxu0 }
 0x307   : > { %4866 = vst [vmem:[%s7500_s6] sm:$0xff] %v4865_v12   ;;  %v4239_v38 = vadd.f32 %v7482_v62, %v4200_v58  ;;  %v3954_v34 = vadd.f32 %v3890_v41, %v3710_v39  ;;  %v3163_v9 = vpop.f32.mrf.mxu1  ;;  %v3895_v16 = vadd.f32 %v3617_v56, %v7309_v48 }
 0x308   : > { %v3716_v37 = vsel %vm634_vm1, %v3713_v27, %v3715_v29  ;;  %v3872_v36 = vsel %vm634_vm1, %v3715_v29, 0.0  ;;  %v3711_v13 = vrot.slane %v3163_v9, 1  ;;  %v7540_v23 = vpop.f32.mrf.mxu0 }
 0x309   : > { %v4870_v45 = vpack.c.bf16 %v4240_v51, %v4239_v38  ;;  %4018 = vst [vmem:[#allocation2 + $0x58] sm:$0xff] %v3954_v34  ;;  %v3957_v0 = vadd.f32 %v3893_v42, %v3716_v37  ;;  %v3958_v32 = vadd.f32 %v3894_v60, %v3872_v36  ;;  %v5550_v28 = vpop.f32.mrf.mxu1 }
 0x30a   : > { %v3712_v40 = vsel %vm634_vm1, %v3709_v2, %v3711_v13  ;;  %v3714_v63 = vsel %vm634_vm1, %v3711_v13, %v3713_v27  ;;  %v3720_v6 = vrot.slane %v5550_v28, 1  ;;  %v3898_v13 = vadd.f32 %v7323_v47, %v7235_v3 }
 0x30b   : > { %4942 = vst [vmem:[%s7500_s6 + $0x8] sm:$0xff] %v4870_v45   ;;  %4021 = vst [vmem:[#allocation2 + $0x70] sm:$0xff] %v3957_v0  ;;  %v3955_v30 = vadd.f32 %v3891_v5, %v3712_v40  ;;  %v3956_v55 = vadd.f32 %v3892_v53, %v3714_v63  ;;  %v3176_v44 = vpop.f32.mrf.mxu1 }
 0x30c   : > { %4022 = vst [vmem:[#allocation2 + $0x78] sm:$0xff] %v3958_v32  ;;  %v4079_v1 = vld [vmem:[#allocation2 + $0x40] ss:$2 sm:$0xff]  ;;  %v4143_v4 = vld [vmem:[#allocation2 + $0x41] ss:$2 sm:$0xff]  ;;  %v3717_v41 = vrot.slane %v3176_v44, 1  ;;  %v3902_v32 = vadd.f32 %v7357_v22, %v7257_v14 }
 0x30d   : > { %4019 = vst [vmem:[#allocation2 + $0x60] sm:$0xff] %v3955_v30  ;;  %4020 = vst [vmem:[#allocation2 + $0x68] sm:$0xff] %v3956_v55  ;;  %v5551_v10 = vpop.f32.mrf.mxu1  ;;  %v4202_v8 = vmax.f32 %v4079_v1, %v4143_v4  ;;  %v3901_v30 = vadd.f32 %v7341_v57, %v7262_v17  ;;  %v3899_v1 = vadd.f32 %v7252_v49, %v7343_v7  ;;  %v7554_v4 = vpop.f32.mrf.mxu0  ;;  %v7998_v17 = vld [vmem:[#allocation36_spill] sm:$0xff] }
 0x30e   : > { %v3722_v31 = vrot.slane %v5551_v10, 1  ;;  %v3900_v57 = vadd.f32 %v7998_v17, %v7362_v21 }
 0x30f   : > { %v3179_v33 = vpop.f32.mrf.mxu1  ;;  %v4241_v29 = vadd.f32 %v7482_v62, %v4202_v8 }
 0x310   : > { %v4081_v19 = vld [vmem:[#allocation2 + $0x50] ss:$2 sm:$0xff]  ;;  %v4145_v2 = vld [vmem:[#allocation2 + $0x51] ss:$2 sm:$0xff]  ;;  %v3723_v12 = vsel %vm634_vm1, %v3720_v6, %v3722_v31  ;;  %v3718_v58 = vrot.slane %v3179_v33, 1 }
 0x311   : > { %v4203_v60 = vmax.f32 %v4081_v19, %v4145_v2  ;;  %v3961_v27 = vadd.f32 %v3897_v25, %v3723_v12  ;;  %v5554_v39 = vpop.f32.mrf.mxu1  ;;  %v7563_v19 = vpop.f32.mrf.mxu0  ;;  %v7999_v12 = vld [vmem:[#allocation39_spill] sm:$0xff] }
 0x312   : > { %v3719_v42 = vsel %vm634_vm1, %v3717_v41, %v3718_v58  ;;  %v3721_v51 = vsel %vm634_vm1, %v3718_v58, %v3720_v6  ;;  %v3728_v28 = vrot.slane %v5554_v39, 1  ;;  %v8000_v58 = vrot.slane %v7999_v12, 7  ;;  %v8001_v39 = vld [vmem:[#allocation15_spill] sm:$0xff] }
 0x313   : > { %v4085_v20 = vld [vmem:[#allocation2 + $0x70] ss:$2 sm:$0xff]  ;;  %v4149_v24 = vld [vmem:[#allocation2 + $0x71] ss:$2 sm:$0xff]  ;;  %v4242_v38 = vadd.f32 %v7482_v62, %v4203_v60  ;;  %4025 = vst [vmem:[#allocation2 + $0x90] sm:$0xff] %v3961_v27  ;;  %v3959_v9 = vadd.f32 %v3895_v16, %v3719_v42  ;;  %v3960_v48 = vadd.f32 %v3896_v50, %v3721_v51  ;;  %v3192_v5 = vpop.f32.mrf.mxu1  ;;  %v7570_v42 = vpop.f32.mrf.mxu0 }
 0x314   : > { %v4205_v34 = vmax.f32 %v4085_v20, %v4149_v24  ;;  %v4083_v59 = vld [vmem:[#allocation2 + $0x60] ss:$2 sm:$0xff]  ;;  %v4147_v37 = vld [vmem:[#allocation2 + $0x61] ss:$2 sm:$0xff]  ;;  %v3724_v36 = vrot.slane %v3192_v5, 1  ;;  %v3618_v16 = vsel %vm1625_vm3, 0.0, %v8000_v58 }
 0x315   : > { %v4875_v53 = vpack.c.bf16 %v4242_v38, %v4241_v29  ;;  %v4204_v45 = vmax.f32 %v4083_v59, %v4147_v37  ;;  %4023 = vst [vmem:[#allocation2 + $0x80] sm:$0xff] %v3959_v9  ;;  %4024 = vst [vmem:[#allocation2 + $0x88] sm:$0xff] %v3960_v48  ;;  %v5555_v0 = vpop.f32.mrf.mxu1  ;;  %v8002_v29 = vld [vmem:[#allocation26_spill] sm:$0xff]  ;;  %v8003_v5 = vld [vmem:[#allocation28_spill] sm:$0xff] }
 0x316   : > { %v3725_v40 = vsel %vm634_vm1, %v3722_v31, %v3724_v36  ;;  %v3730_v63 = vrot.slane %v5555_v0, 1  ;;  %v4244_v55 = vadd.f32 %v7482_v62, %v4205_v34  ;;  %v3905_v20 = vadd.f32 %v8002_v29, %v8001_v39  ;;  %v8004_v37 = vld [vmem:[#allocation31_spill] sm:$0xff]  ;;  %v8011_v39 = vld [vmem:[#allocation44_spill] sm:$0xff]  ;;  %v8012_v29 = vld [vmem:[#allocation45_spill] sm:$0xff] }
 0x317   : > { %4943 = vst [vmem:[%s7500_s6 + $0x10] sm:$0xff] %v4875_v53   ;;  %v4243_v3 = vadd.f32 %v7482_v62, %v4204_v45  ;;  %v3962_v47 = vadd.f32 %v3898_v13, %v3725_v40  ;;  %v3195_v44 = vpop.f32.mrf.mxu1  ;;  %v3903_v59 = vadd.f32 %v3618_v16, %v8003_v5 }
 0x318   : > { %v3731_v14 = vsel %vm634_vm1, %v3728_v28, %v3730_v63  ;;  %v3873_v22 = vsel %vm634_vm1, %v3730_v63, 0.0  ;;  %v3726_v10 = vrot.slane %v3195_v44, 1 }
 0x319   : > { %v4880_v35 = vpack.c.bf16 %v4244_v55, %v4243_v3  ;;  %4026 = vst [vmem:[#allocation2 + $0x98] sm:$0xff] %v3962_v47  ;;  %v3965_v56 = vadd.f32 %v3901_v30, %v3731_v14  ;;  %v3966_v8 = vadd.f32 %v3902_v32, %v3873_v22  ;;  %v5558_v6 = vpop.f32.mrf.mxu1  ;;  %v7580_v14 = vpop.f32.mrf.mxu0 }
 0x31a   : > { %v3727_v31 = vsel %vm634_vm1, %v3724_v36, %v3726_v10  ;;  %v3729_v25 = vsel %vm634_vm1, %v3726_v10, %v3728_v28  ;;  %v3735_v60 = vrot.slane %v5558_v6, 1  ;;  %v8005_v36 = vld [vmem:[#allocation20_spill] sm:$0xff] }
 0x31b   : > { %4944 = vst [vmem:[%s7500_s6 + $0x18] sm:$0xff] %v4880_v35   ;;  %4029 = vst [vmem:[#allocation2 + $0xb0] sm:$0xff] %v3965_v56  ;;  %v3963_v49 = vadd.f32 %v3899_v1, %v3727_v31  ;;  %v3964_v7 = vadd.f32 %v3900_v57, %v3729_v25  ;;  %v3208_v33 = vpop.f32.mrf.mxu1  ;;  %v3904_v13 = vadd.f32 %v8005_v36, %v8004_v37  ;;  %v8006_v57 = vld [vmem:[#allocation14_spill] sm:$0xff]  ;;  %v8007_v35 = vld [vmem:[#allocation33_spill] sm:$0xff] }
 0x31c   : > { %4030 = vst [vmem:[#allocation2 + $0xb8] sm:$0xff] %v3966_v8  ;;  %v4087_v2 = vld [vmem:[#allocation2 + $0x80] ss:$2 sm:$0xff]  ;;  %v4151_v41 = vld [vmem:[#allocation2 + $0x81] ss:$2 sm:$0xff]  ;;  %v3732_v34 = vrot.slane %v3208_v33, 1  ;;  %v3906_v56 = vadd.f32 %v8007_v35, %v8006_v57 }
 0x31d   : > { %4027 = vst [vmem:[#allocation2 + $0xa0] sm:$0xff] %v3963_v49  ;;  %4028 = vst [vmem:[#allocation2 + $0xa8] sm:$0xff] %v3964_v7  ;;  %v5559_v21 = vpop.f32.mrf.mxu1  ;;  %v4206_v50 = vmax.f32 %v4087_v2, %v4151_v41  ;;  %v8008_v25 = vld [vmem:[#allocation13_spill] sm:$0xff]  ;;  %v8009_v41 = vld [vmem:[#allocation52_spill] sm:$0xff] }
 0x31e   : > { %v3737_v27 = vrot.slane %v5559_v21, 1  ;;  %v3910_v49 = vadd.f32 %v7425_v11, %v8008_v25  ;;  %v8010_v21 = vld [vmem:[#allocation41_spill] sm:$0xff] }
 0x31f   : > { %v3211_v24 = vpop.f32.mrf.mxu1  ;;  %v4245_v32 = vadd.f32 %v7482_v62, %v4206_v50  ;;  %v3909_v12 = vadd.f32 %v8010_v21, %v8009_v41 }
 0x320   : > { %v4089_v51 = vld [vmem:[#allocation2 + $0x90] ss:$2 sm:$0xff]  ;;  %v4153_v38 = vld [vmem:[#allocation2 + $0x91] ss:$2 sm:$0xff]  ;;  %v3738_v9 = vsel %vm634_vm1, %v3735_v60, %v3737_v27  ;;  %v3733_v48 = vrot.slane %v3211_v24, 1  ;;  %v7594_v24 = vpop.f32.mrf.mxu0 }
 0x321   : > { %v4207_v53 = vmax.f32 %v4089_v51, %v4153_v38  ;;  %v3969_v45 = vadd.f32 %v3905_v20, %v3738_v9  ;;  %v5562_v0 = vpop.f32.mrf.mxu1  ;;  %v3907_v20 = vadd.f32 %v8012_v29, %v8011_v39  ;;  %v8013_v38 = vld [vmem:[#allocation50_spill] sm:$0xff] }
 0x322   : > { %v3734_v63 = vsel %vm634_vm1, %v3732_v34, %v3733_v48  ;;  %v3736_v30 = vsel %vm634_vm1, %v3733_v48, %v3735_v60  ;;  %v3743_v7 = vrot.slane %v5562_v0, 1  ;;  %v8014_v34 = vld [vmem:[#allocation43_spill] sm:$0xff] }
 0x323   : > { %v4093_v28 = vld [vmem:[#allocation2 + $0xb0] ss:$2 sm:$0xff]  ;;  %v4157_v40 = vld [vmem:[#allocation2 + $0xb1] ss:$2 sm:$0xff]  ;;  %v4246_v55 = vadd.f32 %v7482_v62, %v4207_v53  ;;  %4033 = vst [vmem:[#allocation2 + $0xd0] sm:$0xff] %v3969_v45  ;;  %v3967_v47 = vadd.f32 %v3903_v59, %v3734_v63  ;;  %v3968_v44 = vadd.f32 %v3904_v13, %v3736_v30  ;;  %v3224_v1 = vpop.f32.mrf.mxu1  ;;  %v3908_v9 = vadd.f32 %v8014_v34, %v8013_v38  ;;  %v8015_v30 = vld [vmem:[#allocation16_spill] sm:$0xff] }
 0x324   : > { %v4209_v3 = vmax.f32 %v4093_v28, %v4157_v40  ;;  %v4091_v22 = vld [vmem:[#allocation2 + $0xa0] ss:$2 sm:$0xff]  ;;  %v4155_v10 = vld [vmem:[#allocation2 + $0xa1] ss:$2 sm:$0xff]  ;;  %v3739_v17 = vrot.slane %v3224_v1, 1 }
 0x325   : > { %v4885_v8 = vpack.c.bf16 %v4246_v55, %v4245_v32  ;;  %v4208_v6 = vmax.f32 %v4091_v22, %v4155_v10  ;;  %4031 = vst [vmem:[#allocation2 + $0xc0] sm:$0xff] %v3967_v47  ;;  %4032 = vst [vmem:[#allocation2 + $0xc8] sm:$0xff] %v3968_v44  ;;  %v5563_v31 = vpop.f32.mrf.mxu1  ;;  %v7603_v32 = vpop.f32.mrf.mxu0  ;;  %v8016_v55 = vrot.slane %v8015_v30, 7  ;;  %v8017_v22 = vld [vmem:[#allocation17_spill] sm:$0xff] }
 0x326   : > { %v3740_v33 = vsel %vm634_vm1, %v3737_v27, %v3739_v17  ;;  %v3745_v2 = vrot.slane %v5563_v31, 1  ;;  %v4248_v58 = vadd.f32 %v7482_v62, %v4209_v3  ;;  %v8018_v10 = vld [vmem:[#allocation57_spill] sm:$0xff] }
 0x327   : > { %4945 = vst [vmem:[%s7500_s6 + $0x20] sm:$0xff] %v4885_v8   ;;  %v4247_v16 = vadd.f32 %v7482_v62, %v4208_v6  ;;  %v3970_v50 = vadd.f32 %v3906_v56, %v3740_v33  ;;  %v3227_v60 = vpop.f32.mrf.mxu1  ;;  %v3619_v3 = vsel %vm1625_vm3, 0.0, %v8016_v55  ;;  %v7610_v35 = vpop.f32.mrf.mxu0  ;;  %v8020_v33 = vld [vmem:[#allocation58_spill] sm:$0xff] }
 0x328   : > { %v3746_v11 = vsel %vm634_vm1, %v3743_v7, %v3745_v2  ;;  %v3874_v27 = vsel %vm634_vm1, %v3745_v2, 0.0  ;;  %v3741_v51 = vrot.slane %v3227_v60, 1  ;;  %v3912_v2 = vadd.f32 %v8020_v33, %v7465_v15 }
 0x329   : > { %v4890_v48 = vpack.c.bf16 %v4248_v58, %v4247_v16  ;;  %4034 = vst [vmem:[#allocation2 + $0xd8] sm:$0xff] %v3970_v50  ;;  %v3973_v5 = vadd.f32 %v3909_v12, %v3746_v11  ;;  %v3974_v59 = vadd.f32 %v3910_v49, %v3874_v27  ;;  %v5566_v37 = vpop.f32.mrf.mxu1  ;;  %v8019_v49 = vld [vmem:[#allocation59_spill] sm:$0xff]  ;;  %v7620_v15 = vpop.f32.mrf.mxu0 }
 0x32a   : > { %v3742_v36 = vsel %vm634_vm1, %v3739_v17, %v3741_v51  ;;  %v3744_v13 = vsel %vm634_vm1, %v3741_v51, %v3743_v7  ;;  %v3750_v44 = vrot.slane %v5566_v37, 1  ;;  %v3913_v17 = vadd.f32 %v8018_v10, %v8017_v22 }
 0x32b   : > { %4946 = vst [vmem:[%s7500_s6 + $0x28] sm:$0xff] %v4890_v48   ;;  %4037 = vst [vmem:[#allocation2 + $0xf0] sm:$0xff] %v3973_v5  ;;  %v3971_v53 = vadd.f32 %v3907_v20, %v3742_v36  ;;  %v3972_v45 = vadd.f32 %v3908_v9, %v3744_v13  ;;  %v3240_v0 = vpop.f32.mrf.mxu1  ;;  %v3911_v7 = vadd.f32 %v3619_v3, %v8019_v49  ;;  %v8021_v48 = vld [vmem:[#allocation49_spill] sm:$0xff]  ;;  %v8022_v13 = vld [vmem:[#allocation18_spill] sm:$0xff]  ;;  %v7634_v22 = vpop.f32.mrf.mxu0 }
 0x32c   : > { %4038 = vst [vmem:[#allocation2 + $0xf8] sm:$0xff] %v3974_v59  ;;  %v4095_v28 = vld [vmem:[#allocation2 + $0xc0] ss:$2 sm:$0xff]  ;;  %v4159_v40 = vld [vmem:[#allocation2 + $0xc1] ss:$2 sm:$0xff]  ;;  %v3747_v6 = vrot.slane %v3240_v0, 1  ;;  %v3914_v5 = vadd.f32 %v7456_v26, %v8021_v48 }
 0x32d   : > { %4035 = vst [vmem:[#allocation2 + $0xe0] sm:$0xff] %v3971_v53  ;;  %4036 = vst [vmem:[#allocation2 + $0xe8] sm:$0xff] %v3972_v45  ;;  %v5567_v63 = vpop.f32.mrf.mxu1  ;;  %v4210_v47 = vmax.f32 %v4095_v28, %v4159_v40  ;;  %v3918_v53 = vadd.f32 %v7495_v46, %v8022_v13  ;;  %v8023_v40 = vld [vmem:[#allocation56_spill] sm:$0xff]  ;;  %v7643_v33 = vpop.f32.mrf.mxu0 }
 0x32e   : > { %v3752_v1 = vrot.slane %v5567_v63, 1  ;;  %v3917_v63 = vadd.f32 %v7475_v18, %v8023_v40  ;;  %v8025_v18 = vld [vmem:[#allocation21_spill] sm:$0xff] }
 0x32f   : > { %v3243_v57 = vpop.f32.mrf.mxu1  ;;  %v4249_v58 = vadd.f32 %v7482_v62, %v4210_v47  ;;  %v8024_v47 = vld [vmem:[#allocation19_spill] sm:$0xff] }
 0x330   : > { %v4097_v56 = vld [vmem:[#allocation2 + $0xd0] ss:$2 sm:$0xff]  ;;  %v4161_v8 = vld [vmem:[#allocation2 + $0xd1] ss:$2 sm:$0xff]  ;;  %v3753_v31 = vsel %vm634_vm1, %v3750_v44, %v3752_v1  ;;  %v3748_v25 = vrot.slane %v3243_v57, 1 }
 0x331   : > { %v4211_v41 = vmax.f32 %v4097_v56, %v4161_v8  ;;  %v3977_v21 = vadd.f32 %v3913_v17, %v3753_v31  ;;  %v5570_v12 = vpop.f32.mrf.mxu1  ;;  %v3916_v17 = vadd.f32 %v8025_v18, %v7514_v54 }
 0x332   : > { %v3749_v60 = vsel %vm634_vm1, %v3747_v6, %v3748_v25  ;;  %v3751_v39 = vsel %vm634_vm1, %v3748_v25, %v3750_v44  ;;  %v3758_v45 = vrot.slane %v5570_v12, 1  ;;  %v3915_v44 = vadd.f32 %v8024_v47, %v7484_v52 }
 0x333   : > { %v4101_v16 = vld [vmem:[#allocation2 + $0xf0] ss:$2 sm:$0xff]  ;;  %v4165_v50 = vld [vmem:[#allocation2 + $0xf1] ss:$2 sm:$0xff]  ;;  %v4250_v29 = vadd.f32 %v7482_v62, %v4211_v41  ;;  %4041 = vst [vmem:[#allocation2 + $0x110] sm:$0xff] %v3977_v21  ;;  %v3975_v11 = vadd.f32 %v3911_v7, %v3749_v60  ;;  %v3976_v27 = vadd.f32 %v3912_v2, %v3751_v39  ;;  %v3256_v51 = vpop.f32.mrf.mxu1 }
 0x334   : > { %v4213_v20 = vmax.f32 %v4101_v16, %v4165_v50  ;;  %v4099_v38 = vld [vmem:[#allocation2 + $0xe0] ss:$2 sm:$0xff]  ;;  %v4163_v34 = vld [vmem:[#allocation2 + $0xe1] ss:$2 sm:$0xff]  ;;  %v3754_v9 = vrot.slane %v3256_v51, 1  ;;  %v8026_v21 = vld [vmem:[#allocation62_spill] sm:$0xff] }
 0x335   : > { %v4895_v59 = vpack.c.bf16 %v4250_v29, %v4249_v58  ;;  %v4212_v37 = vmax.f32 %v4099_v38, %v4163_v34  ;;  %4039 = vst [vmem:[#allocation2 + $0x100] sm:$0xff] %v3975_v11  ;;  %4040 = vst [vmem:[#allocation2 + $0x108] sm:$0xff] %v3976_v27  ;;  %v5571_v36 = vpop.f32.mrf.mxu1  ;;  %v8027_v12 = vrot.slane %v8026_v21, 7  ;;  %v8028_v39 = vld [vmem:[#allocation23_spill] sm:$0xff]  ;;  %v7650_v11 = vpop.f32.mrf.mxu0 }
 0x336   : > { %v3755_v0 = vsel %vm634_vm1, %v3752_v1, %v3754_v9  ;;  %v3760_v28 = vrot.slane %v5571_v36, 1  ;;  %v4252_v30 = vadd.f32 %v7482_v62, %v4213_v20  ;;  %v3921_v29 = vadd.f32 %v7523_v61, %v8028_v39 }
 0x337   : > { %4947 = vst [vmem:[%s7500_s6 + $0x30] sm:$0xff] %v4895_v59   ;;  %v4251_v26 = vadd.f32 %v7482_v62, %v4212_v37  ;;  %v3978_v55 = vadd.f32 %v3914_v5, %v3755_v0  ;;  %v3259_v3 = vpop.f32.mrf.mxu1  ;;  %v3620_v58 = vsel %vm1625_vm3, 0.0, %v8027_v12  ;;  %v8029_v5 = vld [vmem:[#allocation24_spill] sm:$0xff] }
 0x338   : > { %v3761_v46 = vsel %vm634_vm1, %v3758_v45, %v3760_v28  ;;  %v3875_v1 = vsel %vm634_vm1, %v3760_v28, 0.0  ;;  %v3756_v10 = vrot.slane %v3259_v3, 1  ;;  %v3919_v48 = vadd.f32 %v3620_v58, %v7530_v43 }
 0x339   : > { %v4900_v57 = vpack.c.bf16 %v4252_v30, %v4251_v26  ;;  %4042 = vst [vmem:[#allocation2 + $0x118] sm:$0xff] %v3978_v55  ;;  %v3981_v56 = vadd.f32 %v3917_v63, %v3761_v46  ;;  %v3982_v8 = vadd.f32 %v3918_v53, %v3875_v1  ;;  %v5574_v6 = vpop.f32.mrf.mxu1  ;;  %v3920_v59 = vadd.f32 %v8029_v5, %v7554_v4  ;;  %v7660_v4 = vpop.f32.mrf.mxu0 }
 0x33a   : > { %v3757_v31 = vsel %vm634_vm1, %v3754_v9, %v3756_v10  ;;  %v3759_v25 = vsel %vm634_vm1, %v3756_v10, %v3758_v45  ;;  %v3765_v50 = vrot.slane %v5574_v6, 1 }
 0x33b   : > { %4948 = vst [vmem:[%s7500_s6 + $0x38] sm:$0xff] %v4900_v57   ;;  %4045 = vst [vmem:[#allocation2 + $0x130] sm:$0xff] %v3981_v56  ;;  %v3979_v52 = vadd.f32 %v3915_v44, %v3757_v31  ;;  %v3980_v49 = vadd.f32 %v3916_v17, %v3759_v25  ;;  %v3272_v7 = vpop.f32.mrf.mxu1  ;;  %v8030_v44 = vld [vmem:[#allocation65_spill] sm:$0xff]  ;;  %v8032_v31 = vld [vmem:[#allocation22_spill] sm:$0xff] }
 0x33c   : > { %4046 = vst [vmem:[#allocation2 + $0x138] sm:$0xff] %v3982_v8  ;;  %v4103_v2 = vld [vmem:[#allocation2 + $0x100] ss:$2 sm:$0xff]  ;;  %v4167_v41 = vld [vmem:[#allocation2 + $0x101] ss:$2 sm:$0xff]  ;;  %v3762_v38 = vrot.slane %v3272_v7, 1  ;;  %v3922_v46 = vadd.f32 %v7540_v23, %v8030_v44  ;;  %v3925_v25 = vadd.f32 %v7563_v19, %v8032_v31 }
 0x33d   : > { %4043 = vst [vmem:[#allocation2 + $0x120] sm:$0xff] %v3979_v52  ;;  %4044 = vst [vmem:[#allocation2 + $0x128] sm:$0xff] %v3980_v49  ;;  %v5575_v54 = vpop.f32.mrf.mxu1  ;;  %v4214_v16 = vmax.f32 %v4103_v2, %v4167_v41  ;;  %v8031_v17 = vld [vmem:[#allocation69_spill] sm:$0xff]  ;;  %v8034_v19 = vld [vmem:[#allocation68_spill] sm:$0xff] }
 0x33e   : > { %v3767_v60 = vrot.slane %v5575_v54, 1  ;;  %v3926_v57 = vadd.f32 %v7580_v14, %v8031_v17  ;;  %v8033_v2 = vld [vmem:[#allocation29_spill] sm:$0xff]  ;;  %v7674_v54 = vpop.f32.mrf.mxu0  ;;  %v3924_v58 = vadd.f32 %v8034_v19, %v7594_v24 }
 0x33f   : > { %v3275_v20 = vpop.f32.mrf.mxu1  ;;  %v4253_v53 = vadd.f32 %v7482_v62, %v4214_v16  ;;  %v3923_v41 = vadd.f32 %v8033_v2, %v7570_v42 }
 0x340   : > { %v4105_v27 = vld [vmem:[#allocation2 + $0x110] ss:$2 sm:$0xff]  ;;  %v4169_v51 = vld [vmem:[#allocation2 + $0x111] ss:$2 sm:$0xff]  ;;  %v3768_v34 = vsel %vm634_vm1, %v3765_v50, %v3767_v60  ;;  %v3763_v9 = vrot.slane %v3275_v20, 1 }
 0x341   : > { %v4215_v37 = vmax.f32 %v4105_v27, %v4169_v51  ;;  %v3985_v36 = vadd.f32 %v3921_v29, %v3768_v34  ;;  %v5578_v13 = vpop.f32.mrf.mxu1 }
 0x342   : > { %v3764_v0 = vsel %vm634_vm1, %v3762_v38, %v3763_v9  ;;  %v3766_v28 = vsel %vm634_vm1, %v3763_v9, %v3765_v50  ;;  %v3773_v56 = vrot.slane %v5578_v13, 1  ;;  %v7683_v38 = vpop.f32.mrf.mxu0 }
 0x343   : > { %v4109_v61 = vld [vmem:[#allocation2 + $0x130] ss:$2 sm:$0xff]  ;;  %v4173_v45 = vld [vmem:[#allocation2 + $0x131] ss:$2 sm:$0xff]  ;;  %v4254_v40 = vadd.f32 %v7482_v62, %v4215_v37  ;;  %4049 = vst [vmem:[#allocation2 + $0x150] sm:$0xff] %v3985_v36  ;;  %v3983_v30 = vadd.f32 %v3919_v48, %v3764_v0  ;;  %v3984_v43 = vadd.f32 %v3920_v59, %v3766_v28  ;;  %v3288_v26 = vpop.f32.mrf.mxu1 }
 0x344   : > { %v4217_v63 = vmax.f32 %v4109_v61, %v4173_v45  ;;  %v4107_v55 = vld [vmem:[#allocation2 + $0x120] ss:$2 sm:$0xff]  ;;  %v4171_v3 = vld [vmem:[#allocation2 + $0x121] ss:$2 sm:$0xff]  ;;  %v3769_v47 = vrot.slane %v3288_v26, 1  ;;  %v7690_v0 = vpop.f32.mrf.mxu0 }
 0x345   : > { %v4905_v1 = vpack.c.bf16 %v4254_v40, %v4253_v53  ;;  %v4216_v10 = vmax.f32 %v4107_v55, %v4171_v3  ;;  %4047 = vst [vmem:[#allocation2 + $0x140] sm:$0xff] %v3983_v30  ;;  %4048 = vst [vmem:[#allocation2 + $0x148] sm:$0xff] %v3984_v43  ;;  %v5579_v18 = vpop.f32.mrf.mxu1  ;;  %v8035_v48 = vld [vmem:[#allocation25_spill] sm:$0xff]  ;;  %v8037_v53 = vld [vmem:[#allocation30_spill] sm:$0xff] }
 0x346   : > { %v3770_v8 = vsel %vm634_vm1, %v3767_v60, %v3769_v47  ;;  %v3775_v6 = vrot.slane %v5579_v18, 1  ;;  %v4256_v52 = vadd.f32 %v7482_v62, %v4217_v63  ;;  %v8036_v5 = vrot.slane %v8035_v48, 7  ;;  %v8038_v55 = vld [vmem:[#allocation32_spill] sm:$0xff] }
 0x347   : > { %4949 = vst [vmem:[%s7500_s6 + $0x40] sm:$0xff] %v4905_v1   ;;  %v4255_v23 = vadd.f32 %v7482_v62, %v4216_v10  ;;  %v3986_v49 = vadd.f32 %v3922_v46, %v3770_v8  ;;  %v3291_v7 = vpop.f32.mrf.mxu1  ;;  %v3929_v61 = vadd.f32 %v7603_v32, %v8037_v53  ;;  %v3928_v3 = vadd.f32 %v8038_v55, %v7634_v22  ;;  %v7700_v22 = vpop.f32.mrf.mxu0 }
 0x348   : > { %v3776_v14 = vsel %vm634_vm1, %v3773_v56, %v3775_v6  ;;  %v3876_v21 = vsel %vm634_vm1, %v3775_v6, 0.0  ;;  %v3771_v12 = vrot.slane %v3291_v7, 1  ;;  %v3621_v59 = vsel %vm1625_vm3, 0.0, %v8036_v5 }
 0x349   : > { %v4910_v16 = vpack.c.bf16 %v4256_v52, %v4255_v23  ;;  %4050 = vst [vmem:[#allocation2 + $0x158] sm:$0xff] %v3986_v49  ;;  %v3989_v50 = vadd.f32 %v3925_v25, %v3776_v14  ;;  %v3990_v60 = vadd.f32 %v3926_v57, %v3876_v21  ;;  %v5582_v39 = vpop.f32.mrf.mxu1  ;;  %v3927_v26 = vadd.f32 %v3621_v59, %v7610_v35  ;;  %v8039_v23 = vld [vmem:[#allocation27_spill] sm:$0xff]  ;;  %v8040_v14 = vld [vmem:[#allocation34_spill] sm:$0xff] }
 0x34a   : > { %v3772_v29 = vsel %vm634_vm1, %v3769_v47, %v3771_v12  ;;  %v3774_v20 = vsel %vm634_vm1, %v3771_v12, %v3773_v56  ;;  %v3780_v36 = vrot.slane %v5582_v39, 1  ;;  %v3930_v49 = vadd.f32 %v7620_v15, %v8039_v23 }
 0x34b   : > { %4950 = vst [vmem:[%s7500_s6 + $0x48] sm:$0xff] %v4910_v16   ;;  %4053 = vst [vmem:[#allocation2 + $0x170] sm:$0xff] %v3989_v50  ;;  %v3987_v42 = vadd.f32 %v3923_v41, %v3772_v29  ;;  %v3988_v27 = vadd.f32 %v3924_v58, %v3774_v20  ;;  %v3304_v51 = vpop.f32.mrf.mxu1  ;;  %v3934_v21 = vadd.f32 %v7660_v4, %v8040_v14  ;;  %v8041_v16 = vld [vmem:[#allocation35_spill] sm:$0xff]  ;;  %v8042_v20 = vld [vmem:[#allocation40_spill] sm:$0xff] }
 0x34c   : > { %4054 = vst [vmem:[#allocation2 + $0x178] sm:$0xff] %v3990_v60  ;;  %v4111_v34 = vld [vmem:[#allocation2 + $0x140] ss:$2 sm:$0xff]  ;;  %v4175_v9 = vld [vmem:[#allocation2 + $0x141] ss:$2 sm:$0xff]  ;;  %v3777_v63 = vrot.slane %v3304_v51, 1  ;;  %v3933_v50 = vadd.f32 %v7643_v33, %v8041_v16 }
 0x34d   : > { %4051 = vst [vmem:[#allocation2 + $0x160] sm:$0xff] %v3987_v42  ;;  %4052 = vst [vmem:[#allocation2 + $0x168] sm:$0xff] %v3988_v27  ;;  %v5583_v24 = vpop.f32.mrf.mxu1  ;;  %v4218_v37 = vmax.f32 %v4111_v34, %v4175_v9  ;;  %v3931_v42 = vadd.f32 %v8042_v20, %v7650_v11  ;;  %v3017_v27 = vpop.f32.mrf.mxu0  ;;  %v8043_v9 = vld [vmem:[#allocation38_spill] sm:$0xff] }
 0x34e   : > { %v3782_v13 = vrot.slane %v5583_v24, 1  ;;  %v3932_v33 = vadd.f32 %v8043_v9, %v7674_v54  ;;  %v8048_v16 = vld [vmem:[#allocation46_spill] sm:$0xff] }
 0x34f   : > { %v3307_v45 = vpop.f32.mrf.mxu1  ;;  %v4257_v1 = vadd.f32 %v7482_v62, %v4218_v37 }
 0x350   : > { %v4113_v28 = vld [vmem:[#allocation2 + $0x150] ss:$2 sm:$0xff]  ;;  %v4177_v40 = vld [vmem:[#allocation2 + $0x151] ss:$2 sm:$0xff]  ;;  %v3783_v30 = vsel %vm634_vm1, %v3780_v36, %v3782_v13  ;;  %v3778_v43 = vrot.slane %v3307_v45, 1 }
 0x351   : > { %v4219_v47 = vmax.f32 %v4113_v28, %v4177_v40  ;;  %v3993_v44 = vadd.f32 %v3929_v61, %v3783_v30  ;;  %v5586_v46 = vpop.f32.mrf.mxu1  ;;  %v5522_v61 = vpop.f32.mrf.mxu0  ;;  %v8044_v40 = vld [vmem:[#allocation37_spill] sm:$0xff] }
 0x352   : > { %v3779_v18 = vsel %vm634_vm1, %v3777_v63, %v3778_v43  ;;  %v3781_v17 = vsel %vm634_vm1, %v3778_v43, %v3780_v36  ;;  %v3788_v12 = vrot.slane %v5586_v46, 1  ;;  %v8045_v63 = vrot.slane %v8044_v40, 7 }
 0x353   : > { %v4117_v32 = vld [vmem:[#allocation2 + $0x170] ss:$2 sm:$0xff]  ;;  %v4181_v10 = vld [vmem:[#allocation2 + $0x171] ss:$2 sm:$0xff]  ;;  %v4258_v57 = vadd.f32 %v7482_v62, %v4219_v47  ;;  %4057 = vst [vmem:[#allocation2 + $0x190] sm:$0xff] %v3993_v44  ;;  %v3991_v8 = vadd.f32 %v3927_v26, %v3779_v18  ;;  %v3992_v35 = vadd.f32 %v3928_v3, %v3781_v17  ;;  %v3320_v6 = vpop.f32.mrf.mxu1  ;;  %v3030_v46 = vpop.f32.mrf.mxu0 }
 0x354   : > { %v4221_v56 = vmax.f32 %v4117_v32, %v4181_v10  ;;  %v4115_v31 = vld [vmem:[#allocation2 + $0x160] ss:$2 sm:$0xff]  ;;  %v4179_v25 = vld [vmem:[#allocation2 + $0x161] ss:$2 sm:$0xff]  ;;  %v3784_v52 = vrot.slane %v3320_v6, 1  ;;  %v3622_v30 = vsel %vm1625_vm3, 0.0, %v8045_v63 }
 0x355   : > { %v4915_v7 = vpack.c.bf16 %v4258_v57, %v4257_v1  ;;  %v4220_v2 = vmax.f32 %v4115_v31, %v4179_v25  ;;  %4055 = vst [vmem:[#allocation2 + $0x180] sm:$0xff] %v3991_v8  ;;  %4056 = vst [vmem:[#allocation2 + $0x188] sm:$0xff] %v3992_v35  ;;  %v5587_v41 = vpop.f32.mrf.mxu1  ;;  %v8046_v3 = vld [vmem:[#allocation42_spill] sm:$0xff]  ;;  %v3935_v57 = vadd.f32 %v3622_v30, %v7690_v0 }
 0x356   : > { %v3785_v19 = vsel %vm634_vm1, %v3782_v13, %v3784_v52  ;;  %v3790_v58 = vrot.slane %v5587_v41, 1  ;;  %v4260_v60 = vadd.f32 %v7482_v62, %v4221_v56  ;;  %v3937_v47 = vadd.f32 %v7683_v38, %v8046_v3  ;;  %v8047_v56 = vld [vmem:[#allocation53_spill] sm:$0xff] }
 0x357   : > { %4951 = vst [vmem:[%s7500_s6 + $0x50] sm:$0xff] %v4915_v7   ;;  %v4259_v15 = vadd.f32 %v7482_v62, %v4220_v2  ;;  %v3994_v39 = vadd.f32 %v3930_v49, %v3785_v19  ;;  %v3323_v29 = vpop.f32.mrf.mxu1  ;;  %v3936_v8 = vadd.f32 %v8047_v56, %v3017_v27 }
 0x358   : > { %v3791_v4 = vsel %vm634_vm1, %v3788_v12, %v3790_v58  ;;  %v3877_v51 = vsel %vm634_vm1, %v3790_v58, 0.0  ;;  %v3786_v34 = vrot.slane %v3323_v29, 1  ;;  %v8049_v29 = vld [vmem:[#allocation47_spill] sm:$0xff] }
 0x359   : > { %v4920_v24 = vpack.c.bf16 %v4260_v60, %v4259_v15  ;;  %4058 = vst [vmem:[#allocation2 + $0x198] sm:$0xff] %v3994_v39  ;;  %v3997_v48 = vadd.f32 %v3933_v50, %v3791_v4  ;;  %v3998_v5 = vadd.f32 %v3934_v21, %v3877_v51  ;;  %v5590_v59 = vpop.f32.mrf.mxu1  ;;  %v5523_v21 = vpop.f32.mrf.mxu0  ;;  %v3938_v50 = vadd.f32 %v7700_v22, %v8048_v16  ;;  %v8050_v51 = vld [vmem:[#allocation51_spill] sm:$0xff] }
 0x35a   : > { %v3787_v37 = vsel %vm634_vm1, %v3784_v52, %v3786_v34  ;;  %v3789_v36 = vsel %vm634_vm1, %v3786_v34, %v3788_v12  ;;  %v3795_v26 = vrot.slane %v5590_v59, 1  ;;  %v3942_v20 = vadd.f32 %v5523_v21, %v8049_v29 }
 0x35b   : > { %4952 = vst [vmem:[%s7500_s6 + $0x58] sm:$0xff] %v4920_v24   ;;  %4061 = vst [vmem:[#allocation2 + $0x1b0] sm:$0xff] %v3997_v48  ;;  %v3995_v11 = vadd.f32 %v3931_v42, %v3787_v37  ;;  %v3996_v13 = vadd.f32 %v3932_v33, %v3789_v36  ;;  %v3336_v53 = vpop.f32.mrf.mxu1  ;;  %v3941_v34 = vadd.f32 %v5522_v61, %v8050_v51  ;;  %v8051_v48 = vld [vmem:[#allocation48_spill] sm:$0xff]  ;;  %v3033_v59 = vpop.f32.mrf.mxu0 }
 0x35c   : > { %4062 = vst [vmem:[#allocation2 + $0x1b8] sm:$0xff] %v3998_v5  ;;  %v4119_v45 = vld [vmem:[#allocation2 + $0x180] ss:$2 sm:$0xff]  ;;  %v4183_v28 = vld [vmem:[#allocation2 + $0x181] ss:$2 sm:$0xff]  ;;  %v3792_v10 = vrot.slane %v3336_v53, 1  ;;  %v3939_v5 = vadd.f32 %v8051_v48, %v3030_v46 }
 0x35d   : > { %4059 = vst [vmem:[#allocation2 + $0x1a0] sm:$0xff] %v3995_v11  ;;  %4060 = vst [vmem:[#allocation2 + $0x1a8] sm:$0xff] %v3996_v13  ;;  %v5591_v54 = vpop.f32.mrf.mxu1  ;;  %v4222_v43 = vmax.f32 %v4119_v45, %v4183_v28  ;;  %v8052_v13 = vld [vmem:[#allocation54_spill] sm:$0xff] }
 0x35e   : > { %v3797_v55 = vrot.slane %v5591_v54, 1  ;;  %v3940_v53 = vadd.f32 %v8052_v13, %v3033_v59 }
 0x35f   : > { %v3339_v44 = vpop.f32.mrf.mxu1  ;;  %v4261_v25 = vadd.f32 %v7482_v62, %v4222_v43 }
 0x360   : > { %v4121_v1 = vld [vmem:[#allocation2 + $0x190] ss:$2 sm:$0xff]  ;;  %v4185_v32 = vld [vmem:[#allocation2 + $0x191] ss:$2 sm:$0xff]  ;;  %v3798_v18 = vsel %vm634_vm1, %v3795_v26, %v3797_v55  ;;  %v3793_v17 = vrot.slane %v3339_v44, 1 }
 0x361   : > { %v4223_v35 = vmax.f32 %v4121_v1, %v4185_v32  ;;  %v4001_v6 = vadd.f32 %v3937_v47, %v3798_v18  ;;  %v5594_v31 = vpop.f32.mrf.mxu1 }
 0x362   : > { %v3794_v38 = vsel %vm634_vm1, %v3792_v10, %v3793_v17  ;;  %v3796_v49 = vsel %vm634_vm1, %v3793_v17, %v3795_v26  ;;  %v3803_v42 = vrot.slane %v5594_v31, 1  ;;  %v5702_v10 = vld [vmem:[#allocation8] ss:$0 sm:$0xff] }
 0x363   : > { %v4125_v52 = vld [vmem:[#allocation2 + $0x1b0] ss:$2 sm:$0xff]  ;;  %v4189_v23 = vld [vmem:[#allocation2 + $0x1b1] ss:$2 sm:$0xff]  ;;  %v4262_v7 = vadd.f32 %v7482_v62, %v4223_v35  ;;  %4065 = vst [vmem:[#allocation2 + $0x1d0] sm:$0xff] %v4001_v6  ;;  %v3999_v41 = vadd.f32 %v3935_v57, %v3794_v38  ;;  %v4000_v14 = vadd.f32 %v3936_v8, %v3796_v49  ;;  %v3352_v0 = vpop.f32.mrf.mxu1 }
 0x364   : > { %v4225_v2 = vmax.f32 %v4125_v52, %v4189_v23  ;;  %v4123_v12 = vld [vmem:[#allocation2 + $0x1a0] ss:$2 sm:$0xff]  ;;  %v4187_v19 = vld [vmem:[#allocation2 + $0x1a1] ss:$2 sm:$0xff]  ;;  %v3799_v58 = vrot.slane %v3352_v0, 1 }
 0x365   : > { %v4925_v60 = vpack.c.bf16 %v4262_v7, %v4261_v25  ;;  %v4224_v15 = vmax.f32 %v4123_v12, %v4187_v19  ;;  %4063 = vst [vmem:[#allocation2 + $0x1c0] sm:$0xff] %v3999_v41  ;;  %4064 = vst [vmem:[#allocation2 + $0x1c8] sm:$0xff] %v4000_v14  ;;  %v5595_v39 = vpop.f32.mrf.mxu1 }
 0x366   : > { %v3800_v27 = vsel %vm634_vm1, %v3797_v55, %v3799_v58  ;;  %v3805_v4 = vrot.slane %v5595_v39, 1  ;;  %v4264_v9 = vadd.f32 %v7482_v62, %v4225_v2 }
 0x367   : > { %4953 = vst [vmem:[%s7500_s6 + $0x60] sm:$0xff] %v4925_v60   ;;  %v4263_v33 = vadd.f32 %v7482_v62, %v4224_v15  ;;  %v4002_v22 = vadd.f32 %v3938_v50, %v3800_v27  ;;  %v3355_v24 = vpop.f32.mrf.mxu1 }
 0x368   : > { %v3806_v37 = vsel %vm634_vm1, %v3803_v42, %v3805_v4  ;;  %v3878_v36 = vsel %vm634_vm1, %v3805_v4, 0.0  ;;  %v3801_v11 = vrot.slane %v3355_v24, 1 }
 0x369   : > { %v4930_v45 = vpack.c.bf16 %v4264_v9, %v4263_v33  ;;  %4066 = vst [vmem:[#allocation2 + $0x1d8] sm:$0xff] %v4002_v22  ;;  %v4005_v61 = vadd.f32 %v3941_v34, %v3806_v37  ;;  %v4006_v28 = vadd.f32 %v3942_v20, %v3878_v36 }
 0x36a   : > { %v3802_v54 = vsel %vm634_vm1, %v3799_v58, %v3801_v11  ;;  %v3804_v40 = vsel %vm634_vm1, %v3801_v11, %v3803_v42 }
 0x36b   : > { %4954 = vst [vmem:[%s7500_s6 + $0x68] sm:$0xff] %v4930_v45   ;;  %4069 = vst [vmem:[#allocation2 + $0x1f0] sm:$0xff] %v4005_v61  ;;  %v4003_v63 = vadd.f32 %v3939_v5, %v3802_v54  ;;  %v4004_v30 = vadd.f32 %v3940_v53, %v3804_v40 }
 0x36c   : > { %4070 = vst [vmem:[#allocation2 + $0x1f8] sm:$0xff] %v4006_v28  ;;  %v4127_v43 = vld [vmem:[#allocation2 + $0x1c0] ss:$2 sm:$0xff]  ;;  %v4191_v26 = vld [vmem:[#allocation2 + $0x1c1] ss:$2 sm:$0xff] }
 0x36d   : > { %4067 = vst [vmem:[#allocation2 + $0x1e0] sm:$0xff] %v4003_v63  ;;  %4068 = vst [vmem:[#allocation2 + $0x1e8] sm:$0xff] %v4004_v30  ;;  %v4226_v55 = vmax.f32 %v4127_v43, %v4191_v26 }
 0x36f   : > { %v4265_v32 = vadd.f32 %v7482_v62, %v4226_v55 }
 0x370   : > { %v4129_v3 = vld [vmem:[#allocation2 + $0x1d0] ss:$2 sm:$0xff]  ;;  %v4193_v47 = vld [vmem:[#allocation2 + $0x1d1] ss:$2 sm:$0xff] }
 0x371   : > { %v4227_v44 = vmax.f32 %v4129_v3, %v4193_v47 }
 0x373   : > { %v4133_v46 = vld [vmem:[#allocation2 + $0x1f0] ss:$2 sm:$0xff]  ;;  %v4197_v1 = vld [vmem:[#allocation2 + $0x1f1] ss:$2 sm:$0xff]  ;;  %v4266_v18 = vadd.f32 %v5702_v10, %v4227_v44 }
 0x374   : > { %v4229_v17 = vmax.f32 %v4133_v46, %v4197_v1  ;;  %v4131_v57 = vld [vmem:[#allocation2 + $0x1e0] ss:$2 sm:$0xff]  ;;  %v4195_v56 = vld [vmem:[#allocation2 + $0x1e1] ss:$2 sm:$0xff] }
 0x375   : > { %v4935_v8 = vpack.c.bf16 %v4266_v18, %v4265_v32  ;;  %v4228_v35 = vmax.f32 %v4131_v57, %v4195_v56 }
 0x376   : > { %v4268_v6 = vadd.f32 %v5702_v10, %v4229_v17 }
 0x377   : > { %4955 = vst [vmem:[%s7500_s6 + $0x70] sm:$0xff] %v4935_v8   ;;  %v4267_v31 = vadd.f32 %v5702_v10, %v4228_v35 }
 0x379   : > { %v4940_v25 = vpack.c.bf16 %v4268_v6, %v4267_v31 }
 0x37b   : > { %4956 = vst [vmem:[%s7500_s6 + $0x78] sm:$0xff] %v4940_v25  }
 0x37c PF: > { %s18_s18 = sadd.s32 1, %s5825_s18  }
 0x37d   : > { %p15_p2 = scmp.ge.s32.totalorder %s18_s18, 4  }
 0x37f   :  { %17 = sbr.rel (!%p15_p2) target bundleno = 3 (0x3), region = 154 }
 0x384   :  { %4453 = vsyncpa [#allocation4], 1 }
 0x385   :  { %4455 = vsyncpa [#allocation4 + $0x1], 1 }
 0x386   :  { %4456 = vsyncpa [#allocation6], 1 }
 0x387   :  { %4457 = vsyncpa [#allocation9], 1 }

// kernel: conv1d_model_forward.3
= control target key start
LH: loop header
LB: loop body
LE: loop exit
PB: predicated region body
PF: predicated region fallthrough
CT: control target
= control target key end

     0   :  { %12 = vsyncpa [#allocation3], 0  ;;  %s6146_s0 = inlined_call_operand.vmem [shape: bf16[16,4096], index: 0, kind: input, shape index: {}]   ;;  %s6147_s1 = inlined_call_operand.hbm [shape: bf16[4096,256], index: 1, kind: input, shape index: {}]   ;;  %s6148_s2 = inlined_call_operand.hbm [shape: f32[1,256], index: 2, kind: input, shape index: {}]   ;;  %s6149_s3 = inlined_call_operand.vmem [shape: bf16[256,64], index: 3, kind: input, shape index: {}]   ;;  %s6150_s4 = inlined_call_operand.hbm [shape: f32[1,64], index: 4, kind: input, shape index: {}]   ;;  %s6151_s5 = inlined_call_operand.vmem [shape: bf16[64,2], index: 5, kind: input, shape index: {}]   ;;  %s6152_s6 = inlined_call_operand.hbm [shape: f32[1,2], index: 6, kind: input, shape index: {}]   ;;  %s6153_s7 = inlined_call_operand.vmem [shape: f32[16,2], index: 7, kind: output, shape index: {}]  }
   0x1   :  { %13 = vsyncpa [#allocation5], 0 }
   0x2   :  { %14 = vsyncpa [#allocation8], 0  ;;  %s5807_s24 = smov [#allocation4]   ;;  %s5808_s26 = smov [#allocation2]  }
   0x3   :  { %s35_s25 = sshll.u32 %s5807_s24, 4  ;;  %s22_s27 = sshll.u32 %s5808_s26, 4  ;;  %s36_s25 = int_to_ptr.vmem [resolvable:$true] %s35_s25  ;;  %s23_s27 = int_to_ptr.vmem [resolvable:$true] %s22_s27 }
   0x4   :  { %s5729_s28 = scalar_lea.vmem %s36_s25, 32  ;;  %p5734_p1 = scmp.lt.s32.totalorder %s36_s25, %s36_s25 }
   0x5   :  { %p5730_p0 = scmp.ne.s32.totalorder %s36_s25, %s5729_s28  ;;  %p5735_p2 = scmp.lt.s32.totalorder %s5729_s28, %s5729_s28 }
   0x7   :  { %p5736_p3 = por %p5735_p2, %p5734_p1 }
   0x9   :  { %p5737_p4 = pnand %p5736_p3, %p5730_p0 }
   0xb   :  { %5740 = shalt.err (!%p5737_p4)
}
   0xc   :  { %38 = dma.hbm_to_vmem [thread:$0]  %s6148_s2, 32, %s36_s25, [#allocation5]  }
   0xd   :  { %s5749_s8 = scalar_lea.vmem %s23_s27, 65536  ;;  %p5754_p6 = scmp.lt.s32.totalorder %s23_s27, %s23_s27 }
   0xe   :  { %p5750_p5 = scmp.ne.s32.totalorder %s23_s27, %s5749_s8  ;;  %p5755_p7 = scmp.lt.s32.totalorder %s5749_s8, %s5749_s8 }
  0x10   :  { %p5756_p8 = por %p5755_p7, %p5754_p6 }
  0x12   :  { %p5757_p9 = pnand %p5756_p8, %p5750_p5 }
  0x14   :  { %5760 = shalt.err (!%p5757_p9)
}
  0x15   :  { %s5809_s9 = smov 128   ;;  %s5810_s10 = smov 8  }
  0x16   :  { %28 = dma.hbm_to_vmem [thread:$0]  %s6147_s1, 65536, %s23_s27, [#allocation3], %s5809_s9, %s5809_s9, %s5810_s10  }
  0x17   :  { %s5811_s13 = smov [#allocation6]   ;;  %s5812_s15 = smov [#allocation7]  }
  0x18   :  { %s47_s14 = sshll.u32 %s5811_s13, 4  ;;  %s59_s16 = sshll.u32 %s5812_s15, 4  ;;  %s48_s14 = int_to_ptr.vmem [resolvable:$true] %s47_s14  ;;  %s60_s16 = int_to_ptr.vmem [resolvable:$true] %s59_s16 }
  0x19   :  { %s5769_s2 = scalar_lea.vmem %s48_s14, 16  ;;  %s5773_s17 = scalar_lea.vmem %s48_s14, 32 }
  0x1a   :  { %p5770_p10 = scmp.ne.s32.totalorder %s48_s14, %s5769_s2  ;;  %p5774_p11 = scmp.lt.s32.totalorder %s48_s14, %s48_s14 }
  0x1b   :  { %p5775_p12 = scmp.lt.s32.totalorder %s5773_s17, %s5769_s2 }
  0x1d   :  { %p5776_p13 = por %p5775_p12, %p5774_p11 }
  0x1f   :  { %p5777_p0 = pnand %p5776_p13, %p5770_p10 }
  0x21   :  { %5780 = shalt.err (!%p5777_p0)
}
  0x22   :  { %50 = dma.hbm_to_vmem [thread:$0]  %s6150_s4, 16, %s48_s14, [#allocation5]  }
  0x23   :  { %s5789_s20 = scalar_lea.vmem %s60_s16, 16  ;;  %s5793_s1 = scalar_lea.vmem %s60_s16, 32 }
  0x24   :  { %p5790_p1 = scmp.ne.s32.totalorder %s60_s16, %s5789_s20  ;;  %p5794_p2 = scmp.lt.s32.totalorder %s60_s16, %s60_s16 }
  0x25   :  { %p5795_p3 = scmp.lt.s32.totalorder %s5793_s1, %s5789_s20 }
  0x27   :  { %p5796_p4 = por %p5795_p3, %p5794_p2 }
  0x29   :  { %p5797_p5 = pnand %p5796_p4, %p5790_p1 }
  0x2b   :  { %5800 = shalt.err (!%p5797_p5)
}
  0x2c   :  { %62 = dma.hbm_to_vmem [thread:$0]  %s6152_s6, 16, %s60_s16, [#allocation8]  }
  0x2d   :  { %5801 = dma.done.wait [#allocation3], 65536  }
  0x2e   :  { %5802 = vsyncadd [#allocation3], 4294901760 }
  0x2f   :  { %5803 = dma.done.wait [#allocation5], 48  }
  0x30   :  { %5804 = vsyncadd [#allocation5], 4294967248 }
  0x31   :  { %5805 = dma.done.wait [#allocation8], 16  }
  0x32   :  { %5806 = vsyncadd [#allocation8], 4294967280  ;;  %v4933_v0 = vld [vmem:[#allocation2 + $0x74] ss:$8 sps:$4 sm:$0xff]   ;;  %v4937_v2 = vld [vmem:[#allocation2 + $0x70] ss:$8 sps:$4 sm:$0xff]  }
  0x33   :  { %v4935_v1 = vld [vmem:[#allocation2 + $0x174] ss:$8 sps:$4 sm:$0xff]   ;;  %3352 = vmatprep.subr.bf16.mxu0 %v4933_v0  ;;  %v4938_v3 = vld [vmem:[#allocation2 + $0x170] ss:$8 sps:$4 sm:$0xff]   ;;  %v4939_v4 = vld [vmem:[#allocation2 + $0x64] ss:$8 sps:$4 sm:$0xff]  }
  0x34   :  { %3395 = vmatprep.subr.bf16.mxu1 %v4935_v1  ;;  %3353 = vmatpush1.bf16.msra.mxu0 %v4937_v2  ;;  %v4941_v5 = vld [vmem:[#allocation2 + $0x164] ss:$8 sps:$4 sm:$0xff]   ;;  %v4943_v6 = vld [vmem:[#allocation2 + $0x60] ss:$8 sps:$4 sm:$0xff]   ;;  %v4945_v8 = vld [vmem:[#allocation2 + $0x54] ss:$8 sps:$4 sm:$0xff]  }
  0x35   :  { %3396 = vmatpush1.bf16.msra.mxu1 %v4938_v3  ;;  %3354 = vmatprep.subr.bf16.mxu0 %v4939_v4  ;;  %v4944_v7 = vld [vmem:[#allocation2 + $0x160] ss:$8 sps:$4 sm:$0xff]   ;;  %v4947_v9 = vld [vmem:[#allocation2 + $0x154] ss:$8 sps:$4 sm:$0xff]   ;;  %v4949_v10 = vld [vmem:[#allocation2 + $0x50] ss:$8 sps:$4 sm:$0xff]  }
  0x36   :  { %3397 = vmatprep.subr.bf16.mxu1 %v4941_v5  ;;  %v4950_v11 = vld [vmem:[#allocation2 + $0x150] ss:$8 sps:$4 sm:$0xff]   ;;  %v4951_v12 = vld [vmem:[#allocation2 + $0x44] ss:$8 sps:$4 sm:$0xff]   ;;  %v4955_v14 = vld [vmem:[#allocation2 + $0x40] ss:$8 sps:$4 sm:$0xff]  }
  0x37   :  { %v4953_v13 = vld [vmem:[#allocation2 + $0x144] ss:$8 sps:$4 sm:$0xff]   ;;  %v4956_v15 = vld [vmem:[#allocation2 + $0x140] ss:$8 sps:$4 sm:$0xff]   ;;  %v4957_v16 = vld [vmem:[#allocation2 + $0x34] ss:$8 sps:$4 sm:$0xff]  }
  0x38   :  { %3355 = vmatpush1.bf16.msra.mxu0 %v4943_v6  ;;  %v4959_v17 = vld [vmem:[#allocation2 + $0x134] ss:$8 sps:$4 sm:$0xff]   ;;  %v4961_v18 = vld [vmem:[#allocation2 + $0x30] ss:$8 sps:$4 sm:$0xff]   ;;  %v4963_v20 = vld [vmem:[#allocation2 + $0x24] ss:$8 sps:$4 sm:$0xff]  }
  0x39   :  { %3398 = vmatpush1.bf16.msra.mxu1 %v4944_v7  ;;  %3356 = vmatprep.subr.bf16.mxu0 %v4945_v8  ;;  %v4962_v19 = vld [vmem:[#allocation2 + $0x130] ss:$8 sps:$4 sm:$0xff]   ;;  %v4965_v21 = vld [vmem:[#allocation2 + $0x124] ss:$8 sps:$4 sm:$0xff]   ;;  %v4967_v22 = vld [vmem:[#allocation2 + $0x20] ss:$8 sps:$4 sm:$0xff]  }
  0x3a   :  { %3399 = vmatprep.subr.bf16.mxu1 %v4947_v9  ;;  %v4968_v23 = vld [vmem:[#allocation2 + $0x120] ss:$8 sps:$4 sm:$0xff]   ;;  %v4969_v24 = vld [vmem:[#allocation2 + $0x14] ss:$8 sps:$4 sm:$0xff]   ;;  %v4973_v26 = vld [vmem:[#allocation2 + $0x10] ss:$8 sps:$4 sm:$0xff]  }
  0x3b   :  { %v4971_v25 = vld [vmem:[#allocation2 + $0x114] ss:$8 sps:$4 sm:$0xff]   ;;  %v4974_v27 = vld [vmem:[#allocation2 + $0x110] ss:$8 sps:$4 sm:$0xff]   ;;  %v4975_v28 = vld [vmem:[#allocation2 + $0x4] ss:$8 sps:$4 sm:$0xff]  }
  0x3c   :  { %3357 = vmatpush1.bf16.msra.mxu0 %v4949_v10  ;;  %v4977_v29 = vld [vmem:[#allocation2 + $0x104] ss:$8 sps:$4 sm:$0xff]   ;;  %v4979_v30 = vld [vmem:[#allocation2] ss:$8 sps:$4 sm:$0xff]   ;;  %v4981_v32 = vld [vmem:[#allocation2 + $0xf4] ss:$8 sps:$4 sm:$0xff]  }
  0x3d   :  { %3400 = vmatpush1.bf16.msra.mxu1 %v4950_v11  ;;  %3358 = vmatprep.subr.bf16.mxu0 %v4951_v12  ;;  %v4980_v31 = vld [vmem:[#allocation2 + $0x100] ss:$8 sps:$4 sm:$0xff]   ;;  %v4983_v33 = vld [vmem:[#allocation2 + $0x1f4] ss:$8 sps:$4 sm:$0xff]   ;;  %v4985_v34 = vld [vmem:[#allocation2 + $0xf0] ss:$8 sps:$4 sm:$0xff]  }
  0x3e   :  { %3401 = vmatprep.subr.bf16.mxu1 %v4953_v13  ;;  %v4986_v35 = vld [vmem:[#allocation2 + $0x1f0] ss:$8 sps:$4 sm:$0xff]   ;;  %v4987_v36 = vld [vmem:[#allocation2 + $0xe4] ss:$8 sps:$4 sm:$0xff]   ;;  %v4991_v38 = vld [vmem:[#allocation2 + $0xe0] ss:$8 sps:$4 sm:$0xff]  }
  0x3f   :  { %v4989_v37 = vld [vmem:[#allocation2 + $0x1e4] ss:$8 sps:$4 sm:$0xff]   ;;  %v4992_v39 = vld [vmem:[#allocation2 + $0x1e0] ss:$8 sps:$4 sm:$0xff]   ;;  %v4993_v40 = vld [vmem:[#allocation2 + $0xd4] ss:$8 sps:$4 sm:$0xff]  }
  0x40   :  { %3359 = vmatpush1.bf16.msra.mxu0 %v4955_v14  ;;  %v4995_v41 = vld [vmem:[#allocation2 + $0x1d4] ss:$8 sps:$4 sm:$0xff]   ;;  %v4997_v42 = vld [vmem:[#allocation2 + $0xd0] ss:$8 sps:$4 sm:$0xff]   ;;  %v4999_v44 = vld [vmem:[#allocation2 + $0xc4] ss:$8 sps:$4 sm:$0xff]  }
  0x41   :  { %3402 = vmatpush1.bf16.msra.mxu1 %v4956_v15  ;;  %3360 = vmatprep.subr.bf16.mxu0 %v4957_v16  ;;  %v4998_v43 = vld [vmem:[#allocation2 + $0x1d0] ss:$8 sps:$4 sm:$0xff]   ;;  %v5001_v45 = vld [vmem:[#allocation2 + $0x1c4] ss:$8 sps:$4 sm:$0xff]   ;;  %v5003_v46 = vld [vmem:[#allocation2 + $0xc0] ss:$8 sps:$4 sm:$0xff]  }
  0x42   :  { %3403 = vmatprep.subr.bf16.mxu1 %v4959_v17  ;;  %v5004_v47 = vld [vmem:[#allocation2 + $0x1c0] ss:$8 sps:$4 sm:$0xff]   ;;  %v5005_v52 = vld [vmem:[#allocation2 + $0xb4] ss:$8 sps:$4 sm:$0xff]   ;;  %v5009_v56 = vld [vmem:[#allocation2 + $0xb0] ss:$8 sps:$4 sm:$0xff]  }
  0x43   :  { %v76_v48 = vld [vmem:[%s6146_s0] sm:$0xff]  ;;  %v77_v50 = vld [vmem:[%s6146_s0 + $0x8] sm:$0xff]  ;;  %v5007_v54 = vld [vmem:[#allocation2 + $0x1b4] ss:$8 sps:$4 sm:$0xff]   ;;  %vm5814_vm0 = vmmov 0   ;;  %vm4264_vm1 = vcmask 523264  }
  0x44   :  { %3361 = vmatpush1.bf16.msra.mxu0 %v4961_v18  ;;  %v92_v49 = vld [vmem:[%s6146_s0 + $0x80] sm:$0xff]  ;;  %v93_v51 = vld [vmem:[%s6146_s0 + $0x88] sm:$0xff]  ;;  %v5010_v57 = vld [vmem:[#allocation2 + $0x1b0] ss:$8 sps:$4 sm:$0xff]   ;;  %vm4309_vm2 = vcmask 15360  }
  0x45   :  { %3404 = vmatpush1.bf16.msra.mxu1 %v4962_v19  ;;  %3362 = vmatprep.subr.bf16.mxu0 %v4963_v20  ;;  %v4320_v53 = vcombine.high %v76_v48, %v92_v49  ;;  %v4322_v55 = vcombine.high %v77_v50, %v93_v51  ;;  %v5011_v58 = vld [vmem:[#allocation2 + $0xa4] ss:$8 sps:$4 sm:$0xff]   ;;  %v5015_v60 = vld [vmem:[#allocation2 + $0xa0] ss:$8 sps:$4 sm:$0xff]   ;;  %v5017_v62 = vld [vmem:[#allocation2 + $0x94] ss:$8 sps:$4 sm:$0xff]   ;;  %v4319_v8 = vcombine.low %v76_v48, %v92_v49 }
  0x46   :  { %3405 = vmatprep.subr.bf16.mxu1 %v4965_v21  ;;  %v5013_v59 = vld [vmem:[#allocation2 + $0x1a4] ss:$8 sps:$4 sm:$0xff]   ;;  %v5016_v61 = vld [vmem:[#allocation2 + $0x1a0] ss:$8 sps:$4 sm:$0xff]   ;;  %v5019_v63 = vld [vmem:[#allocation2 + $0x194] ss:$8 sps:$4 sm:$0xff]   ;;  %v4321_v9 = vcombine.low %v77_v50, %v93_v51 }
  0x47   :  { %3384 = vmatprep.mubr.bf16.mxu0 %v4320_v53  ;;  %3427 = vmatprep.mubr.bf16.mxu1 %v4322_v55  ;;  %v5021_v0 = vld [vmem:[#allocation2 + $0x90] ss:$8 sps:$4 sm:$0xff]   ;;  %v5023_v2 = vld [vmem:[#allocation2 + $0x84] ss:$8 sps:$4 sm:$0xff]   ;;  %v5027_v4 = vld [vmem:[#allocation2 + $0x80] ss:$8 sps:$4 sm:$0xff]  }
  0x48   :  { %3363 = vmatpush1.bf16.msra.mxu0 %v4967_v22  ;;  %v5022_v1 = vld [vmem:[#allocation2 + $0x190] ss:$8 sps:$4 sm:$0xff]   ;;  %v5025_v3 = vld [vmem:[#allocation2 + $0x184] ss:$8 sps:$4 sm:$0xff]   ;;  %v5028_v5 = vld [vmem:[#allocation2 + $0x180] ss:$8 sps:$4 sm:$0xff]  }
  0x49   :  { %3406 = vmatpush1.bf16.msra.mxu1 %v4968_v23  ;;  %3364 = vmatprep.subr.bf16.mxu0 %v4969_v24  ;;  %v5031_v6 = vld [vmem:[#allocation2 + $0x274] ss:$8 sps:$4 sm:$0xff]   ;;  %v5029_v10 = vld [vmem:[#allocation2 + $0x270] ss:$8 sps:$4 sm:$0xff]   ;;  %v5037_v12 = vld [vmem:[#allocation2 + $0x264] ss:$8 sps:$4 sm:$0xff]  }
  0x4a   :  { %3407 = vmatprep.subr.bf16.mxu1 %v4971_v25  ;;  %v5034_v7 = vld [vmem:[#allocation2 + $0x374] ss:$8 sps:$4 sm:$0xff]   ;;  %v5032_v11 = vld [vmem:[#allocation2 + $0x370] ss:$8 sps:$4 sm:$0xff]   ;;  %v5040_v13 = vld [vmem:[#allocation2 + $0x364] ss:$8 sps:$4 sm:$0xff]  }
  0x4b   :  { %v5035_v14 = vld [vmem:[#allocation2 + $0x260] ss:$8 sps:$4 sm:$0xff]   ;;  %v5043_v16 = vld [vmem:[#allocation2 + $0x254] ss:$8 sps:$4 sm:$0xff]   ;;  %v5041_v18 = vld [vmem:[#allocation2 + $0x250] ss:$8 sps:$4 sm:$0xff]  }
  0x4c   :  { %3365 = vmatpush1.bf16.msra.mxu0 %v4973_v26  ;;  %v5038_v15 = vld [vmem:[#allocation2 + $0x360] ss:$8 sps:$4 sm:$0xff]   ;;  %v5046_v17 = vld [vmem:[#allocation2 + $0x354] ss:$8 sps:$4 sm:$0xff]   ;;  %v5044_v19 = vld [vmem:[#allocation2 + $0x350] ss:$8 sps:$4 sm:$0xff]  }
  0x4d   :  { %3408 = vmatpush1.bf16.msra.mxu1 %v4974_v27  ;;  %3366 = vmatprep.subr.bf16.mxu0 %v4975_v28  ;;  %v5049_v20 = vld [vmem:[#allocation2 + $0x244] ss:$8 sps:$4 sm:$0xff]   ;;  %v5047_v22 = vld [vmem:[#allocation2 + $0x240] ss:$8 sps:$4 sm:$0xff]   ;;  %v5055_v24 = vld [vmem:[#allocation2 + $0x234] ss:$8 sps:$4 sm:$0xff]  }
  0x4e   :  { %3409 = vmatprep.subr.bf16.mxu1 %v4977_v29  ;;  %v5052_v21 = vld [vmem:[#allocation2 + $0x344] ss:$8 sps:$4 sm:$0xff]   ;;  %v5050_v23 = vld [vmem:[#allocation2 + $0x340] ss:$8 sps:$4 sm:$0xff]   ;;  %v5058_v25 = vld [vmem:[#allocation2 + $0x334] ss:$8 sps:$4 sm:$0xff]  }
  0x4f   :  { %v5053_v26 = vld [vmem:[#allocation2 + $0x230] ss:$8 sps:$4 sm:$0xff]   ;;  %v5061_v28 = vld [vmem:[#allocation2 + $0x224] ss:$8 sps:$4 sm:$0xff]   ;;  %v5086_v53 = vld [vmem:[#allocation2 + $0x3e0] ss:$8 sps:$4 sm:$0xff]  }
  0x50   :  { %3367 = vmatpush1.bf16.msra.mxu0 %v4979_v30  ;;  %v5056_v27 = vld [vmem:[#allocation2 + $0x330] ss:$8 sps:$4 sm:$0xff]   ;;  %v5064_v29 = vld [vmem:[#allocation2 + $0x324] ss:$8 sps:$4 sm:$0xff]   ;;  %v5059_v30 = vld [vmem:[#allocation2 + $0x220] ss:$8 sps:$4 sm:$0xff]  }
  0x51   :  { %3410 = vmatpush1.bf16.msra.mxu1 %v4980_v31  ;;  %3368 = vmatprep.subr.bf16.mxu0 %v4981_v32  ;;  %v5062_v31 = vld [vmem:[#allocation2 + $0x320] ss:$8 sps:$4 sm:$0xff]   ;;  %v5067_v32 = vld [vmem:[#allocation2 + $0x214] ss:$8 sps:$4 sm:$0xff]   ;;  %v5077_v48 = vld [vmem:[#allocation2 + $0x2f0] ss:$8 sps:$4 sm:$0xff]  }
  0x52   :  { %3411 = vmatprep.subr.bf16.mxu1 %v4983_v33  ;;  %v5070_v33 = vld [vmem:[#allocation2 + $0x314] ss:$8 sps:$4 sm:$0xff]   ;;  %v5080_v49 = vld [vmem:[#allocation2 + $0x3f0] ss:$8 sps:$4 sm:$0xff]   ;;  %v5085_v50 = vld [vmem:[#allocation2 + $0x2e4] ss:$8 sps:$4 sm:$0xff]  }
  0x53   :  { %v5088_v51 = vld [vmem:[#allocation2 + $0x3e4] ss:$8 sps:$4 sm:$0xff]   ;;  %v5094_v55 = vld [vmem:[#allocation2 + $0x3d4] ss:$8 sps:$4 sm:$0xff]  }
  0x54   :  { %3369 = vmatpush2.bf16.msra.mxu0 %v4985_v34  ;;  %v5065_v34 = vld [vmem:[#allocation2 + $0x210] ss:$8 sps:$4 sm:$0xff]  }
  0x55   :  { %3412 = vmatpush2.bf16.msra.mxu1 %v4986_v35  ;;  %3370 = vmatprep.subr.bf16.mxu0 %v4987_v36  ;;  %v5068_v35 = vld [vmem:[#allocation2 + $0x310] ss:$8 sps:$4 sm:$0xff]  }
  0x56   :  { %3413 = vmatprep.subr.bf16.mxu1 %v4989_v37  ;;  %v5882_v36 = vld [vmem:[%s6146_s0 + $0x10] sm:$0xff] }
  0x57   :  { %v5887_v37 = vld [vmem:[%s6146_s0 + $0x90] sm:$0xff] }
  0x58   :  { %3371 = vmatpush2.bf16.msra.mxu0 %v4991_v38  ;;  %v5892_v38 = vld [vmem:[%s6146_s0 + $0x18] sm:$0xff] }
  0x59   :  { %3414 = vmatpush2.bf16.msra.mxu1 %v4992_v39  ;;  %3372 = vmatprep.subr.bf16.mxu0 %v4993_v40  ;;  %v5897_v39 = vld [vmem:[%s6146_s0 + $0x98] sm:$0xff]  ;;  %v5073_v40 = vld [vmem:[#allocation2 + $0x204] ss:$8 sps:$4 sm:$0xff]  }
  0x5a   :  { %3415 = vmatprep.subr.bf16.mxu1 %v4995_v41  ;;  %v4324_v41 = vcombine.high %v5882_v36, %v5887_v37 }
  0x5c   :  { %3373 = vmatpush2.bf16.msra.mxu0 %v4997_v42  ;;  %v5076_v42 = vld [vmem:[#allocation2 + $0x304] ss:$8 sps:$4 sm:$0xff]  }
  0x5d   :  { %3416 = vmatpush2.bf16.msra.mxu1 %v4998_v43  ;;  %3374 = vmatprep.subr.bf16.mxu0 %v4999_v44  ;;  %v4326_v43 = vcombine.high %v5892_v38, %v5897_v39  ;;  %v5071_v44 = vld [vmem:[#allocation2 + $0x200] ss:$8 sps:$4 sm:$0xff]  }
  0x5e   :  { %3417 = vmatprep.subr.bf16.mxu1 %v5001_v45  ;;  %v5074_v45 = vld [vmem:[#allocation2 + $0x300] ss:$8 sps:$4 sm:$0xff]  }
  0x60   :  { %3375 = vmatpush2.bf16.msra.mxu0 %v5003_v46  ;;  %v5079_v46 = vld [vmem:[#allocation2 + $0x2f4] ss:$8 sps:$4 sm:$0xff]  }
  0x61   :  { %3418 = vmatpush2.bf16.msra.mxu1 %v5004_v47  ;;  %3376 = vmatprep.subr.bf16.mxu0 %v5005_v52  ;;  %v5082_v47 = vld [vmem:[#allocation2 + $0x3f4] ss:$8 sps:$4 sm:$0xff]   ;;  %v5083_v52 = vld [vmem:[#allocation2 + $0x2e0] ss:$8 sps:$4 sm:$0xff]  }
  0x62   :  { %3419 = vmatprep.subr.bf16.mxu1 %v5007_v54  ;;  %v5091_v54 = vld [vmem:[#allocation2 + $0x2d4] ss:$8 sps:$4 sm:$0xff]  }
  0x64   :  { %3377 = vmatpush2.bf16.msra.mxu0 %v5009_v56  ;;  %v5089_v56 = vld [vmem:[#allocation2 + $0x2d0] ss:$8 sps:$4 sm:$0xff]  }
  0x65   :  { %3420 = vmatpush2.bf16.msra.mxu1 %v5010_v57  ;;  %3378 = vmatprep.subr.bf16.mxu0 %v5011_v58  ;;  %v5092_v57 = vld [vmem:[#allocation2 + $0x3d0] ss:$8 sps:$4 sm:$0xff]   ;;  %v5097_v58 = vld [vmem:[#allocation2 + $0x2c4] ss:$8 sps:$4 sm:$0xff]  }
  0x66   :  { %3421 = vmatprep.subr.bf16.mxu1 %v5013_v59  ;;  %v5100_v59 = vld [vmem:[#allocation2 + $0x3c4] ss:$8 sps:$4 sm:$0xff]  }
  0x68   :  { %3379 = vmatpush2.bf16.msra.mxu0 %v5015_v60  ;;  %v5095_v60 = vld [vmem:[#allocation2 + $0x2c0] ss:$8 sps:$4 sm:$0xff]  }
  0x69   :  { %3422 = vmatpush2.bf16.msra.mxu1 %v5016_v61  ;;  %3380 = vmatprep.subr.bf16.mxu0 %v5017_v62  ;;  %v5098_v61 = vld [vmem:[#allocation2 + $0x3c0] ss:$8 sps:$4 sm:$0xff]   ;;  %v5103_v62 = vld [vmem:[#allocation2 + $0x2b4] ss:$8 sps:$4 sm:$0xff]  }
  0x6a   :  { %3423 = vmatprep.subr.bf16.mxu1 %v5019_v63  ;;  %v5106_v63 = vld [vmem:[#allocation2 + $0x3b4] ss:$8 sps:$4 sm:$0xff]  }
  0x6c   :  { %3381 = vmatpush2.bf16.msra.mxu0 %v5021_v0  ;;  %v5101_v0 = vld [vmem:[#allocation2 + $0x2b0] ss:$8 sps:$4 sm:$0xff]  }
  0x6d   :  { %3424 = vmatpush2.bf16.msra.mxu1 %v5022_v1  ;;  %3382 = vmatprep.subr.bf16.mxu0 %v5023_v2  ;;  %v5104_v1 = vld [vmem:[#allocation2 + $0x3b0] ss:$8 sps:$4 sm:$0xff]   ;;  %v5109_v2 = vld [vmem:[#allocation2 + $0x2a4] ss:$8 sps:$4 sm:$0xff]  }
  0x6e   :  { %3425 = vmatprep.subr.bf16.mxu1 %v5025_v3  ;;  %v5112_v3 = vld [vmem:[#allocation2 + $0x3a4] ss:$8 sps:$4 sm:$0xff]  }
  0x70   :  { %3383 = vmatpush2.bf16.msra.mxu0 %v5027_v4  ;;  %v5107_v4 = vld [vmem:[#allocation2 + $0x2a0] ss:$8 sps:$4 sm:$0xff]  }
  0x71   :  { %3426 = vmatpush2.bf16.msra.mxu1 %v5028_v5  ;;  %3438 = vmatprep.subr.bf16.mxu0 %v5031_v6  ;;  %v5110_v5 = vld [vmem:[#allocation2 + $0x3a0] ss:$8 sps:$4 sm:$0xff]   ;;  %v5115_v6 = vld [vmem:[#allocation2 + $0x294] ss:$8 sps:$4 sm:$0xff]  }
  0x72   :  { %3481 = vmatprep.subr.bf16.mxu1 %v5034_v7  ;;  %v5118_v7 = vld [vmem:[#allocation2 + $0x394] ss:$8 sps:$4 sm:$0xff]  }
  0x73   :  { %3385 = vmatmul.mubr.bf16.vlgmr.msra.gmra.mxu0 %v4319_v8  ;;  %v5113_v8 = vld [vmem:[#allocation2 + $0x290] ss:$8 sps:$4 sm:$0xff]  }
  0x74   :  { %3428 = vmatmul.mubr.bf16.vlgmr.msra.gmra.mxu1 %v4321_v9  ;;  %3439 = vmatpush1.bf16.msra.mxu0 %v5029_v10  ;;  %v5116_v9 = vld [vmem:[#allocation2 + $0x390] ss:$8 sps:$4 sm:$0xff]   ;;  %v5121_v10 = vld [vmem:[#allocation2 + $0x284] ss:$8 sps:$4 sm:$0xff]  }
  0x75   :  { %3482 = vmatpush1.bf16.msra.mxu1 %v5032_v11  ;;  %3440 = vmatprep.subr.bf16.mxu0 %v5037_v12  ;;  %v5124_v11 = vld [vmem:[#allocation2 + $0x384] ss:$8 sps:$4 sm:$0xff]   ;;  %v5119_v12 = vld [vmem:[#allocation2 + $0x280] ss:$8 sps:$4 sm:$0xff]  }
  0x76   :  { %3483 = vmatprep.subr.bf16.mxu1 %v5040_v13  ;;  %3470 = vmatprep.mubr.bf16.mxu0 %v4324_v41  ;;  %v5122_v13 = vld [vmem:[#allocation2 + $0x380] ss:$8 sps:$4 sm:$0xff]   ;;  %v5152_v41 = vld [vmem:[#allocation2 + $0x530] ss:$8 sps:$4 sm:$0xff]  }
  0x77   :  { %3513 = vmatprep.mubr.bf16.mxu1 %v4326_v43  ;;  %v5160_v43 = vld [vmem:[#allocation2 + $0x524] ss:$8 sps:$4 sm:$0xff]  }
  0x78   :  { %3441 = vmatpush1.bf16.msra.mxu0 %v5035_v14  ;;  %v5127_v14 = vld [vmem:[#allocation2 + $0x474] ss:$8 sps:$4 sm:$0xff]  }
  0x79   :  { %3484 = vmatpush1.bf16.msra.mxu1 %v5038_v15  ;;  %3442 = vmatprep.subr.bf16.mxu0 %v5043_v16  ;;  %v5130_v15 = vld [vmem:[#allocation2 + $0x574] ss:$8 sps:$4 sm:$0xff]   ;;  %v4323_v16 = vcombine.low %v5882_v36, %v5887_v37  ;;  %v5143_v36 = vld [vmem:[#allocation2 + $0x440] ss:$8 sps:$4 sm:$0xff]  }
  0x7a   :  { %3485 = vmatprep.subr.bf16.mxu1 %v5046_v17  ;;  %v4325_v17 = vcombine.low %v5892_v38, %v5897_v39  ;;  %v5146_v37 = vld [vmem:[#allocation2 + $0x540] ss:$8 sps:$4 sm:$0xff]   ;;  %v5151_v38 = vld [vmem:[#allocation2 + $0x434] ss:$8 sps:$4 sm:$0xff]  }
  0x7b   :  { %v5154_v39 = vld [vmem:[#allocation2 + $0x534] ss:$8 sps:$4 sm:$0xff]  }
  0x7c   :  { %3443 = vmatpush1.bf16.msra.mxu0 %v5041_v18  ;;  %v5125_v18 = vld [vmem:[#allocation2 + $0x470] ss:$8 sps:$4 sm:$0xff]  }
  0x7d   :  { %3486 = vmatpush1.bf16.msra.mxu1 %v5044_v19  ;;  %3444 = vmatprep.subr.bf16.mxu0 %v5049_v20  ;;  %v5128_v19 = vld [vmem:[#allocation2 + $0x570] ss:$8 sps:$4 sm:$0xff]   ;;  %v5133_v20 = vld [vmem:[#allocation2 + $0x464] ss:$8 sps:$4 sm:$0xff]  }
  0x7e   :  { %3487 = vmatprep.subr.bf16.mxu1 %v5052_v21  ;;  %v5136_v21 = vld [vmem:[#allocation2 + $0x564] ss:$8 sps:$4 sm:$0xff]  }
  0x80   :  { %3445 = vmatpush1.bf16.msra.mxu0 %v5047_v22  ;;  %v5131_v22 = vld [vmem:[#allocation2 + $0x460] ss:$8 sps:$4 sm:$0xff]  }
  0x81   :  { %3488 = vmatpush1.bf16.msra.mxu1 %v5050_v23  ;;  %3446 = vmatprep.subr.bf16.mxu0 %v5055_v24  ;;  %v5134_v23 = vld [vmem:[#allocation2 + $0x560] ss:$8 sps:$4 sm:$0xff]  }
  0x82   :  { %3489 = vmatprep.subr.bf16.mxu1 %v5058_v25  ;;  %v5910_v24 = vld [vmem:[%s6146_s0 + $0x20] sm:$0xff] }
  0x83   :  { %v5915_v25 = vld [vmem:[%s6146_s0 + $0xa0] sm:$0xff] }
  0x84   :  { %3447 = vmatpush1.bf16.msra.mxu0 %v5053_v26  ;;  %v5920_v26 = vld [vmem:[%s6146_s0 + $0x28] sm:$0xff] }
  0x85   :  { %3490 = vmatpush1.bf16.msra.mxu1 %v5056_v27  ;;  %3448 = vmatprep.subr.bf16.mxu0 %v5061_v28  ;;  %v5925_v27 = vld [vmem:[%s6146_s0 + $0xa8] sm:$0xff]  ;;  %v5139_v28 = vld [vmem:[#allocation2 + $0x454] ss:$8 sps:$4 sm:$0xff]  }
  0x86   :  { %3491 = vmatprep.subr.bf16.mxu1 %v5064_v29  ;;  %v4328_v29 = vcombine.high %v5910_v24, %v5915_v25 }
  0x88   :  { %3449 = vmatpush1.bf16.msra.mxu0 %v5059_v30  ;;  %v5142_v30 = vld [vmem:[#allocation2 + $0x554] ss:$8 sps:$4 sm:$0xff]  }
  0x89   :  { %3492 = vmatpush1.bf16.msra.mxu1 %v5062_v31  ;;  %3450 = vmatprep.subr.bf16.mxu0 %v5067_v32  ;;  %v4330_v31 = vcombine.high %v5920_v26, %v5925_v27  ;;  %v5137_v32 = vld [vmem:[#allocation2 + $0x450] ss:$8 sps:$4 sm:$0xff]  }
  0x8a   :  { %3493 = vmatprep.subr.bf16.mxu1 %v5070_v33  ;;  %v5140_v33 = vld [vmem:[#allocation2 + $0x550] ss:$8 sps:$4 sm:$0xff]  }
  0x8c   :  { %3451 = vmatpush1.bf16.msra.mxu0 %v5065_v34  ;;  %v5145_v34 = vld [vmem:[#allocation2 + $0x444] ss:$8 sps:$4 sm:$0xff]  }
  0x8d   :  { %3494 = vmatpush1.bf16.msra.mxu1 %v5068_v35  ;;  %3452 = vmatprep.subr.bf16.mxu0 %v5073_v40  ;;  %v5148_v35 = vld [vmem:[#allocation2 + $0x544] ss:$8 sps:$4 sm:$0xff]   ;;  %v5149_v40 = vld [vmem:[#allocation2 + $0x430] ss:$8 sps:$4 sm:$0xff]  }
  0x8e   :  { %3495 = vmatprep.subr.bf16.mxu1 %v5076_v42  ;;  %v5157_v42 = vld [vmem:[#allocation2 + $0x424] ss:$8 sps:$4 sm:$0xff]  }
  0x90   :  { %3453 = vmatpush1.bf16.msra.mxu0 %v5071_v44  ;;  %v5155_v44 = vld [vmem:[#allocation2 + $0x420] ss:$8 sps:$4 sm:$0xff]  }
  0x91   :  { %3496 = vmatpush1.bf16.msra.mxu1 %v5074_v45  ;;  %3454 = vmatprep.subr.bf16.mxu0 %v5079_v46  ;;  %v5158_v45 = vld [vmem:[#allocation2 + $0x520] ss:$8 sps:$4 sm:$0xff]   ;;  %v5163_v46 = vld [vmem:[#allocation2 + $0x414] ss:$8 sps:$4 sm:$0xff]  }
  0x92   :  { %3497 = vmatprep.subr.bf16.mxu1 %v5082_v47  ;;  %v5166_v47 = vld [vmem:[#allocation2 + $0x514] ss:$8 sps:$4 sm:$0xff]  }
  0x94   :  { %3455 = vmatpush2.bf16.msra.mxu0 %v5077_v48  ;;  %v5161_v48 = vld [vmem:[#allocation2 + $0x410] ss:$8 sps:$4 sm:$0xff]  }
  0x95   :  { %3498 = vmatpush2.bf16.msra.mxu1 %v5080_v49  ;;  %3456 = vmatprep.subr.bf16.mxu0 %v5085_v50  ;;  %v5164_v49 = vld [vmem:[#allocation2 + $0x510] ss:$8 sps:$4 sm:$0xff]   ;;  %v5169_v50 = vld [vmem:[#allocation2 + $0x404] ss:$8 sps:$4 sm:$0xff]  }
  0x96   :  { %3499 = vmatprep.subr.bf16.mxu1 %v5088_v51  ;;  %v5172_v51 = vld [vmem:[#allocation2 + $0x504] ss:$8 sps:$4 sm:$0xff]  }
  0x98   :  { %3457 = vmatpush2.bf16.msra.mxu0 %v5083_v52  ;;  %v5167_v52 = vld [vmem:[#allocation2 + $0x400] ss:$8 sps:$4 sm:$0xff]  }
  0x99   :  { %3500 = vmatpush2.bf16.msra.mxu1 %v5086_v53  ;;  %3458 = vmatprep.subr.bf16.mxu0 %v5091_v54  ;;  %v5170_v53 = vld [vmem:[#allocation2 + $0x500] ss:$8 sps:$4 sm:$0xff]   ;;  %v5175_v54 = vld [vmem:[#allocation2 + $0x4f4] ss:$8 sps:$4 sm:$0xff]  }
  0x9a   :  { %3501 = vmatprep.subr.bf16.mxu1 %v5094_v55  ;;  %v5178_v55 = vld [vmem:[#allocation2 + $0x5f4] ss:$8 sps:$4 sm:$0xff]  }
  0x9c   :  { %3459 = vmatpush2.bf16.msra.mxu0 %v5089_v56  ;;  %v5173_v56 = vld [vmem:[#allocation2 + $0x4f0] ss:$8 sps:$4 sm:$0xff]  }
  0x9d   :  { %3502 = vmatpush2.bf16.msra.mxu1 %v5092_v57  ;;  %3460 = vmatprep.subr.bf16.mxu0 %v5097_v58  ;;  %v5176_v57 = vld [vmem:[#allocation2 + $0x5f0] ss:$8 sps:$4 sm:$0xff]   ;;  %v5181_v58 = vld [vmem:[#allocation2 + $0x4e4] ss:$8 sps:$4 sm:$0xff]  }
  0x9e   :  { %3503 = vmatprep.subr.bf16.mxu1 %v5100_v59  ;;  %v5184_v59 = vld [vmem:[#allocation2 + $0x5e4] ss:$8 sps:$4 sm:$0xff]  }
  0xa0   :  { %3461 = vmatpush2.bf16.msra.mxu0 %v5095_v60  ;;  %v5179_v60 = vld [vmem:[#allocation2 + $0x4e0] ss:$8 sps:$4 sm:$0xff]  }
  0xa1   :  { %3504 = vmatpush2.bf16.msra.mxu1 %v5098_v61  ;;  %3462 = vmatprep.subr.bf16.mxu0 %v5103_v62  ;;  %v5182_v61 = vld [vmem:[#allocation2 + $0x5e0] ss:$8 sps:$4 sm:$0xff]   ;;  %v5187_v62 = vld [vmem:[#allocation2 + $0x4d4] ss:$8 sps:$4 sm:$0xff]  }
  0xa2   :  { %3505 = vmatprep.subr.bf16.mxu1 %v5106_v63  ;;  %v5190_v63 = vld [vmem:[#allocation2 + $0x5d4] ss:$8 sps:$4 sm:$0xff]  }
  0xa4   :  { %3463 = vmatpush2.bf16.msra.mxu0 %v5101_v0  ;;  %v5185_v0 = vld [vmem:[#allocation2 + $0x4d0] ss:$8 sps:$4 sm:$0xff]  }
  0xa5   :  { %3506 = vmatpush2.bf16.msra.mxu1 %v5104_v1  ;;  %3464 = vmatprep.subr.bf16.mxu0 %v5109_v2  ;;  %v5188_v1 = vld [vmem:[#allocation2 + $0x5d0] ss:$8 sps:$4 sm:$0xff]   ;;  %v5193_v2 = vld [vmem:[#allocation2 + $0x4c4] ss:$8 sps:$4 sm:$0xff]  }
  0xa6   :  { %3507 = vmatprep.subr.bf16.mxu1 %v5112_v3  ;;  %v5196_v3 = vld [vmem:[#allocation2 + $0x5c4] ss:$8 sps:$4 sm:$0xff]  }
  0xa8   :  { %3465 = vmatpush2.bf16.msra.mxu0 %v5107_v4  ;;  %v5191_v4 = vld [vmem:[#allocation2 + $0x4c0] ss:$8 sps:$4 sm:$0xff]  }
  0xa9   :  { %3508 = vmatpush2.bf16.msra.mxu1 %v5110_v5  ;;  %3466 = vmatprep.subr.bf16.mxu0 %v5115_v6  ;;  %v5194_v5 = vld [vmem:[#allocation2 + $0x5c0] ss:$8 sps:$4 sm:$0xff]   ;;  %v5199_v6 = vld [vmem:[#allocation2 + $0x4b4] ss:$8 sps:$4 sm:$0xff]  }
  0xaa   :  { %3509 = vmatprep.subr.bf16.mxu1 %v5118_v7  ;;  %v5202_v7 = vld [vmem:[#allocation2 + $0x5b4] ss:$8 sps:$4 sm:$0xff]  }
  0xac   :  { %3467 = vmatpush2.bf16.msra.mxu0 %v5113_v8  ;;  %v5197_v8 = vld [vmem:[#allocation2 + $0x4b0] ss:$8 sps:$4 sm:$0xff]  }
  0xad   :  { %3510 = vmatpush2.bf16.msra.mxu1 %v5116_v9  ;;  %3468 = vmatprep.subr.bf16.mxu0 %v5121_v10  ;;  %v5200_v9 = vld [vmem:[#allocation2 + $0x5b0] ss:$8 sps:$4 sm:$0xff]   ;;  %v5205_v10 = vld [vmem:[#allocation2 + $0x4a4] ss:$8 sps:$4 sm:$0xff]  }
  0xae   :  { %3511 = vmatprep.subr.bf16.mxu1 %v5124_v11  ;;  %v5208_v11 = vld [vmem:[#allocation2 + $0x5a4] ss:$8 sps:$4 sm:$0xff]  }
  0xb0   :  { %3469 = vmatpush2.bf16.msra.mxu0 %v5119_v12  ;;  %v5203_v12 = vld [vmem:[#allocation2 + $0x4a0] ss:$8 sps:$4 sm:$0xff]  }
  0xb1   :  { %3512 = vmatpush2.bf16.msra.mxu1 %v5122_v13  ;;  %3524 = vmatprep.subr.bf16.mxu0 %v5127_v14  ;;  %v5206_v13 = vld [vmem:[#allocation2 + $0x5a0] ss:$8 sps:$4 sm:$0xff]   ;;  %v5211_v14 = vld [vmem:[#allocation2 + $0x494] ss:$8 sps:$4 sm:$0xff]  }
  0xb2   :  { %3567 = vmatprep.subr.bf16.mxu1 %v5130_v15  ;;  %v5214_v15 = vld [vmem:[#allocation2 + $0x594] ss:$8 sps:$4 sm:$0xff]  }
  0xb3   :  { %3471 = vmatmul.mubr.bf16.vlgmr.msra.gmra.mxu0 %v4323_v16  ;;  %v5209_v16 = vld [vmem:[#allocation2 + $0x490] ss:$8 sps:$4 sm:$0xff]  }
  0xb4   :  { %3514 = vmatmul.mubr.bf16.vlgmr.msra.gmra.mxu1 %v4325_v17  ;;  %3525 = vmatpush1.bf16.msra.mxu0 %v5125_v18  ;;  %v5212_v17 = vld [vmem:[#allocation2 + $0x590] ss:$8 sps:$4 sm:$0xff]   ;;  %v5217_v18 = vld [vmem:[#allocation2 + $0x484] ss:$8 sps:$4 sm:$0xff]  }
  0xb5   :  { %3568 = vmatpush1.bf16.msra.mxu1 %v5128_v19  ;;  %3526 = vmatprep.subr.bf16.mxu0 %v5133_v20  ;;  %v5220_v19 = vld [vmem:[#allocation2 + $0x584] ss:$8 sps:$4 sm:$0xff]   ;;  %v5215_v20 = vld [vmem:[#allocation2 + $0x480] ss:$8 sps:$4 sm:$0xff]  }
  0xb6   :  { %3569 = vmatprep.subr.bf16.mxu1 %v5136_v21  ;;  %3556 = vmatprep.mubr.bf16.mxu0 %v4328_v29  ;;  %v5218_v21 = vld [vmem:[#allocation2 + $0x580] ss:$8 sps:$4 sm:$0xff]   ;;  %v5221_v29 = vld [vmem:[#allocation2 + $0x670] ss:$8 sps:$4 sm:$0xff]  }
  0xb7   :  { %3599 = vmatprep.mubr.bf16.mxu1 %v4330_v31  ;;  %v5944_v31 = vld [vmem:[%s6146_s0 + $0x38] sm:$0xff] }
  0xb8   :  { %3527 = vmatpush1.bf16.msra.mxu0 %v5131_v22  ;;  %v5223_v22 = vld [vmem:[#allocation2 + $0x674] ss:$8 sps:$4 sm:$0xff]  }
  0xb9   :  { %3570 = vmatpush1.bf16.msra.mxu1 %v5134_v23  ;;  %3528 = vmatprep.subr.bf16.mxu0 %v5139_v28  ;;  %v5226_v23 = vld [vmem:[#allocation2 + $0x774] ss:$8 sps:$4 sm:$0xff]  }
  0xba   :  { %3571 = vmatprep.subr.bf16.mxu1 %v5142_v30  ;;  %v5934_v28 = vld [vmem:[%s6146_s0 + $0x30] sm:$0xff] }
  0xbb   :  { %v5939_v30 = vld [vmem:[%s6146_s0 + $0xb0] sm:$0xff] }
  0xbc   :  { %3529 = vmatpush1.bf16.msra.mxu0 %v5137_v32  ;;  %v4327_v32 = vcombine.low %v5910_v24, %v5915_v25  ;;  %v5227_v25 = vld [vmem:[#allocation2 + $0x660] ss:$8 sps:$4 sm:$0xff]  }
  0xbd   :  { %3572 = vmatpush1.bf16.msra.mxu1 %v5140_v33  ;;  %3530 = vmatprep.subr.bf16.mxu0 %v5145_v34  ;;  %v4329_v33 = vcombine.low %v5920_v26, %v5925_v27  ;;  %v5953_v34 = vld [vmem:[%s6146_s0 + $0xb8] sm:$0xff]  ;;  %v5230_v26 = vld [vmem:[#allocation2 + $0x760] ss:$8 sps:$4 sm:$0xff]  }
  0xbe   :  { %3573 = vmatprep.subr.bf16.mxu1 %v5148_v35  ;;  %v5224_v35 = vld [vmem:[#allocation2 + $0x770] ss:$8 sps:$4 sm:$0xff]   ;;  %v4334_v24 = vcombine.high %v5944_v31, %v5953_v34  ;;  %v5235_v27 = vld [vmem:[#allocation2 + $0x654] ss:$8 sps:$4 sm:$0xff]  }
  0xc0   :  { %3531 = vmatpush1.bf16.msra.mxu0 %v5143_v36  ;;  %v5229_v36 = vld [vmem:[#allocation2 + $0x664] ss:$8 sps:$4 sm:$0xff]  }
  0xc1   :  { %3574 = vmatpush1.bf16.msra.mxu1 %v5146_v37  ;;  %3532 = vmatprep.subr.bf16.mxu0 %v5151_v38  ;;  %v5232_v37 = vld [vmem:[#allocation2 + $0x764] ss:$8 sps:$4 sm:$0xff]   ;;  %v4332_v38 = vcombine.high %v5934_v28, %v5939_v30 }
  0xc2   :  { %3575 = vmatprep.subr.bf16.mxu1 %v5154_v39  ;;  %v5238_v39 = vld [vmem:[#allocation2 + $0x754] ss:$8 sps:$4 sm:$0xff]  }
  0xc4   :  { %3533 = vmatpush1.bf16.msra.mxu0 %v5149_v40  ;;  %v5233_v40 = vld [vmem:[#allocation2 + $0x650] ss:$8 sps:$4 sm:$0xff]  }
  0xc5   :  { %3576 = vmatpush1.bf16.msra.mxu1 %v5152_v41  ;;  %3534 = vmatprep.subr.bf16.mxu0 %v5157_v42  ;;  %v5236_v41 = vld [vmem:[#allocation2 + $0x750] ss:$8 sps:$4 sm:$0xff]   ;;  %v5241_v42 = vld [vmem:[#allocation2 + $0x644] ss:$8 sps:$4 sm:$0xff]  }
  0xc6   :  { %3577 = vmatprep.subr.bf16.mxu1 %v5160_v43  ;;  %v5244_v43 = vld [vmem:[#allocation2 + $0x744] ss:$8 sps:$4 sm:$0xff]  }
  0xc8   :  { %3535 = vmatpush1.bf16.msra.mxu0 %v5155_v44  ;;  %v5239_v44 = vld [vmem:[#allocation2 + $0x640] ss:$8 sps:$4 sm:$0xff]  }
  0xc9   :  { %3578 = vmatpush1.bf16.msra.mxu1 %v5158_v45  ;;  %3536 = vmatprep.subr.bf16.mxu0 %v5163_v46  ;;  %v5242_v45 = vld [vmem:[#allocation2 + $0x740] ss:$8 sps:$4 sm:$0xff]   ;;  %v5247_v46 = vld [vmem:[#allocation2 + $0x634] ss:$8 sps:$4 sm:$0xff]  }
  0xca   :  { %3579 = vmatprep.subr.bf16.mxu1 %v5166_v47  ;;  %v5250_v47 = vld [vmem:[#allocation2 + $0x734] ss:$8 sps:$4 sm:$0xff]  }
  0xcc   :  { %3537 = vmatpush1.bf16.msra.mxu0 %v5161_v48  ;;  %v5245_v48 = vld [vmem:[#allocation2 + $0x630] ss:$8 sps:$4 sm:$0xff]  }
  0xcd   :  { %3580 = vmatpush1.bf16.msra.mxu1 %v5164_v49  ;;  %3538 = vmatprep.subr.bf16.mxu0 %v5169_v50  ;;  %v5248_v49 = vld [vmem:[#allocation2 + $0x730] ss:$8 sps:$4 sm:$0xff]   ;;  %v5253_v50 = vld [vmem:[#allocation2 + $0x624] ss:$8 sps:$4 sm:$0xff]  }
  0xce   :  { %3581 = vmatprep.subr.bf16.mxu1 %v5172_v51  ;;  %v5256_v51 = vld [vmem:[#allocation2 + $0x724] ss:$8 sps:$4 sm:$0xff]  }
  0xd0   :  { %3539 = vmatpush1.bf16.msra.mxu0 %v5167_v52  ;;  %v5251_v52 = vld [vmem:[#allocation2 + $0x620] ss:$8 sps:$4 sm:$0xff]  }
  0xd1   :  { %3582 = vmatpush1.bf16.msra.mxu1 %v5170_v53  ;;  %3540 = vmatprep.subr.bf16.mxu0 %v5175_v54  ;;  %v5254_v53 = vld [vmem:[#allocation2 + $0x720] ss:$8 sps:$4 sm:$0xff]   ;;  %v5259_v54 = vld [vmem:[#allocation2 + $0x614] ss:$8 sps:$4 sm:$0xff]  }
  0xd2   :  { %3583 = vmatprep.subr.bf16.mxu1 %v5178_v55  ;;  %v5262_v55 = vld [vmem:[#allocation2 + $0x714] ss:$8 sps:$4 sm:$0xff]  }
  0xd4   :  { %3541 = vmatpush2.bf16.msra.mxu0 %v5173_v56  ;;  %v5257_v56 = vld [vmem:[#allocation2 + $0x610] ss:$8 sps:$4 sm:$0xff]  }
  0xd5   :  { %3584 = vmatpush2.bf16.msra.mxu1 %v5176_v57  ;;  %3542 = vmatprep.subr.bf16.mxu0 %v5181_v58  ;;  %v5260_v57 = vld [vmem:[#allocation2 + $0x710] ss:$8 sps:$4 sm:$0xff]   ;;  %v5265_v58 = vld [vmem:[#allocation2 + $0x604] ss:$8 sps:$4 sm:$0xff]  }
  0xd6   :  { %3585 = vmatprep.subr.bf16.mxu1 %v5184_v59  ;;  %v5268_v59 = vld [vmem:[#allocation2 + $0x704] ss:$8 sps:$4 sm:$0xff]  }
  0xd8   :  { %3543 = vmatpush2.bf16.msra.mxu0 %v5179_v60  ;;  %v5263_v60 = vld [vmem:[#allocation2 + $0x600] ss:$8 sps:$4 sm:$0xff]  }
  0xd9   :  { %3586 = vmatpush2.bf16.msra.mxu1 %v5182_v61  ;;  %3544 = vmatprep.subr.bf16.mxu0 %v5187_v62  ;;  %v5266_v61 = vld [vmem:[#allocation2 + $0x700] ss:$8 sps:$4 sm:$0xff]   ;;  %v5271_v62 = vld [vmem:[#allocation2 + $0x6f4] ss:$8 sps:$4 sm:$0xff]  }
  0xda   :  { %3587 = vmatprep.subr.bf16.mxu1 %v5190_v63  ;;  %v5274_v63 = vld [vmem:[#allocation2 + $0x7f4] ss:$8 sps:$4 sm:$0xff]  }
  0xdc   :  { %3545 = vmatpush2.bf16.msra.mxu0 %v5185_v0  ;;  %v5269_v0 = vld [vmem:[#allocation2 + $0x6f0] ss:$8 sps:$4 sm:$0xff]  }
  0xdd   :  { %3588 = vmatpush2.bf16.msra.mxu1 %v5188_v1  ;;  %3546 = vmatprep.subr.bf16.mxu0 %v5193_v2  ;;  %v5272_v1 = vld [vmem:[#allocation2 + $0x7f0] ss:$8 sps:$4 sm:$0xff]   ;;  %v5277_v2 = vld [vmem:[#allocation2 + $0x6e4] ss:$8 sps:$4 sm:$0xff]  }
  0xde   :  { %3589 = vmatprep.subr.bf16.mxu1 %v5196_v3  ;;  %v5280_v3 = vld [vmem:[#allocation2 + $0x7e4] ss:$8 sps:$4 sm:$0xff]  }
  0xe0   :  { %3547 = vmatpush2.bf16.msra.mxu0 %v5191_v4  ;;  %v5275_v4 = vld [vmem:[#allocation2 + $0x6e0] ss:$8 sps:$4 sm:$0xff]  }
  0xe1   :  { %3590 = vmatpush2.bf16.msra.mxu1 %v5194_v5  ;;  %3548 = vmatprep.subr.bf16.mxu0 %v5199_v6  ;;  %v5278_v5 = vld [vmem:[#allocation2 + $0x7e0] ss:$8 sps:$4 sm:$0xff]   ;;  %v5283_v6 = vld [vmem:[#allocation2 + $0x6d4] ss:$8 sps:$4 sm:$0xff]  }
  0xe2   :  { %3591 = vmatprep.subr.bf16.mxu1 %v5202_v7  ;;  %v5286_v7 = vld [vmem:[#allocation2 + $0x7d4] ss:$8 sps:$4 sm:$0xff]  }
  0xe4   :  { %3549 = vmatpush2.bf16.msra.mxu0 %v5197_v8  ;;  %v5281_v8 = vld [vmem:[#allocation2 + $0x6d0] ss:$8 sps:$4 sm:$0xff]  }
  0xe5   :  { %3592 = vmatpush2.bf16.msra.mxu1 %v5200_v9  ;;  %3550 = vmatprep.subr.bf16.mxu0 %v5205_v10  ;;  %v5284_v9 = vld [vmem:[#allocation2 + $0x7d0] ss:$8 sps:$4 sm:$0xff]   ;;  %v5289_v10 = vld [vmem:[#allocation2 + $0x6c4] ss:$8 sps:$4 sm:$0xff]  }
  0xe6   :  { %3593 = vmatprep.subr.bf16.mxu1 %v5208_v11  ;;  %v5292_v11 = vld [vmem:[#allocation2 + $0x7c4] ss:$8 sps:$4 sm:$0xff]  }
  0xe8   :  { %3551 = vmatpush2.bf16.msra.mxu0 %v5203_v12  ;;  %v5287_v12 = vld [vmem:[#allocation2 + $0x6c0] ss:$8 sps:$4 sm:$0xff]  }
  0xe9   :  { %3594 = vmatpush2.bf16.msra.mxu1 %v5206_v13  ;;  %3552 = vmatprep.subr.bf16.mxu0 %v5211_v14  ;;  %v5290_v13 = vld [vmem:[#allocation2 + $0x7c0] ss:$8 sps:$4 sm:$0xff]   ;;  %v5295_v14 = vld [vmem:[#allocation2 + $0x6b4] ss:$8 sps:$4 sm:$0xff]  }
  0xea   :  { %3595 = vmatprep.subr.bf16.mxu1 %v5214_v15  ;;  %v5298_v15 = vld [vmem:[#allocation2 + $0x7b4] ss:$8 sps:$4 sm:$0xff]  }
  0xec   :  { %3553 = vmatpush2.bf16.msra.mxu0 %v5209_v16  ;;  %v5293_v16 = vld [vmem:[#allocation2 + $0x6b0] ss:$8 sps:$4 sm:$0xff]  }
  0xed   :  { %3596 = vmatpush2.bf16.msra.mxu1 %v5212_v17  ;;  %3554 = vmatprep.subr.bf16.mxu0 %v5217_v18  ;;  %v5296_v17 = vld [vmem:[#allocation2 + $0x7b0] ss:$8 sps:$4 sm:$0xff]   ;;  %v5301_v18 = vld [vmem:[#allocation2 + $0x6a4] ss:$8 sps:$4 sm:$0xff]  }
  0xee   :  { %3597 = vmatprep.subr.bf16.mxu1 %v5220_v19  ;;  %v5304_v19 = vld [vmem:[#allocation2 + $0x7a4] ss:$8 sps:$4 sm:$0xff]  }
  0xf0   :  { %3555 = vmatpush2.bf16.msra.mxu0 %v5215_v20  ;;  %v5299_v20 = vld [vmem:[#allocation2 + $0x6a0] ss:$8 sps:$4 sm:$0xff]  }
  0xf1   :  { %3598 = vmatpush2.bf16.msra.mxu1 %v5218_v21  ;;  %3610 = vmatprep.subr.bf16.mxu0 %v5223_v22  ;;  %v5302_v21 = vld [vmem:[#allocation2 + $0x7a0] ss:$8 sps:$4 sm:$0xff]   ;;  %v5307_v22 = vld [vmem:[#allocation2 + $0x694] ss:$8 sps:$4 sm:$0xff]  }
  0xf2   :  { %3653 = vmatprep.subr.bf16.mxu1 %v5226_v23  ;;  %v5310_v23 = vld [vmem:[#allocation2 + $0x794] ss:$8 sps:$4 sm:$0xff]  }
  0xf3   :  { %3557 = vmatmul.mubr.bf16.vlgmr.msra.gmra.mxu0 %v4327_v32  ;;  %v5308_v32 = vld [vmem:[#allocation2 + $0x790] ss:$8 sps:$4 sm:$0xff]  }
  0xf4   :  { %3600 = vmatmul.mubr.bf16.vlgmr.msra.gmra.mxu1 %v4329_v33  ;;  %3611 = vmatpush1.bf16.msra.mxu0 %v5221_v29  ;;  %v5305_v29 = vld [vmem:[#allocation2 + $0x690] ss:$8 sps:$4 sm:$0xff]   ;;  %v5313_v33 = vld [vmem:[#allocation2 + $0x684] ss:$8 sps:$4 sm:$0xff]  }
  0xf5   :  { %3654 = vmatpush1.bf16.msra.mxu1 %v5224_v35  ;;  %3612 = vmatprep.subr.bf16.mxu0 %v5229_v36  ;;  %v5316_v35 = vld [vmem:[#allocation2 + $0x784] ss:$8 sps:$4 sm:$0xff]   ;;  %v5311_v36 = vld [vmem:[#allocation2 + $0x680] ss:$8 sps:$4 sm:$0xff]  }
  0xf6   :  { %3655 = vmatprep.subr.bf16.mxu1 %v5232_v37  ;;  %3642 = vmatprep.mubr.bf16.mxu0 %v4332_v38  ;;  %v5314_v37 = vld [vmem:[#allocation2 + $0x780] ss:$8 sps:$4 sm:$0xff]   ;;  %v5319_v38 = vld [vmem:[#allocation2 + $0x874] ss:$8 sps:$4 sm:$0xff]  }
  0xf7   :  { %3685 = vmatprep.mubr.bf16.mxu1 %v4334_v24  ;;  %v5322_v24 = vld [vmem:[#allocation2 + $0x974] ss:$8 sps:$4 sm:$0xff]  }
  0xf8   :  { %3613 = vmatpush1.bf16.msra.mxu0 %v5227_v25  ;;  %v5962_v25 = vld [vmem:[%s6146_s0 + $0x40] sm:$0xff] }
  0xf9   :  { %3656 = vmatpush1.bf16.msra.mxu1 %v5230_v26  ;;  %3614 = vmatprep.subr.bf16.mxu0 %v5235_v27  ;;  %v5317_v26 = vld [vmem:[#allocation2 + $0x870] ss:$8 sps:$4 sm:$0xff]   ;;  %v5967_v27 = vld [vmem:[%s6146_s0 + $0xc0] sm:$0xff] }
  0xfa   :  { %3657 = vmatprep.subr.bf16.mxu1 %v5238_v39  ;;  %v5972_v39 = vld [vmem:[%s6146_s0 + $0x48] sm:$0xff] }
  0xfc   :  { %3615 = vmatpush1.bf16.msra.mxu0 %v5233_v40  ;;  %v4331_v40 = vcombine.low %v5934_v28, %v5939_v30  ;;  %v5323_v30 = vld [vmem:[#allocation2 + $0x860] ss:$8 sps:$4 sm:$0xff]  }
  0xfd   :  { %3658 = vmatpush1.bf16.msra.mxu1 %v5236_v41  ;;  %3616 = vmatprep.subr.bf16.mxu0 %v5241_v42  ;;  %v4333_v41 = vcombine.low %v5944_v31, %v5953_v34  ;;  %v5981_v42 = vld [vmem:[%s6146_s0 + $0xc8] sm:$0xff]  ;;  %v5331_v34 = vld [vmem:[#allocation2 + $0x854] ss:$8 sps:$4 sm:$0xff]  }
  0xfe   :  { %3659 = vmatprep.subr.bf16.mxu1 %v5244_v43  ;;  %v5320_v43 = vld [vmem:[#allocation2 + $0x970] ss:$8 sps:$4 sm:$0xff]   ;;  %v4338_v28 = vcombine.high %v5972_v39, %v5981_v42  ;;  %v5326_v31 = vld [vmem:[#allocation2 + $0x960] ss:$8 sps:$4 sm:$0xff]  }
 0x100   :  { %3617 = vmatpush1.bf16.msra.mxu0 %v5239_v44  ;;  %v5325_v44 = vld [vmem:[#allocation2 + $0x864] ss:$8 sps:$4 sm:$0xff]  }
 0x101   :  { %3660 = vmatpush1.bf16.msra.mxu1 %v5242_v45  ;;  %3618 = vmatprep.subr.bf16.mxu0 %v5247_v46  ;;  %v5328_v45 = vld [vmem:[#allocation2 + $0x964] ss:$8 sps:$4 sm:$0xff]   ;;  %v4336_v46 = vcombine.high %v5962_v25, %v5967_v27 }
 0x102   :  { %3661 = vmatprep.subr.bf16.mxu1 %v5250_v47  ;;  %v5334_v47 = vld [vmem:[#allocation2 + $0x954] ss:$8 sps:$4 sm:$0xff]  }
 0x104   :  { %3619 = vmatpush1.bf16.msra.mxu0 %v5245_v48  ;;  %v5329_v48 = vld [vmem:[#allocation2 + $0x850] ss:$8 sps:$4 sm:$0xff]  }
 0x105   :  { %3662 = vmatpush1.bf16.msra.mxu1 %v5248_v49  ;;  %3620 = vmatprep.subr.bf16.mxu0 %v5253_v50  ;;  %v5332_v49 = vld [vmem:[#allocation2 + $0x950] ss:$8 sps:$4 sm:$0xff]   ;;  %v5337_v50 = vld [vmem:[#allocation2 + $0x844] ss:$8 sps:$4 sm:$0xff]  }
 0x106   :  { %3663 = vmatprep.subr.bf16.mxu1 %v5256_v51  ;;  %v5340_v51 = vld [vmem:[#allocation2 + $0x944] ss:$8 sps:$4 sm:$0xff]  }
 0x108   :  { %3621 = vmatpush1.bf16.msra.mxu0 %v5251_v52  ;;  %v5335_v52 = vld [vmem:[#allocation2 + $0x840] ss:$8 sps:$4 sm:$0xff]  }
 0x109   :  { %3664 = vmatpush1.bf16.msra.mxu1 %v5254_v53  ;;  %3622 = vmatprep.subr.bf16.mxu0 %v5259_v54  ;;  %v5338_v53 = vld [vmem:[#allocation2 + $0x940] ss:$8 sps:$4 sm:$0xff]   ;;  %v5343_v54 = vld [vmem:[#allocation2 + $0x834] ss:$8 sps:$4 sm:$0xff]  }
 0x10a   :  { %3665 = vmatprep.subr.bf16.mxu1 %v5262_v55  ;;  %v5346_v55 = vld [vmem:[#allocation2 + $0x934] ss:$8 sps:$4 sm:$0xff]  }
 0x10c   :  { %3623 = vmatpush1.bf16.msra.mxu0 %v5257_v56  ;;  %v5341_v56 = vld [vmem:[#allocation2 + $0x830] ss:$8 sps:$4 sm:$0xff]  }
 0x10d   :  { %3666 = vmatpush1.bf16.msra.mxu1 %v5260_v57  ;;  %3624 = vmatprep.subr.bf16.mxu0 %v5265_v58  ;;  %v5344_v57 = vld [vmem:[#allocation2 + $0x930] ss:$8 sps:$4 sm:$0xff]   ;;  %v5349_v58 = vld [vmem:[#allocation2 + $0x824] ss:$8 sps:$4 sm:$0xff]  }
 0x10e   :  { %3667 = vmatprep.subr.bf16.mxu1 %v5268_v59  ;;  %v5352_v59 = vld [vmem:[#allocation2 + $0x924] ss:$8 sps:$4 sm:$0xff]  }
 0x110   :  { %3625 = vmatpush1.bf16.msra.mxu0 %v5263_v60  ;;  %v5347_v60 = vld [vmem:[#allocation2 + $0x820] ss:$8 sps:$4 sm:$0xff]  }
 0x111   :  { %3668 = vmatpush1.bf16.msra.mxu1 %v5266_v61  ;;  %3626 = vmatprep.subr.bf16.mxu0 %v5271_v62  ;;  %v5350_v61 = vld [vmem:[#allocation2 + $0x920] ss:$8 sps:$4 sm:$0xff]   ;;  %v5355_v62 = vld [vmem:[#allocation2 + $0x814] ss:$8 sps:$4 sm:$0xff]  }
 0x112   :  { %3669 = vmatprep.subr.bf16.mxu1 %v5274_v63  ;;  %v5358_v63 = vld [vmem:[#allocation2 + $0x914] ss:$8 sps:$4 sm:$0xff]  }
 0x114   :  { %3627 = vmatpush2.bf16.msra.mxu0 %v5269_v0  ;;  %v5353_v0 = vld [vmem:[#allocation2 + $0x810] ss:$8 sps:$4 sm:$0xff]  }
 0x115   :  { %3670 = vmatpush2.bf16.msra.mxu1 %v5272_v1  ;;  %3628 = vmatprep.subr.bf16.mxu0 %v5277_v2  ;;  %v5356_v1 = vld [vmem:[#allocation2 + $0x910] ss:$8 sps:$4 sm:$0xff]   ;;  %v5361_v2 = vld [vmem:[#allocation2 + $0x804] ss:$8 sps:$4 sm:$0xff]  }
 0x116   :  { %3671 = vmatprep.subr.bf16.mxu1 %v5280_v3  ;;  %v5364_v3 = vld [vmem:[#allocation2 + $0x904] ss:$8 sps:$4 sm:$0xff]  }
 0x118   :  { %3629 = vmatpush2.bf16.msra.mxu0 %v5275_v4  ;;  %v5359_v4 = vld [vmem:[#allocation2 + $0x800] ss:$8 sps:$4 sm:$0xff]  }
 0x119   :  { %3672 = vmatpush2.bf16.msra.mxu1 %v5278_v5  ;;  %3630 = vmatprep.subr.bf16.mxu0 %v5283_v6  ;;  %v5362_v5 = vld [vmem:[#allocation2 + $0x900] ss:$8 sps:$4 sm:$0xff]   ;;  %v5367_v6 = vld [vmem:[#allocation2 + $0x8f4] ss:$8 sps:$4 sm:$0xff]  }
 0x11a   :  { %3673 = vmatprep.subr.bf16.mxu1 %v5286_v7  ;;  %v5370_v7 = vld [vmem:[#allocation2 + $0x9f4] ss:$8 sps:$4 sm:$0xff]  }
 0x11c   :  { %3631 = vmatpush2.bf16.msra.mxu0 %v5281_v8  ;;  %v5365_v8 = vld [vmem:[#allocation2 + $0x8f0] ss:$8 sps:$4 sm:$0xff]  }
 0x11d   :  { %3674 = vmatpush2.bf16.msra.mxu1 %v5284_v9  ;;  %3632 = vmatprep.subr.bf16.mxu0 %v5289_v10  ;;  %v5368_v9 = vld [vmem:[#allocation2 + $0x9f0] ss:$8 sps:$4 sm:$0xff]   ;;  %v5373_v10 = vld [vmem:[#allocation2 + $0x8e4] ss:$8 sps:$4 sm:$0xff]  }
 0x11e   :  { %3675 = vmatprep.subr.bf16.mxu1 %v5292_v11  ;;  %v5376_v11 = vld [vmem:[#allocation2 + $0x9e4] ss:$8 sps:$4 sm:$0xff]  }
 0x120   :  { %3633 = vmatpush2.bf16.msra.mxu0 %v5287_v12  ;;  %v5371_v12 = vld [vmem:[#allocation2 + $0x8e0] ss:$8 sps:$4 sm:$0xff]  }
 0x121   :  { %3676 = vmatpush2.bf16.msra.mxu1 %v5290_v13  ;;  %3634 = vmatprep.subr.bf16.mxu0 %v5295_v14  ;;  %v5374_v13 = vld [vmem:[#allocation2 + $0x9e0] ss:$8 sps:$4 sm:$0xff]   ;;  %v5379_v14 = vld [vmem:[#allocation2 + $0x8d4] ss:$8 sps:$4 sm:$0xff]  }
 0x122   :  { %3677 = vmatprep.subr.bf16.mxu1 %v5298_v15  ;;  %v5382_v15 = vld [vmem:[#allocation2 + $0x9d4] ss:$8 sps:$4 sm:$0xff]  }
 0x124   :  { %3635 = vmatpush2.bf16.msra.mxu0 %v5293_v16  ;;  %v5377_v16 = vld [vmem:[#allocation2 + $0x8d0] ss:$8 sps:$4 sm:$0xff]  }
 0x125   :  { %3678 = vmatpush2.bf16.msra.mxu1 %v5296_v17  ;;  %3636 = vmatprep.subr.bf16.mxu0 %v5301_v18  ;;  %v5380_v17 = vld [vmem:[#allocation2 + $0x9d0] ss:$8 sps:$4 sm:$0xff]   ;;  %v5385_v18 = vld [vmem:[#allocation2 + $0x8c4] ss:$8 sps:$4 sm:$0xff]  }
 0x126   :  { %3679 = vmatprep.subr.bf16.mxu1 %v5304_v19  ;;  %v5388_v19 = vld [vmem:[#allocation2 + $0x9c4] ss:$8 sps:$4 sm:$0xff]  }
 0x128   :  { %3637 = vmatpush2.bf16.msra.mxu0 %v5299_v20  ;;  %v5383_v20 = vld [vmem:[#allocation2 + $0x8c0] ss:$8 sps:$4 sm:$0xff]  }
 0x129   :  { %3680 = vmatpush2.bf16.msra.mxu1 %v5302_v21  ;;  %3638 = vmatprep.subr.bf16.mxu0 %v5307_v22  ;;  %v5386_v21 = vld [vmem:[#allocation2 + $0x9c0] ss:$8 sps:$4 sm:$0xff]   ;;  %v5391_v22 = vld [vmem:[#allocation2 + $0x8b4] ss:$8 sps:$4 sm:$0xff]  }
 0x12a   :  { %3681 = vmatprep.subr.bf16.mxu1 %v5310_v23  ;;  %v5394_v23 = vld [vmem:[#allocation2 + $0x9b4] ss:$8 sps:$4 sm:$0xff]  }
 0x12c   :  { %3639 = vmatpush2.bf16.msra.mxu0 %v5305_v29  ;;  %v5389_v29 = vld [vmem:[#allocation2 + $0x8b0] ss:$8 sps:$4 sm:$0xff]  }
 0x12d   :  { %3682 = vmatpush2.bf16.msra.mxu1 %v5308_v32  ;;  %3640 = vmatprep.subr.bf16.mxu0 %v5313_v33  ;;  %v5392_v32 = vld [vmem:[#allocation2 + $0x9b0] ss:$8 sps:$4 sm:$0xff]   ;;  %v5397_v33 = vld [vmem:[#allocation2 + $0x8a4] ss:$8 sps:$4 sm:$0xff]  }
 0x12e   :  { %3683 = vmatprep.subr.bf16.mxu1 %v5316_v35  ;;  %v5400_v35 = vld [vmem:[#allocation2 + $0x9a4] ss:$8 sps:$4 sm:$0xff]  }
 0x130   :  { %3641 = vmatpush2.bf16.msra.mxu0 %v5311_v36  ;;  %v5395_v36 = vld [vmem:[#allocation2 + $0x8a0] ss:$8 sps:$4 sm:$0xff]  }
 0x131   :  { %3684 = vmatpush2.bf16.msra.mxu1 %v5314_v37  ;;  %3696 = vmatprep.subr.bf16.mxu0 %v5319_v38  ;;  %v5398_v37 = vld [vmem:[#allocation2 + $0x9a0] ss:$8 sps:$4 sm:$0xff]   ;;  %v5403_v38 = vld [vmem:[#allocation2 + $0x894] ss:$8 sps:$4 sm:$0xff]  }
 0x132   :  { %3739 = vmatprep.subr.bf16.mxu1 %v5322_v24  ;;  %v5406_v24 = vld [vmem:[#allocation2 + $0x994] ss:$8 sps:$4 sm:$0xff]  }
 0x133   :  { %3643 = vmatmul.mubr.bf16.vlgmr.msra.gmra.mxu0 %v4331_v40  ;;  %v5404_v40 = vld [vmem:[#allocation2 + $0x990] ss:$8 sps:$4 sm:$0xff]  }
 0x134   :  { %3686 = vmatmul.mubr.bf16.vlgmr.msra.gmra.mxu1 %v4333_v41  ;;  %3697 = vmatpush1.bf16.msra.mxu0 %v5317_v26  ;;  %v5401_v26 = vld [vmem:[#allocation2 + $0x890] ss:$8 sps:$4 sm:$0xff]   ;;  %v5409_v41 = vld [vmem:[#allocation2 + $0x884] ss:$8 sps:$4 sm:$0xff]  }
 0x135   :  { %3740 = vmatpush1.bf16.msra.mxu1 %v5320_v43  ;;  %3698 = vmatprep.subr.bf16.mxu0 %v5325_v44  ;;  %v5412_v43 = vld [vmem:[#allocation2 + $0x984] ss:$8 sps:$4 sm:$0xff]   ;;  %v5407_v44 = vld [vmem:[#allocation2 + $0x880] ss:$8 sps:$4 sm:$0xff]  }
 0x136   :  { %3741 = vmatprep.subr.bf16.mxu1 %v5328_v45  ;;  %3728 = vmatprep.mubr.bf16.mxu0 %v4336_v46  ;;  %v5410_v45 = vld [vmem:[#allocation2 + $0x980] ss:$8 sps:$4 sm:$0xff]   ;;  %v5415_v46 = vld [vmem:[#allocation2 + $0xa74] ss:$8 sps:$4 sm:$0xff]  }
 0x137   :  { %3771 = vmatprep.mubr.bf16.mxu1 %v4338_v28  ;;  %v5418_v28 = vld [vmem:[#allocation2 + $0xb74] ss:$8 sps:$4 sm:$0xff]  }
 0x138   :  { %3699 = vmatpush1.bf16.msra.mxu0 %v5323_v30  ;;  %v5990_v30 = vld [vmem:[%s6146_s0 + $0x50] sm:$0xff] }
 0x139   :  { %3742 = vmatpush1.bf16.msra.mxu1 %v5326_v31  ;;  %3700 = vmatprep.subr.bf16.mxu0 %v5331_v34  ;;  %v5413_v31 = vld [vmem:[#allocation2 + $0xa70] ss:$8 sps:$4 sm:$0xff]   ;;  %v4335_v34 = vcombine.low %v5962_v25, %v5967_v27  ;;  %v5421_v27 = vld [vmem:[#allocation2 + $0xa64] ss:$8 sps:$4 sm:$0xff]  }
 0x13a   :  { %3743 = vmatprep.subr.bf16.mxu1 %v5334_v47  ;;  %v4337_v47 = vcombine.low %v5972_v39, %v5981_v42  ;;  %v5416_v25 = vld [vmem:[#allocation2 + $0xb70] ss:$8 sps:$4 sm:$0xff]   ;;  %v5424_v39 = vld [vmem:[#allocation2 + $0xb64] ss:$8 sps:$4 sm:$0xff]   ;;  %v5419_v42 = vld [vmem:[#allocation2 + $0xa60] ss:$8 sps:$4 sm:$0xff]  }
 0x13c   :  { %3701 = vmatpush1.bf16.msra.mxu0 %v5329_v48  ;;  %v5999_v48 = vld [vmem:[%s6146_s0 + $0xd0] sm:$0xff] }
 0x13d   :  { %3744 = vmatpush1.bf16.msra.mxu1 %v5332_v49  ;;  %3702 = vmatprep.subr.bf16.mxu0 %v5337_v50  ;;  %v6004_v49 = vld [vmem:[%s6146_s0 + $0x58] sm:$0xff] }
 0x13e   :  { %3745 = vmatprep.subr.bf16.mxu1 %v5340_v51  ;;  %v6009_v50 = vld [vmem:[%s6146_s0 + $0xd8] sm:$0xff]  ;;  %v5422_v51 = vld [vmem:[#allocation2 + $0xb60] ss:$8 sps:$4 sm:$0xff]  }
 0x140   :  { %3703 = vmatpush1.bf16.msra.mxu0 %v5335_v52  ;;  %v4340_v52 = vcombine.high %v5990_v30, %v5999_v48 }
 0x141   :  { %3746 = vmatpush1.bf16.msra.mxu1 %v5338_v53  ;;  %3704 = vmatprep.subr.bf16.mxu0 %v5343_v54  ;;  %v4342_v53 = vcombine.high %v6004_v49, %v6009_v50  ;;  %v5427_v54 = vld [vmem:[#allocation2 + $0xa54] ss:$8 sps:$4 sm:$0xff]  }
 0x142   :  { %3747 = vmatprep.subr.bf16.mxu1 %v5346_v55  ;;  %v5430_v55 = vld [vmem:[#allocation2 + $0xb54] ss:$8 sps:$4 sm:$0xff]  }
 0x144   :  { %3705 = vmatpush1.bf16.msra.mxu0 %v5341_v56  ;;  %v5425_v56 = vld [vmem:[#allocation2 + $0xa50] ss:$8 sps:$4 sm:$0xff]  }
 0x145   :  { %3748 = vmatpush1.bf16.msra.mxu1 %v5344_v57  ;;  %3706 = vmatprep.subr.bf16.mxu0 %v5349_v58  ;;  %v5428_v57 = vld [vmem:[#allocation2 + $0xb50] ss:$8 sps:$4 sm:$0xff]   ;;  %v5433_v58 = vld [vmem:[#allocation2 + $0xa44] ss:$8 sps:$4 sm:$0xff]  }
 0x146   :  { %3749 = vmatprep.subr.bf16.mxu1 %v5352_v59  ;;  %v5436_v59 = vld [vmem:[#allocation2 + $0xb44] ss:$8 sps:$4 sm:$0xff]  }
 0x148   :  { %3707 = vmatpush1.bf16.msra.mxu0 %v5347_v60  ;;  %v5431_v60 = vld [vmem:[#allocation2 + $0xa40] ss:$8 sps:$4 sm:$0xff]  }
 0x149   :  { %3750 = vmatpush1.bf16.msra.mxu1 %v5350_v61  ;;  %3708 = vmatprep.subr.bf16.mxu0 %v5355_v62  ;;  %v5434_v61 = vld [vmem:[#allocation2 + $0xb40] ss:$8 sps:$4 sm:$0xff]   ;;  %v5439_v62 = vld [vmem:[#allocation2 + $0xa34] ss:$8 sps:$4 sm:$0xff]  }
 0x14a   :  { %3751 = vmatprep.subr.bf16.mxu1 %v5358_v63  ;;  %v5442_v63 = vld [vmem:[#allocation2 + $0xb34] ss:$8 sps:$4 sm:$0xff]  }
 0x14c   :  { %3709 = vmatpush1.bf16.msra.mxu0 %v5353_v0  ;;  %v5437_v0 = vld [vmem:[#allocation2 + $0xa30] ss:$8 sps:$4 sm:$0xff]  }
 0x14d   :  { %3752 = vmatpush1.bf16.msra.mxu1 %v5356_v1  ;;  %3710 = vmatprep.subr.bf16.mxu0 %v5361_v2  ;;  %v5440_v1 = vld [vmem:[#allocation2 + $0xb30] ss:$8 sps:$4 sm:$0xff]   ;;  %v5445_v2 = vld [vmem:[#allocation2 + $0xa24] ss:$8 sps:$4 sm:$0xff]  }
 0x14e   :  { %3753 = vmatprep.subr.bf16.mxu1 %v5364_v3  ;;  %v5448_v3 = vld [vmem:[#allocation2 + $0xb24] ss:$8 sps:$4 sm:$0xff]  }
 0x150   :  { %3711 = vmatpush1.bf16.msra.mxu0 %v5359_v4  ;;  %v5443_v4 = vld [vmem:[#allocation2 + $0xa20] ss:$8 sps:$4 sm:$0xff]  }
 0x151   :  { %3754 = vmatpush1.bf16.msra.mxu1 %v5362_v5  ;;  %3712 = vmatprep.subr.bf16.mxu0 %v5367_v6  ;;  %v5446_v5 = vld [vmem:[#allocation2 + $0xb20] ss:$8 sps:$4 sm:$0xff]   ;;  %v5451_v6 = vld [vmem:[#allocation2 + $0xa14] ss:$8 sps:$4 sm:$0xff]  }
 0x152   :  { %3755 = vmatprep.subr.bf16.mxu1 %v5370_v7  ;;  %v5454_v7 = vld [vmem:[#allocation2 + $0xb14] ss:$8 sps:$4 sm:$0xff]  }
 0x154   :  { %3713 = vmatpush2.bf16.msra.mxu0 %v5365_v8  ;;  %v5449_v8 = vld [vmem:[#allocation2 + $0xa10] ss:$8 sps:$4 sm:$0xff]  }
 0x155   :  { %3756 = vmatpush2.bf16.msra.mxu1 %v5368_v9  ;;  %3714 = vmatprep.subr.bf16.mxu0 %v5373_v10  ;;  %v5452_v9 = vld [vmem:[#allocation2 + $0xb10] ss:$8 sps:$4 sm:$0xff]   ;;  %v5457_v10 = vld [vmem:[#allocation2 + $0xa04] ss:$8 sps:$4 sm:$0xff]  }
 0x156   :  { %3757 = vmatprep.subr.bf16.mxu1 %v5376_v11  ;;  %v5460_v11 = vld [vmem:[#allocation2 + $0xb04] ss:$8 sps:$4 sm:$0xff]  }
 0x158   :  { %3715 = vmatpush2.bf16.msra.mxu0 %v5371_v12  ;;  %v5455_v12 = vld [vmem:[#allocation2 + $0xa00] ss:$8 sps:$4 sm:$0xff]  }
 0x159   :  { %3758 = vmatpush2.bf16.msra.mxu1 %v5374_v13  ;;  %3716 = vmatprep.subr.bf16.mxu0 %v5379_v14  ;;  %v5458_v13 = vld [vmem:[#allocation2 + $0xb00] ss:$8 sps:$4 sm:$0xff]   ;;  %v5463_v14 = vld [vmem:[#allocation2 + $0xaf4] ss:$8 sps:$4 sm:$0xff]  }
 0x15a   :  { %3759 = vmatprep.subr.bf16.mxu1 %v5382_v15  ;;  %v5466_v15 = vld [vmem:[#allocation2 + $0xbf4] ss:$8 sps:$4 sm:$0xff]  }
 0x15c   :  { %3717 = vmatpush2.bf16.msra.mxu0 %v5377_v16  ;;  %v5461_v16 = vld [vmem:[#allocation2 + $0xaf0] ss:$8 sps:$4 sm:$0xff]  }
 0x15d   :  { %3760 = vmatpush2.bf16.msra.mxu1 %v5380_v17  ;;  %3718 = vmatprep.subr.bf16.mxu0 %v5385_v18  ;;  %v5464_v17 = vld [vmem:[#allocation2 + $0xbf0] ss:$8 sps:$4 sm:$0xff]   ;;  %v5469_v18 = vld [vmem:[#allocation2 + $0xae4] ss:$8 sps:$4 sm:$0xff]  }
 0x15e   :  { %3761 = vmatprep.subr.bf16.mxu1 %v5388_v19  ;;  %v5472_v19 = vld [vmem:[#allocation2 + $0xbe4] ss:$8 sps:$4 sm:$0xff]  }
 0x160   :  { %3719 = vmatpush2.bf16.msra.mxu0 %v5383_v20  ;;  %v5467_v20 = vld [vmem:[#allocation2 + $0xae0] ss:$8 sps:$4 sm:$0xff]  }
 0x161   :  { %3762 = vmatpush2.bf16.msra.mxu1 %v5386_v21  ;;  %3720 = vmatprep.subr.bf16.mxu0 %v5391_v22  ;;  %v5470_v21 = vld [vmem:[#allocation2 + $0xbe0] ss:$8 sps:$4 sm:$0xff]   ;;  %v5475_v22 = vld [vmem:[#allocation2 + $0xad4] ss:$8 sps:$4 sm:$0xff]  }
 0x162   :  { %3763 = vmatprep.subr.bf16.mxu1 %v5394_v23  ;;  %v5478_v23 = vld [vmem:[#allocation2 + $0xbd4] ss:$8 sps:$4 sm:$0xff]  }
 0x164   :  { %3721 = vmatpush2.bf16.msra.mxu0 %v5389_v29  ;;  %v5473_v29 = vld [vmem:[#allocation2 + $0xad0] ss:$8 sps:$4 sm:$0xff]  }
 0x165   :  { %3764 = vmatpush2.bf16.msra.mxu1 %v5392_v32  ;;  %3722 = vmatprep.subr.bf16.mxu0 %v5397_v33  ;;  %v5476_v32 = vld [vmem:[#allocation2 + $0xbd0] ss:$8 sps:$4 sm:$0xff]   ;;  %v5481_v33 = vld [vmem:[#allocation2 + $0xac4] ss:$8 sps:$4 sm:$0xff]  }
 0x166   :  { %3765 = vmatprep.subr.bf16.mxu1 %v5400_v35  ;;  %v5484_v35 = vld [vmem:[#allocation2 + $0xbc4] ss:$8 sps:$4 sm:$0xff]  }
 0x168   :  { %3723 = vmatpush2.bf16.msra.mxu0 %v5395_v36  ;;  %v5479_v36 = vld [vmem:[#allocation2 + $0xac0] ss:$8 sps:$4 sm:$0xff]  }
 0x169   :  { %3766 = vmatpush2.bf16.msra.mxu1 %v5398_v37  ;;  %3724 = vmatprep.subr.bf16.mxu0 %v5403_v38  ;;  %v5482_v37 = vld [vmem:[#allocation2 + $0xbc0] ss:$8 sps:$4 sm:$0xff]   ;;  %v5487_v38 = vld [vmem:[#allocation2 + $0xab4] ss:$8 sps:$4 sm:$0xff]  }
 0x16a   :  { %3767 = vmatprep.subr.bf16.mxu1 %v5406_v24  ;;  %v5490_v24 = vld [vmem:[#allocation2 + $0xbb4] ss:$8 sps:$4 sm:$0xff]  }
 0x16c   :  { %3725 = vmatpush2.bf16.msra.mxu0 %v5401_v26  ;;  %v5485_v26 = vld [vmem:[#allocation2 + $0xab0] ss:$8 sps:$4 sm:$0xff]  }
 0x16d   :  { %3768 = vmatpush2.bf16.msra.mxu1 %v5404_v40  ;;  %3726 = vmatprep.subr.bf16.mxu0 %v5409_v41  ;;  %v5488_v40 = vld [vmem:[#allocation2 + $0xbb0] ss:$8 sps:$4 sm:$0xff]   ;;  %v5493_v41 = vld [vmem:[#allocation2 + $0xaa4] ss:$8 sps:$4 sm:$0xff]  }
 0x16e   :  { %3769 = vmatprep.subr.bf16.mxu1 %v5412_v43  ;;  %v5496_v43 = vld [vmem:[#allocation2 + $0xba4] ss:$8 sps:$4 sm:$0xff]  }
 0x170   :  { %3727 = vmatpush2.bf16.msra.mxu0 %v5407_v44  ;;  %v5491_v44 = vld [vmem:[#allocation2 + $0xaa0] ss:$8 sps:$4 sm:$0xff]  }
 0x171   :  { %3770 = vmatpush2.bf16.msra.mxu1 %v5410_v45  ;;  %3782 = vmatprep.subr.bf16.mxu0 %v5415_v46  ;;  %v5494_v45 = vld [vmem:[#allocation2 + $0xba0] ss:$8 sps:$4 sm:$0xff]   ;;  %v5499_v46 = vld [vmem:[#allocation2 + $0xa94] ss:$8 sps:$4 sm:$0xff]  }
 0x172   :  { %3825 = vmatprep.subr.bf16.mxu1 %v5418_v28  ;;  %v5502_v28 = vld [vmem:[#allocation2 + $0xb94] ss:$8 sps:$4 sm:$0xff]  }
 0x173   :  { %3729 = vmatmul.mubr.bf16.vlgmr.msra.gmra.mxu0 %v4335_v34  ;;  %v5500_v34 = vld [vmem:[#allocation2 + $0xb90] ss:$8 sps:$4 sm:$0xff]  }
 0x174   :  { %3772 = vmatmul.mubr.bf16.vlgmr.msra.gmra.mxu1 %v4337_v47  ;;  %3783 = vmatpush1.bf16.msra.mxu0 %v5413_v31  ;;  %v5497_v31 = vld [vmem:[#allocation2 + $0xa90] ss:$8 sps:$4 sm:$0xff]   ;;  %v5505_v47 = vld [vmem:[#allocation2 + $0xa84] ss:$8 sps:$4 sm:$0xff]  }
 0x175   :  { %3826 = vmatpush1.bf16.msra.mxu1 %v5416_v25  ;;  %3784 = vmatprep.subr.bf16.mxu0 %v5421_v27  ;;  %v5508_v25 = vld [vmem:[#allocation2 + $0xb84] ss:$8 sps:$4 sm:$0xff]   ;;  %v5503_v27 = vld [vmem:[#allocation2 + $0xa80] ss:$8 sps:$4 sm:$0xff]  }
 0x176   :  { %3827 = vmatprep.subr.bf16.mxu1 %v5424_v39  ;;  %3814 = vmatprep.mubr.bf16.mxu0 %v4340_v52  ;;  %v5506_v39 = vld [vmem:[#allocation2 + $0xb80] ss:$8 sps:$4 sm:$0xff]  }
 0x177   :  { %3857 = vmatprep.mubr.bf16.mxu1 %v4342_v53  ;;  %v6018_v52 = vld [vmem:[%s6146_s0 + $0x60] sm:$0xff]  ;;  %v4339_v53 = vcombine.low %v5990_v30, %v5999_v48  ;;  %v5509_v30 = vld [vmem:[#allocation2 + $0xc70] ss:$8 sps:$4 sm:$0xff]  }
 0x178   :  { %3785 = vmatpush1.bf16.msra.mxu0 %v5419_v42  ;;  %v5511_v42 = vld [vmem:[#allocation2 + $0xc74] ss:$8 sps:$4 sm:$0xff]   ;;  %v5512_v48 = vld [vmem:[#allocation2 + $0xd70] ss:$8 sps:$4 sm:$0xff]  }
 0x179   :  { %3828 = vmatpush1.bf16.msra.mxu1 %v5422_v51  ;;  %3786 = vmatprep.subr.bf16.mxu0 %v5427_v54  ;;  %v5514_v51 = vld [vmem:[#allocation2 + $0xd74] ss:$8 sps:$4 sm:$0xff]   ;;  %v4341_v54 = vcombine.low %v6004_v49, %v6009_v50  ;;  %v5517_v49 = vld [vmem:[#allocation2 + $0xc64] ss:$8 sps:$4 sm:$0xff]  }
 0x17a   :  { %3829 = vmatprep.subr.bf16.mxu1 %v5430_v55  ;;  %v6027_v55 = vld [vmem:[%s6146_s0 + $0xe0] sm:$0xff] }
 0x17b   :  { %v5520_v50 = vld [vmem:[#allocation2 + $0xd64] ss:$8 sps:$4 sm:$0xff]  }
 0x17c   :  { %3787 = vmatpush1.bf16.msra.mxu0 %v5425_v56  ;;  %v6032_v56 = vld [vmem:[%s6146_s0 + $0x68] sm:$0xff] }
 0x17d   :  { %3830 = vmatpush1.bf16.msra.mxu1 %v5428_v57  ;;  %3788 = vmatprep.subr.bf16.mxu0 %v5433_v58  ;;  %v6037_v57 = vld [vmem:[%s6146_s0 + $0xe8] sm:$0xff]  ;;  %v4344_v58 = vcombine.high %v6018_v52, %v6027_v55 }
 0x17e   :  { %3831 = vmatprep.subr.bf16.mxu1 %v5436_v59  ;;  %v4346_v59 = vcombine.high %v6032_v56, %v6037_v57 }
 0x180   :  { %3789 = vmatpush1.bf16.msra.mxu0 %v5431_v60  ;;  %v5515_v60 = vld [vmem:[#allocation2 + $0xc60] ss:$8 sps:$4 sm:$0xff]  }
 0x181   :  { %3832 = vmatpush1.bf16.msra.mxu1 %v5434_v61  ;;  %3790 = vmatprep.subr.bf16.mxu0 %v5439_v62  ;;  %v5518_v61 = vld [vmem:[#allocation2 + $0xd60] ss:$8 sps:$4 sm:$0xff]   ;;  %v5523_v62 = vld [vmem:[#allocation2 + $0xc54] ss:$8 sps:$4 sm:$0xff]  }
 0x182   :  { %3833 = vmatprep.subr.bf16.mxu1 %v5442_v63  ;;  %v5526_v63 = vld [vmem:[#allocation2 + $0xd54] ss:$8 sps:$4 sm:$0xff]  }
 0x184   :  { %3791 = vmatpush1.bf16.msra.mxu0 %v5437_v0  ;;  %v5521_v0 = vld [vmem:[#allocation2 + $0xc50] ss:$8 sps:$4 sm:$0xff]  }
 0x185   :  { %3834 = vmatpush1.bf16.msra.mxu1 %v5440_v1  ;;  %3792 = vmatprep.subr.bf16.mxu0 %v5445_v2  ;;  %v5524_v1 = vld [vmem:[#allocation2 + $0xd50] ss:$8 sps:$4 sm:$0xff]   ;;  %v5529_v2 = vld [vmem:[#allocation2 + $0xc44] ss:$8 sps:$4 sm:$0xff]  }
 0x186   :  { %3835 = vmatprep.subr.bf16.mxu1 %v5448_v3  ;;  %v5532_v3 = vld [vmem:[#allocation2 + $0xd44] ss:$8 sps:$4 sm:$0xff]  }
 0x188   :  { %3793 = vmatpush1.bf16.msra.mxu0 %v5443_v4  ;;  %v5527_v4 = vld [vmem:[#allocation2 + $0xc40] ss:$8 sps:$4 sm:$0xff]  }
 0x189   :  { %3836 = vmatpush1.bf16.msra.mxu1 %v5446_v5  ;;  %3794 = vmatprep.subr.bf16.mxu0 %v5451_v6  ;;  %v5530_v5 = vld [vmem:[#allocation2 + $0xd40] ss:$8 sps:$4 sm:$0xff]   ;;  %v5535_v6 = vld [vmem:[#allocation2 + $0xc34] ss:$8 sps:$4 sm:$0xff]  }
 0x18a   :  { %3837 = vmatprep.subr.bf16.mxu1 %v5454_v7  ;;  %v5538_v7 = vld [vmem:[#allocation2 + $0xd34] ss:$8 sps:$4 sm:$0xff]  }
 0x18c   :  { %3795 = vmatpush1.bf16.msra.mxu0 %v5449_v8  ;;  %v5533_v8 = vld [vmem:[#allocation2 + $0xc30] ss:$8 sps:$4 sm:$0xff]  }
 0x18d   :  { %3838 = vmatpush1.bf16.msra.mxu1 %v5452_v9  ;;  %3796 = vmatprep.subr.bf16.mxu0 %v5457_v10  ;;  %v5536_v9 = vld [vmem:[#allocation2 + $0xd30] ss:$8 sps:$4 sm:$0xff]   ;;  %v5541_v10 = vld [vmem:[#allocation2 + $0xc24] ss:$8 sps:$4 sm:$0xff]  }
 0x18e   :  { %3839 = vmatprep.subr.bf16.mxu1 %v5460_v11  ;;  %v5544_v11 = vld [vmem:[#allocation2 + $0xd24] ss:$8 sps:$4 sm:$0xff]  }
 0x190   :  { %3797 = vmatpush1.bf16.msra.mxu0 %v5455_v12  ;;  %v5539_v12 = vld [vmem:[#allocation2 + $0xc20] ss:$8 sps:$4 sm:$0xff]  }
 0x191   :  { %3840 = vmatpush1.bf16.msra.mxu1 %v5458_v13  ;;  %3798 = vmatprep.subr.bf16.mxu0 %v5463_v14  ;;  %v5542_v13 = vld [vmem:[#allocation2 + $0xd20] ss:$8 sps:$4 sm:$0xff]   ;;  %v5547_v14 = vld [vmem:[#allocation2 + $0xc14] ss:$8 sps:$4 sm:$0xff]  }
 0x192   :  { %3841 = vmatprep.subr.bf16.mxu1 %v5466_v15  ;;  %v5550_v15 = vld [vmem:[#allocation2 + $0xd14] ss:$8 sps:$4 sm:$0xff]  }
 0x194   :  { %3799 = vmatpush2.bf16.msra.mxu0 %v5461_v16  ;;  %v5545_v16 = vld [vmem:[#allocation2 + $0xc10] ss:$8 sps:$4 sm:$0xff]  }
 0x195   :  { %3842 = vmatpush2.bf16.msra.mxu1 %v5464_v17  ;;  %3800 = vmatprep.subr.bf16.mxu0 %v5469_v18  ;;  %v5548_v17 = vld [vmem:[#allocation2 + $0xd10] ss:$8 sps:$4 sm:$0xff]   ;;  %v5553_v18 = vld [vmem:[#allocation2 + $0xc04] ss:$8 sps:$4 sm:$0xff]  }
 0x196   :  { %3843 = vmatprep.subr.bf16.mxu1 %v5472_v19  ;;  %v5556_v19 = vld [vmem:[#allocation2 + $0xd04] ss:$8 sps:$4 sm:$0xff]  }
 0x198   :  { %3801 = vmatpush2.bf16.msra.mxu0 %v5467_v20  ;;  %v5551_v20 = vld [vmem:[#allocation2 + $0xc00] ss:$8 sps:$4 sm:$0xff]  }
 0x199   :  { %3844 = vmatpush2.bf16.msra.mxu1 %v5470_v21  ;;  %3802 = vmatprep.subr.bf16.mxu0 %v5475_v22  ;;  %v5554_v21 = vld [vmem:[#allocation2 + $0xd00] ss:$8 sps:$4 sm:$0xff]   ;;  %v5559_v22 = vld [vmem:[#allocation2 + $0xcf4] ss:$8 sps:$4 sm:$0xff]  }
 0x19a   :  { %3845 = vmatprep.subr.bf16.mxu1 %v5478_v23  ;;  %v5562_v23 = vld [vmem:[#allocation2 + $0xdf4] ss:$8 sps:$4 sm:$0xff]  }
 0x19c   :  { %3803 = vmatpush2.bf16.msra.mxu0 %v5473_v29  ;;  %v5557_v29 = vld [vmem:[#allocation2 + $0xcf0] ss:$8 sps:$4 sm:$0xff]  }
 0x19d   :  { %3846 = vmatpush2.bf16.msra.mxu1 %v5476_v32  ;;  %3804 = vmatprep.subr.bf16.mxu0 %v5481_v33  ;;  %v5560_v32 = vld [vmem:[#allocation2 + $0xdf0] ss:$8 sps:$4 sm:$0xff]   ;;  %v5565_v33 = vld [vmem:[#allocation2 + $0xce4] ss:$8 sps:$4 sm:$0xff]  }
 0x19e   :  { %3847 = vmatprep.subr.bf16.mxu1 %v5484_v35  ;;  %v5568_v35 = vld [vmem:[#allocation2 + $0xde4] ss:$8 sps:$4 sm:$0xff]  }
 0x1a0   :  { %3805 = vmatpush2.bf16.msra.mxu0 %v5479_v36  ;;  %v5563_v36 = vld [vmem:[#allocation2 + $0xce0] ss:$8 sps:$4 sm:$0xff]  }
 0x1a1   :  { %3848 = vmatpush2.bf16.msra.mxu1 %v5482_v37  ;;  %3806 = vmatprep.subr.bf16.mxu0 %v5487_v38  ;;  %v5566_v37 = vld [vmem:[#allocation2 + $0xde0] ss:$8 sps:$4 sm:$0xff]   ;;  %v5571_v38 = vld [vmem:[#allocation2 + $0xcd4] ss:$8 sps:$4 sm:$0xff]  }
 0x1a2   :  { %3849 = vmatprep.subr.bf16.mxu1 %v5490_v24  ;;  %v5574_v24 = vld [vmem:[#allocation2 + $0xdd4] ss:$8 sps:$4 sm:$0xff]  }
 0x1a4   :  { %3807 = vmatpush2.bf16.msra.mxu0 %v5485_v26  ;;  %v5569_v26 = vld [vmem:[#allocation2 + $0xcd0] ss:$8 sps:$4 sm:$0xff]  }
 0x1a5   :  { %3850 = vmatpush2.bf16.msra.mxu1 %v5488_v40  ;;  %3808 = vmatprep.subr.bf16.mxu0 %v5493_v41  ;;  %v5572_v40 = vld [vmem:[#allocation2 + $0xdd0] ss:$8 sps:$4 sm:$0xff]   ;;  %v5577_v41 = vld [vmem:[#allocation2 + $0xcc4] ss:$8 sps:$4 sm:$0xff]  }
 0x1a6   :  { %3851 = vmatprep.subr.bf16.mxu1 %v5496_v43  ;;  %v5580_v43 = vld [vmem:[#allocation2 + $0xdc4] ss:$8 sps:$4 sm:$0xff]  }
 0x1a8   :  { %3809 = vmatpush2.bf16.msra.mxu0 %v5491_v44  ;;  %v5575_v44 = vld [vmem:[#allocation2 + $0xcc0] ss:$8 sps:$4 sm:$0xff]  }
 0x1a9   :  { %3852 = vmatpush2.bf16.msra.mxu1 %v5494_v45  ;;  %3810 = vmatprep.subr.bf16.mxu0 %v5499_v46  ;;  %v5578_v45 = vld [vmem:[#allocation2 + $0xdc0] ss:$8 sps:$4 sm:$0xff]   ;;  %v5583_v46 = vld [vmem:[#allocation2 + $0xcb4] ss:$8 sps:$4 sm:$0xff]  }
 0x1aa   :  { %3853 = vmatprep.subr.bf16.mxu1 %v5502_v28  ;;  %v5586_v28 = vld [vmem:[#allocation2 + $0xdb4] ss:$8 sps:$4 sm:$0xff]  }
 0x1ac   :  { %3811 = vmatpush2.bf16.msra.mxu0 %v5497_v31  ;;  %v5581_v31 = vld [vmem:[#allocation2 + $0xcb0] ss:$8 sps:$4 sm:$0xff]  }
 0x1ad   :  { %3854 = vmatpush2.bf16.msra.mxu1 %v5500_v34  ;;  %3812 = vmatprep.subr.bf16.mxu0 %v5505_v47  ;;  %v5584_v34 = vld [vmem:[#allocation2 + $0xdb0] ss:$8 sps:$4 sm:$0xff]   ;;  %v5589_v47 = vld [vmem:[#allocation2 + $0xca4] ss:$8 sps:$4 sm:$0xff]  }
 0x1ae   :  { %3855 = vmatprep.subr.bf16.mxu1 %v5508_v25  ;;  %v5592_v25 = vld [vmem:[#allocation2 + $0xda4] ss:$8 sps:$4 sm:$0xff]  }
 0x1b0   :  { %3813 = vmatpush2.bf16.msra.mxu0 %v5503_v27  ;;  %v5587_v27 = vld [vmem:[#allocation2 + $0xca0] ss:$8 sps:$4 sm:$0xff]  }
 0x1b1   :  { %3856 = vmatpush2.bf16.msra.mxu1 %v5506_v39  ;;  %3868 = vmatprep.subr.bf16.mxu0 %v5511_v42  ;;  %v5590_v39 = vld [vmem:[#allocation2 + $0xda0] ss:$8 sps:$4 sm:$0xff]   ;;  %v5595_v42 = vld [vmem:[#allocation2 + $0xc94] ss:$8 sps:$4 sm:$0xff]  }
 0x1b2   :  { %3911 = vmatprep.subr.bf16.mxu1 %v5514_v51  ;;  %v5598_v51 = vld [vmem:[#allocation2 + $0xd94] ss:$8 sps:$4 sm:$0xff]  }
 0x1b3   :  { %3815 = vmatmul.mubr.bf16.vlgmr.msra.gmra.mxu0 %v4339_v53  ;;  %v5593_v53 = vld [vmem:[#allocation2 + $0xc90] ss:$8 sps:$4 sm:$0xff]  }
 0x1b4   :  { %3858 = vmatmul.mubr.bf16.vlgmr.msra.gmra.mxu1 %v4341_v54  ;;  %3869 = vmatpush1.bf16.msra.mxu0 %v5509_v30  ;;  %v5596_v54 = vld [vmem:[#allocation2 + $0xd90] ss:$8 sps:$4 sm:$0xff]   ;;  %v5601_v30 = vld [vmem:[#allocation2 + $0xc84] ss:$8 sps:$4 sm:$0xff]  }
 0x1b5   :  { %3912 = vmatpush1.bf16.msra.mxu1 %v5512_v48  ;;  %3870 = vmatprep.subr.bf16.mxu0 %v5517_v49  ;;  %v5604_v48 = vld [vmem:[#allocation2 + $0xd84] ss:$8 sps:$4 sm:$0xff]   ;;  %v5599_v49 = vld [vmem:[#allocation2 + $0xc80] ss:$8 sps:$4 sm:$0xff]  }
 0x1b6   :  { %3913 = vmatprep.subr.bf16.mxu1 %v5520_v50  ;;  %3900 = vmatprep.mubr.bf16.mxu0 %v4344_v58  ;;  %v5602_v50 = vld [vmem:[#allocation2 + $0xd80] ss:$8 sps:$4 sm:$0xff]   ;;  %v5607_v58 = vld [vmem:[#allocation2 + $0xe74] ss:$8 sps:$4 sm:$0xff]  }
 0x1b7   :  { %3943 = vmatprep.mubr.bf16.mxu1 %v4346_v59  ;;  %v5610_v59 = vld [vmem:[#allocation2 + $0xf74] ss:$8 sps:$4 sm:$0xff]  }
 0x1b8   :  { %3871 = vmatpush1.bf16.msra.mxu0 %v5515_v60  ;;  %v6046_v60 = vld [vmem:[%s6146_s0 + $0x70] sm:$0xff] }
 0x1b9   :  { %3914 = vmatpush1.bf16.msra.mxu1 %v5518_v61  ;;  %3872 = vmatprep.subr.bf16.mxu0 %v5523_v62  ;;  %v4343_v61 = vcombine.low %v6018_v52, %v6027_v55  ;;  %v4345_v62 = vcombine.low %v6032_v56, %v6037_v57  ;;  %v5605_v52 = vld [vmem:[#allocation2 + $0xe70] ss:$8 sps:$4 sm:$0xff]   ;;  %v5613_v56 = vld [vmem:[#allocation2 + $0xe64] ss:$8 sps:$4 sm:$0xff]  }
 0x1ba   :  { %3915 = vmatprep.subr.bf16.mxu1 %v5526_v63  ;;  %v6055_v63 = vld [vmem:[%s6146_s0 + $0xf0] sm:$0xff]  ;;  %v5616_v57 = vld [vmem:[#allocation2 + $0xf64] ss:$8 sps:$4 sm:$0xff]  }
 0x1bb   :  { %v5608_v55 = vld [vmem:[#allocation2 + $0xf70] ss:$8 sps:$4 sm:$0xff]  }
 0x1bc   :  { %3873 = vmatpush1.bf16.msra.mxu0 %v5521_v0  ;;  %v6060_v0 = vld [vmem:[%s6146_s0 + $0x78] sm:$0xff] }
 0x1bd   :  { %3916 = vmatpush1.bf16.msra.mxu1 %v5524_v1  ;;  %3874 = vmatprep.subr.bf16.mxu0 %v5529_v2  ;;  %v6065_v1 = vld [vmem:[%s6146_s0 + $0xf8] sm:$0xff]  ;;  %v4348_v2 = vcombine.high %v6046_v60, %v6055_v63 }
 0x1be   :  { %3917 = vmatprep.subr.bf16.mxu1 %v5532_v3  ;;  %v4350_v3 = vcombine.high %v6060_v0, %v6065_v1 }
 0x1c0   :  { %3875 = vmatpush1.bf16.msra.mxu0 %v5527_v4  ;;  %v5611_v4 = vld [vmem:[#allocation2 + $0xe60] ss:$8 sps:$4 sm:$0xff]  }
 0x1c1   :  { %3918 = vmatpush1.bf16.msra.mxu1 %v5530_v5  ;;  %3876 = vmatprep.subr.bf16.mxu0 %v5535_v6  ;;  %v5614_v5 = vld [vmem:[#allocation2 + $0xf60] ss:$8 sps:$4 sm:$0xff]   ;;  %v5619_v6 = vld [vmem:[#allocation2 + $0xe54] ss:$8 sps:$4 sm:$0xff]  }
 0x1c2   :  { %3919 = vmatprep.subr.bf16.mxu1 %v5538_v7  ;;  %v5622_v7 = vld [vmem:[#allocation2 + $0xf54] ss:$8 sps:$4 sm:$0xff]  }
 0x1c4   :  { %3877 = vmatpush1.bf16.msra.mxu0 %v5533_v8  ;;  %v5617_v8 = vld [vmem:[#allocation2 + $0xe50] ss:$8 sps:$4 sm:$0xff]  }
 0x1c5   :  { %3920 = vmatpush1.bf16.msra.mxu1 %v5536_v9  ;;  %3878 = vmatprep.subr.bf16.mxu0 %v5541_v10  ;;  %v5620_v9 = vld [vmem:[#allocation2 + $0xf50] ss:$8 sps:$4 sm:$0xff]   ;;  %v5625_v10 = vld [vmem:[#allocation2 + $0xe44] ss:$8 sps:$4 sm:$0xff]  }
 0x1c6   :  { %3921 = vmatprep.subr.bf16.mxu1 %v5544_v11  ;;  %v5628_v11 = vld [vmem:[#allocation2 + $0xf44] ss:$8 sps:$4 sm:$0xff]  }
 0x1c8   :  { %3879 = vmatpush1.bf16.msra.mxu0 %v5539_v12  ;;  %v5623_v12 = vld [vmem:[#allocation2 + $0xe40] ss:$8 sps:$4 sm:$0xff]  }
 0x1c9   :  { %3922 = vmatpush1.bf16.msra.mxu1 %v5542_v13  ;;  %3880 = vmatprep.subr.bf16.mxu0 %v5547_v14  ;;  %v5626_v13 = vld [vmem:[#allocation2 + $0xf40] ss:$8 sps:$4 sm:$0xff]   ;;  %v5631_v14 = vld [vmem:[#allocation2 + $0xe34] ss:$8 sps:$4 sm:$0xff]  }
 0x1ca   :  { %3923 = vmatprep.subr.bf16.mxu1 %v5550_v15  ;;  %v5634_v15 = vld [vmem:[#allocation2 + $0xf34] ss:$8 sps:$4 sm:$0xff]  }
 0x1cc   :  { %3881 = vmatpush1.bf16.msra.mxu0 %v5545_v16  ;;  %v5629_v16 = vld [vmem:[#allocation2 + $0xe30] ss:$8 sps:$4 sm:$0xff]  }
 0x1cd   :  { %3924 = vmatpush1.bf16.msra.mxu1 %v5548_v17  ;;  %3882 = vmatprep.subr.bf16.mxu0 %v5553_v18  ;;  %v5632_v17 = vld [vmem:[#allocation2 + $0xf30] ss:$8 sps:$4 sm:$0xff]   ;;  %v5637_v18 = vld [vmem:[#allocation2 + $0xe24] ss:$8 sps:$4 sm:$0xff]  }
 0x1ce   :  { %3925 = vmatprep.subr.bf16.mxu1 %v5556_v19  ;;  %v5640_v19 = vld [vmem:[#allocation2 + $0xf24] ss:$8 sps:$4 sm:$0xff]  }
 0x1d0   :  { %3883 = vmatpush1.bf16.msra.mxu0 %v5551_v20  ;;  %v5635_v20 = vld [vmem:[#allocation2 + $0xe20] ss:$8 sps:$4 sm:$0xff]  }
 0x1d1   :  { %3926 = vmatpush1.bf16.msra.mxu1 %v5554_v21  ;;  %3884 = vmatprep.subr.bf16.mxu0 %v5559_v22  ;;  %v5638_v21 = vld [vmem:[#allocation2 + $0xf20] ss:$8 sps:$4 sm:$0xff]   ;;  %v5643_v22 = vld [vmem:[#allocation2 + $0xe14] ss:$8 sps:$4 sm:$0xff]  }
 0x1d2   :  { %3927 = vmatprep.subr.bf16.mxu1 %v5562_v23  ;;  %v5646_v23 = vld [vmem:[#allocation2 + $0xf14] ss:$8 sps:$4 sm:$0xff]  }
 0x1d4   :  { %3885 = vmatpush2.bf16.msra.mxu0 %v5557_v29  ;;  %v5641_v29 = vld [vmem:[#allocation2 + $0xe10] ss:$8 sps:$4 sm:$0xff]  }
 0x1d5   :  { %3928 = vmatpush2.bf16.msra.mxu1 %v5560_v32  ;;  %3886 = vmatprep.subr.bf16.mxu0 %v5565_v33  ;;  %v5644_v32 = vld [vmem:[#allocation2 + $0xf10] ss:$8 sps:$4 sm:$0xff]   ;;  %v5649_v33 = vld [vmem:[#allocation2 + $0xe04] ss:$8 sps:$4 sm:$0xff]  }
 0x1d6   :  { %3929 = vmatprep.subr.bf16.mxu1 %v5568_v35  ;;  %v5652_v35 = vld [vmem:[#allocation2 + $0xf04] ss:$8 sps:$4 sm:$0xff]  }
 0x1d8   :  { %3887 = vmatpush2.bf16.msra.mxu0 %v5563_v36  ;;  %v5647_v36 = vld [vmem:[#allocation2 + $0xe00] ss:$8 sps:$4 sm:$0xff]  }
 0x1d9   :  { %3930 = vmatpush2.bf16.msra.mxu1 %v5566_v37  ;;  %3888 = vmatprep.subr.bf16.mxu0 %v5571_v38  ;;  %v5650_v37 = vld [vmem:[#allocation2 + $0xf00] ss:$8 sps:$4 sm:$0xff]   ;;  %v5655_v38 = vld [vmem:[#allocation2 + $0xef4] ss:$8 sps:$4 sm:$0xff]  }
 0x1da   :  { %3931 = vmatprep.subr.bf16.mxu1 %v5574_v24  ;;  %v5658_v24 = vld [vmem:[#allocation2 + $0xff4] ss:$8 sps:$4 sm:$0xff]  }
 0x1dc   :  { %3889 = vmatpush2.bf16.msra.mxu0 %v5569_v26  ;;  %v5653_v26 = vld [vmem:[#allocation2 + $0xef0] ss:$8 sps:$4 sm:$0xff]  }
 0x1dd   :  { %3932 = vmatpush2.bf16.msra.mxu1 %v5572_v40  ;;  %3890 = vmatprep.subr.bf16.mxu0 %v5577_v41  ;;  %v5656_v40 = vld [vmem:[#allocation2 + $0xff0] ss:$8 sps:$4 sm:$0xff]   ;;  %v5661_v41 = vld [vmem:[#allocation2 + $0xee4] ss:$8 sps:$4 sm:$0xff]  }
 0x1de   :  { %3933 = vmatprep.subr.bf16.mxu1 %v5580_v43  ;;  %v5664_v43 = vld [vmem:[#allocation2 + $0xfe4] ss:$8 sps:$4 sm:$0xff]  }
 0x1e0   :  { %3891 = vmatpush2.bf16.msra.mxu0 %v5575_v44  ;;  %v5659_v44 = vld [vmem:[#allocation2 + $0xee0] ss:$8 sps:$4 sm:$0xff]  }
 0x1e1   :  { %3934 = vmatpush2.bf16.msra.mxu1 %v5578_v45  ;;  %3892 = vmatprep.subr.bf16.mxu0 %v5583_v46  ;;  %v5662_v45 = vld [vmem:[#allocation2 + $0xfe0] ss:$8 sps:$4 sm:$0xff]   ;;  %v5667_v46 = vld [vmem:[#allocation2 + $0xed4] ss:$8 sps:$4 sm:$0xff]  }
 0x1e2   :  { %3935 = vmatprep.subr.bf16.mxu1 %v5586_v28  ;;  %v5670_v28 = vld [vmem:[#allocation2 + $0xfd4] ss:$8 sps:$4 sm:$0xff]  }
 0x1e4   :  { %3893 = vmatpush2.bf16.msra.mxu0 %v5581_v31  ;;  %v5665_v31 = vld [vmem:[#allocation2 + $0xed0] ss:$8 sps:$4 sm:$0xff]  }
 0x1e5   :  { %3936 = vmatpush2.bf16.msra.mxu1 %v5584_v34  ;;  %3894 = vmatprep.subr.bf16.mxu0 %v5589_v47  ;;  %v5668_v34 = vld [vmem:[#allocation2 + $0xfd0] ss:$8 sps:$4 sm:$0xff]   ;;  %v5673_v47 = vld [vmem:[#allocation2 + $0xec4] ss:$8 sps:$4 sm:$0xff]  }
 0x1e6   :  { %3937 = vmatprep.subr.bf16.mxu1 %v5592_v25  ;;  %v5676_v25 = vld [vmem:[#allocation2 + $0xfc4] ss:$8 sps:$4 sm:$0xff]  }
 0x1e8   :  { %3895 = vmatpush2.bf16.msra.mxu0 %v5587_v27  ;;  %v5671_v27 = vld [vmem:[#allocation2 + $0xec0] ss:$8 sps:$4 sm:$0xff]  }
 0x1e9   :  { %3938 = vmatpush2.bf16.msra.mxu1 %v5590_v39  ;;  %3896 = vmatprep.subr.bf16.mxu0 %v5595_v42  ;;  %v5674_v39 = vld [vmem:[#allocation2 + $0xfc0] ss:$8 sps:$4 sm:$0xff]   ;;  %v5679_v42 = vld [vmem:[#allocation2 + $0xeb4] ss:$8 sps:$4 sm:$0xff]  }
 0x1ea   :  { %3939 = vmatprep.subr.bf16.mxu1 %v5598_v51  ;;  %v5682_v51 = vld [vmem:[#allocation2 + $0xfb4] ss:$8 sps:$4 sm:$0xff]  }
 0x1ec   :  { %3897 = vmatpush2.bf16.msra.mxu0 %v5593_v53  ;;  %v5677_v53 = vld [vmem:[#allocation2 + $0xeb0] ss:$8 sps:$4 sm:$0xff]  }
 0x1ed   :  { %3940 = vmatpush2.bf16.msra.mxu1 %v5596_v54  ;;  %3898 = vmatprep.subr.bf16.mxu0 %v5601_v30  ;;  %v5680_v54 = vld [vmem:[#allocation2 + $0xfb0] ss:$8 sps:$4 sm:$0xff]   ;;  %v5685_v30 = vld [vmem:[#allocation2 + $0xea4] ss:$8 sps:$4 sm:$0xff]  }
 0x1ee   :  { %3941 = vmatprep.subr.bf16.mxu1 %v5604_v48  ;;  %v5688_v48 = vld [vmem:[#allocation2 + $0xfa4] ss:$8 sps:$4 sm:$0xff]  }
 0x1f0   :  { %3899 = vmatpush2.bf16.msra.mxu0 %v5599_v49  ;;  %v5683_v49 = vld [vmem:[#allocation2 + $0xea0] ss:$8 sps:$4 sm:$0xff]  }
 0x1f1   :  { %3942 = vmatpush2.bf16.msra.mxu1 %v5602_v50  ;;  %3954 = vmatprep.subr.bf16.mxu0 %v5607_v58  ;;  %v5686_v50 = vld [vmem:[#allocation2 + $0xfa0] ss:$8 sps:$4 sm:$0xff]   ;;  %v5691_v58 = vld [vmem:[#allocation2 + $0xe94] ss:$8 sps:$4 sm:$0xff]  }
 0x1f2   :  { %3997 = vmatprep.subr.bf16.mxu1 %v5610_v59  ;;  %v5694_v59 = vld [vmem:[#allocation2 + $0xf94] ss:$8 sps:$4 sm:$0xff]  }
 0x1f3   :  { %3901 = vmatmul.mubr.bf16.vlgmr.msra.gmra.mxu0 %v4343_v61  ;;  %v5689_v61 = vld [vmem:[#allocation2 + $0xe90] ss:$8 sps:$4 sm:$0xff]  }
 0x1f4   :  { %3944 = vmatmul.mubr.bf16.vlgmr.msra.gmra.mxu1 %v4345_v62  ;;  %3955 = vmatpush1.bf16.msra.mxu0 %v5605_v52  ;;  %v5692_v62 = vld [vmem:[#allocation2 + $0xf90] ss:$8 sps:$4 sm:$0xff]   ;;  %v5697_v52 = vld [vmem:[#allocation2 + $0xe84] ss:$8 sps:$4 sm:$0xff]  }
 0x1f5   :  { %3998 = vmatpush1.bf16.msra.mxu1 %v5608_v55  ;;  %3956 = vmatprep.subr.bf16.mxu0 %v5613_v56  ;;  %v5700_v55 = vld [vmem:[#allocation2 + $0xf84] ss:$8 sps:$4 sm:$0xff]   ;;  %v5695_v56 = vld [vmem:[#allocation2 + $0xe80] ss:$8 sps:$4 sm:$0xff]  }
 0x1f6   :  { %3999 = vmatprep.subr.bf16.mxu1 %v5616_v57  ;;  %3986 = vmatprep.mubr.bf16.mxu0 %v4348_v2  ;;  %v5698_v57 = vld [vmem:[#allocation2 + $0xf80] ss:$8 sps:$4 sm:$0xff]   ;;  %v4347_v2 = vcombine.low %v6046_v60, %v6055_v63  ;;  %v5704_v60 = vld [vmem:[%s6149_s3 + $0x30] sm:$0xff]  }
 0x1f7   :  { %4029 = vmatprep.mubr.bf16.mxu1 %v4350_v3  ;;  %v4349_v3 = vcombine.low %v6060_v0, %v6065_v1  ;;  %v5705_v63 = vld [vmem:[%s6149_s3 + $0x68] sm:$0xff]   ;;  %v5707_v1 = vld [vmem:[%s6149_s3 + $0x60] sm:$0xff]  }
 0x1f8   :  { %3957 = vmatpush1.bf16.msra.mxu0 %v5611_v4  ;;  %v5701_v4 = vld [vmem:[%s6149_s3 + $0x78] sm:$0xff]   ;;  %v5706_v0 = vld [vmem:[%s6149_s3 + $0x28] sm:$0xff]  }
 0x1f9   :  { %4000 = vmatpush1.bf16.msra.mxu1 %v5614_v5  ;;  %3958 = vmatprep.subr.bf16.mxu0 %v5619_v6  ;;  %v5702_v5 = vld [vmem:[%s6149_s3 + $0x38] sm:$0xff]   ;;  %v5703_v6 = vld [vmem:[%s6149_s3 + $0x70] sm:$0xff]  }
 0x1fa   :  { %4001 = vmatprep.subr.bf16.mxu1 %v5622_v7  ;;  %v5708_v7 = vld [vmem:[%s6149_s3 + $0x20] sm:$0xff]  }
 0x1fc   :  { %3959 = vmatpush1.bf16.msra.mxu0 %v5617_v8  ;;  %v5709_v8 = vld [vmem:[%s6149_s3 + $0x58] sm:$0xff]  }
 0x1fd   :  { %4002 = vmatpush1.bf16.msra.mxu1 %v5620_v9  ;;  %3960 = vmatprep.subr.bf16.mxu0 %v5625_v10  ;;  %v5710_v9 = vld [vmem:[%s6149_s3 + $0x18] sm:$0xff]   ;;  %v5711_v10 = vld [vmem:[%s6149_s3 + $0x50] sm:$0xff]  }
 0x1fe   :  { %4003 = vmatprep.subr.bf16.mxu1 %v5628_v11  ;;  %v5712_v11 = vld [vmem:[%s6149_s3 + $0x10] sm:$0xff]  }
 0x200   :  { %3961 = vmatpush1.bf16.msra.mxu0 %v5623_v12  ;;  %v5713_v12 = vld [vmem:[%s6149_s3 + $0x48] sm:$0xff]  }
 0x201   :  { %4004 = vmatpush1.bf16.msra.mxu1 %v5626_v13  ;;  %3962 = vmatprep.subr.bf16.mxu0 %v5631_v14  ;;  %v5714_v13 = vld [vmem:[%s6149_s3 + $0x8] sm:$0xff]   ;;  %v5715_v14 = vld [vmem:[%s6149_s3 + $0x40] sm:$0xff]  }
 0x202   :  { %4005 = vmatprep.subr.bf16.mxu1 %v5634_v15  ;;  %v5716_v15 = vld [vmem:[%s6149_s3] sm:$0xff]  }
 0x204   :  { %3963 = vmatpush1.bf16.msra.mxu0 %v5629_v16  ;;  %v5813_v16 = vmov 0.0  }
 0x205   :  { %4006 = vmatpush1.bf16.msra.mxu1 %v5632_v17  ;;  %3964 = vmatprep.subr.bf16.mxu0 %v5637_v18  ;;  %v3386_v17 = vpop.f32.mrf.mxu0  ;;  %v3429_v18 = vpop.f32.mrf.mxu1 }
 0x206   :  { %4007 = vmatprep.subr.bf16.mxu1 %v5640_v19 }
 0x207   :  { %v3388_v19 = vpop.f32.mrf.mxu0 }
 0x208   :  { %3965 = vmatpush1.bf16.msra.mxu0 %v5635_v20  ;;  %v3431_v20 = vpop.f32.mrf.mxu1 }
 0x209   :  { %4008 = vmatpush1.bf16.msra.mxu1 %v5638_v21  ;;  %3966 = vmatprep.subr.bf16.mxu0 %v5643_v22  ;;  %v3390_v21 = vpop.f32.mrf.mxu0 }
 0x20a   :  { %4009 = vmatprep.subr.bf16.mxu1 %v5646_v23  ;;  %v3433_v22 = vpop.f32.mrf.mxu1 }
 0x20b   :  { %v3392_v23 = vpop.f32.mrf.mxu0 }
 0x20c   :  { %3967 = vmatpush1.bf16.msra.mxu0 %v5641_v29  ;;  %v3435_v29 = vpop.f32.mrf.mxu1 }
 0x20d   :  { %4010 = vmatpush1.bf16.msra.mxu1 %v5644_v32  ;;  %3968 = vmatprep.subr.bf16.mxu0 %v5649_v33  ;;  %v3472_v32 = vpop.f32.mrf.mxu0 }
 0x20e   :  { %4011 = vmatprep.subr.bf16.mxu1 %v5652_v35  ;;  %v3515_v33 = vpop.f32.mrf.mxu1 }
 0x20f   :  { %v3474_v35 = vpop.f32.mrf.mxu0 }
 0x210   :  { %3969 = vmatpush1.bf16.msra.mxu0 %v5647_v36  ;;  %v3517_v36 = vpop.f32.mrf.mxu1 }
 0x211   :  { %4012 = vmatpush1.bf16.msra.mxu1 %v5650_v37  ;;  %3970 = vmatprep.subr.bf16.mxu0 %v5655_v38  ;;  %v3476_v37 = vpop.f32.mrf.mxu0 }
 0x212   :  { %4013 = vmatprep.subr.bf16.mxu1 %v5658_v24  ;;  %v3519_v38 = vpop.f32.mrf.mxu1 }
 0x213   :  { %v3478_v24 = vpop.f32.mrf.mxu0 }
 0x214   :  { %3971 = vmatpush2.bf16.msra.mxu0 %v5653_v26  ;;  %v3521_v26 = vpop.f32.mrf.mxu1 }
 0x215   :  { %4014 = vmatpush2.bf16.msra.mxu1 %v5656_v40  ;;  %3972 = vmatprep.subr.bf16.mxu0 %v5661_v41  ;;  %v3558_v40 = vpop.f32.mrf.mxu0 }
 0x216   :  { %4015 = vmatprep.subr.bf16.mxu1 %v5664_v43  ;;  %v3601_v41 = vpop.f32.mrf.mxu1 }
 0x217   :  { %v3560_v43 = vpop.f32.mrf.mxu0 }
 0x218   :  { %3973 = vmatpush2.bf16.msra.mxu0 %v5659_v44  ;;  %v3603_v44 = vpop.f32.mrf.mxu1 }
 0x219   :  { %4016 = vmatpush2.bf16.msra.mxu1 %v5662_v45  ;;  %3974 = vmatprep.subr.bf16.mxu0 %v5667_v46  ;;  %v3562_v45 = vpop.f32.mrf.mxu0 }
 0x21a   :  { %4017 = vmatprep.subr.bf16.mxu1 %v5670_v28  ;;  %v3605_v46 = vpop.f32.mrf.mxu1 }
 0x21b   :  { %v3564_v28 = vpop.f32.mrf.mxu0 }
 0x21c   :  { %3975 = vmatpush2.bf16.msra.mxu0 %v5665_v31  ;;  %v3607_v31 = vpop.f32.mrf.mxu1 }
 0x21d   :  { %4018 = vmatpush2.bf16.msra.mxu1 %v5668_v34  ;;  %3976 = vmatprep.subr.bf16.mxu0 %v5673_v47  ;;  %v3644_v34 = vpop.f32.mrf.mxu0 }
 0x21e   :  { %4019 = vmatprep.subr.bf16.mxu1 %v5676_v25  ;;  %v3687_v47 = vpop.f32.mrf.mxu1  ;;  %v622_v25 = vlaneseq }
 0x220   :  { %3977 = vmatpush2.bf16.msra.mxu0 %v5671_v27  ;;  %v3646_v27 = vpop.f32.mrf.mxu0 }
 0x221   :  { %4020 = vmatpush2.bf16.msra.mxu1 %v5674_v39  ;;  %3978 = vmatprep.subr.bf16.mxu0 %v5679_v42  ;;  %v3689_v39 = vpop.f32.mrf.mxu1  ;;  %v623_v42 = vshrl.u32 %v622_v25, 7 }
 0x222   :  { %4021 = vmatprep.subr.bf16.mxu1 %v5682_v51  ;;  %v3648_v51 = vpop.f32.mrf.mxu0 }
 0x224   :  { %3979 = vmatpush2.bf16.msra.mxu0 %v5677_v53  ;;  %v3691_v53 = vpop.f32.mrf.mxu1 }
 0x225   :  { %4022 = vmatpush2.bf16.msra.mxu1 %v5680_v54  ;;  %3980 = vmatprep.subr.bf16.mxu0 %v5685_v30  ;;  %v628_v54 = vsub.s32 1, %v623_v42  ;;  %v620_v30 = vld [vmem:[#allocation4] sm:$0x3] }
 0x226   :  { %4023 = vmatprep.subr.bf16.mxu1 %v5688_v48  ;;  %v624_v48 = vsub.s32 0, %v623_v42 }
 0x228   :  { %3981 = vmatpush2.bf16.msra.mxu0 %v5683_v49  ;;  %v3650_v49 = vpop.f32.mrf.mxu0 }
 0x229   :  { %4024 = vmatpush2.bf16.msra.mxu1 %v5686_v50  ;;  %3982 = vmatprep.subr.bf16.mxu0 %v5691_v58  ;;  %v3693_v50 = vpop.f32.mrf.mxu1  ;;  %v629_v58 = vrot.slane %v620_v30, %v628_v54 }
 0x22a   :  { %4025 = vmatprep.subr.bf16.mxu1 %v5694_v59  ;;  %v625_v59 = vrot.slane %v620_v30, %v624_v48 }
 0x22c   :  { %3983 = vmatpush2.bf16.msra.mxu0 %v5689_v61 }
 0x22d   :  { %4026 = vmatpush2.bf16.msra.mxu1 %v5692_v62  ;;  %3984 = vmatprep.subr.bf16.mxu0 %v5697_v52  ;;  %v3389_v52 = vadd.f32 %v3388_v19, %v629_v58 }
 0x22e   :  { %4027 = vmatprep.subr.bf16.mxu1 %v5700_v55  ;;  %v3387_v55 = vadd.f32 %v3386_v17, %v625_v59 }
 0x230   :  { %3985 = vmatpush2.bf16.msra.mxu0 %v5695_v56 }
 0x231   :  { %4028 = vmatpush2.bf16.msra.mxu1 %v5698_v57  ;;  %4886 = vmatprep.subr.bf16.mxu0 %v5701_v4  ;;  %v3393_v4 = vadd.f32 %v3392_v23, %v629_v58 }
 0x232   :  { %4913 = vmatprep.subr.bf16.mxu1 %v5813_v16 }
 0x233   :  { %3987 = vmatmul.mubr.bf16.vlgmr.msra.gmra.mxu0 %v4347_v2  ;;  %v3730_v61 = vpop.f32.mrf.mxu0  ;;  %v3391_v2 = vadd.f32 %v3390_v21, %v625_v59 }
 0x234   :  { %4030 = vmatmul.mubr.bf16.vlgmr.msra.gmra.mxu1 %v4349_v3  ;;  %4887 = vmatpush3.bf16.msra.mxu0 %v5702_v5  ;;  %v3773_v62 = vpop.f32.mrf.mxu1  ;;  %v3432_v3 = vadd.f32 %v3431_v20, %v3389_v52  ;;  %v3430_v5 = vadd.f32 %v3429_v18, %v3387_v55 }
 0x235   :  { %4888 = vmatprep.subr.bf16.mxu0 %v5703_v6  ;;  %v3732_v56 = vpop.f32.mrf.mxu0  ;;  %4921 = vmatprep.mubr.msk.bf16.mxu1 %vm5814_vm0, %v5813_v16 }
 0x236   :  { %v3775_v57 = vpop.f32.mrf.mxu1 }
 0x237   :  { %v3734_v6 = vpop.f32.mrf.mxu0 }
 0x238   :  { %4889 = vmatpush3.bf16.msra.mxu0 %v5704_v60  ;;  %v3777_v60 = vpop.f32.mrf.mxu1 }
 0x239   :  { %4890 = vmatprep.subr.bf16.mxu0 %v5705_v63  ;;  %v3434_v63 = vadd.f32 %v3433_v22, %v3391_v2 }
 0x23c   :  { %4891 = vmatpush3.bf16.msra.mxu0 %v5706_v0  ;;  %v3475_v0 = vadd.f32 %v3474_v35, %v3432_v3 }
 0x23d   :  { %4892 = vmatprep.subr.bf16.mxu0 %v5707_v1  ;;  %v3473_v1 = vadd.f32 %v3472_v32, %v3430_v5 }
 0x240   :  { %4893 = vmatpush3.bf16.msra.mxu0 %v5708_v7  ;;  %v3436_v7 = vadd.f32 %v3435_v29, %v3393_v4 }
 0x241   :  { %4894 = vmatprep.subr.bf16.mxu0 %v5709_v8  ;;  %v3477_v8 = vadd.f32 %v3476_v37, %v3434_v63 }
 0x243   :  { %v3520_v17 = vadd.f32 %v3519_v38, %v3477_v8 }
 0x244   :  { %4895 = vmatpush3.bf16.msra.mxu0 %v5710_v9  ;;  %v3736_v9 = vpop.f32.mrf.mxu0 }
 0x245   :  { %4896 = vmatprep.subr.bf16.mxu0 %v5711_v10  ;;  %v3779_v10 = vpop.f32.mrf.mxu1  ;;  %v3563_v23 = vadd.f32 %v3562_v45, %v3520_v17 }
 0x247   :  { %v3606_v32 = vadd.f32 %v3605_v46, %v3563_v23 }
 0x248   :  { %4897 = vmatpush3.bf16.msra.mxu0 %v5712_v11  ;;  %v3518_v11 = vadd.f32 %v3517_v36, %v3475_v0 }
 0x249   :  { %4898 = vmatprep.subr.bf16.mxu0 %v5713_v12  ;;  %v3479_v12 = vadd.f32 %v3478_v24, %v3436_v7  ;;  %v3649_v24 = vadd.f32 %v3648_v51, %v3606_v32 }
 0x24a   :  { %v3561_v19 = vadd.f32 %v3560_v43, %v3518_v11 }
 0x24b   :  { %v3522_v20 = vadd.f32 %v3521_v26, %v3479_v12 }
 0x24c   :  { %4899 = vmatpush3.bf16.msra.mxu0 %v5714_v13  ;;  %v3516_v13 = vadd.f32 %v3515_v33, %v3473_v1  ;;  %v3604_v42 = vadd.f32 %v3603_v44, %v3561_v19 }
 0x24d   :  { %4900 = vmatprep.subr.bf16.mxu0 %v5715_v14  ;;  %v3565_v22 = vadd.f32 %v3564_v28, %v3522_v20 }
 0x24e   :  { %v3559_v21 = vadd.f32 %v3558_v40, %v3516_v13  ;;  %v3647_v29 = vadd.f32 %v3646_v27, %v3604_v42  ;;  %v3692_v40 = vadd.f32 %v3691_v53, %v3649_v24  ;;  %v5718_v24 = vld [vmem:[%s6151_s5 + $0x10] sm:$0xff]  }
 0x24f   :  { %v3608_v36 = vadd.f32 %v3607_v31, %v3565_v22 }
 0x250   :  { %4901 = vmatpush3.bf16.msra.mxu0 %v5716_v15  ;;  %v3602_v35 = vadd.f32 %v3601_v41, %v3559_v21  ;;  %v3690_v33 = vadd.f32 %v3689_v39, %v3647_v29  ;;  %v3735_v28 = vadd.f32 %v3734_v6, %v3692_v40  ;;  %v4863_v40 = vld [vmem:[#allocation6] ss:$0 sm:$0xff] }
 0x251   :  { %v3651_v48 = vadd.f32 %v3650_v49, %v3608_v36  ;;  %v5717_v36 = vld [vmem:[%s6151_s5 + $0x18] sm:$0xff]  }
 0x252   :  { %v3645_v37 = vadd.f32 %v3644_v34, %v3602_v35  ;;  %v3733_v26 = vadd.f32 %v3732_v56, %v3690_v33  ;;  %v3778_v2 = vadd.f32 %v3777_v60, %v3735_v28  ;;  %4914 = vmatpush3.bf16.msra.mxu1 %v5717_v36  ;;  %v5719_v33 = vld [vmem:[%s6151_s5 + $0x8] sm:$0xff]  }
 0x253   :  { %v3694_v44 = vadd.f32 %v3693_v50, %v3651_v48  ;;  %4915 = vmatprep.subr.bf16.mxu1 %v5813_v16  ;;  %v5720_v48 = vld [vmem:[%s6151_s5] sm:$0xff]  }
 0x254   :  { %v3688_v58 = vadd.f32 %v3687_v47, %v3645_v37  ;;  %v3776_v41 = vadd.f32 %v3775_v57, %v3733_v26 }
 0x255   :  { %v3737_v46 = vadd.f32 %v3736_v9, %v3694_v44 }
 0x256   :  { %v3731_v45 = vadd.f32 %v3730_v61, %v3688_v58  ;;  %4916 = vmatpush3.bf16.msra.mxu1 %v5718_v24 }
 0x257   :  { %v3780_v39 = vadd.f32 %v3779_v10, %v3737_v46  ;;  %4917 = vmatprep.subr.bf16.mxu1 %v5813_v16 }
 0x258   :  { %v3774_v27 = vadd.f32 %v3773_v62, %v3731_v45 }
 0x25a   :  { %4918 = vmatpush3.bf16.msra.mxu1 %v5719_v33 }
 0x25b   :  { %4919 = vmatprep.subr.bf16.mxu1 %v5813_v16 }
 0x25e   :  { %4920 = vmatpush3.bf16.msra.mxu1 %v5720_v48 }
 0x273   :  { %v3816_v14 = vpop.f32.mrf.mxu0 }
 0x274   :  { %v3859_v15 = vpop.f32.mrf.mxu1  ;;  %v3817_v51 = vadd.f32 %v3816_v14, %v3774_v27  ;;  %v4880_v27 = vld [vmem:[#allocation7] ss:$0 sm:$0xff] }
 0x275   :  { %v3818_v18 = vpop.f32.mrf.mxu0 }
 0x276   :  { %v3861_v25 = vpop.f32.mrf.mxu1  ;;  %v3819_v31 = vadd.f32 %v3818_v18, %v3776_v41  ;;  %v3860_v56 = vadd.f32 %v3859_v15, %v3817_v51 }
 0x277   :  { %v3820_v54 = vpop.f32.mrf.mxu0 }
 0x278   :  { %v3863_v30 = vpop.f32.mrf.mxu1  ;;  %v3821_v49 = vadd.f32 %v3820_v54, %v3778_v2  ;;  %v3862_v4 = vadd.f32 %v3861_v25, %v3819_v31 }
 0x279   :  { %v3822_v38 = vpop.f32.mrf.mxu0 }
 0x27a   :  { %v3865_v43 = vpop.f32.mrf.mxu1  ;;  %v3823_v53 = vadd.f32 %v3822_v38, %v3780_v39  ;;  %v3864_v61 = vadd.f32 %v3863_v30, %v3821_v49 }
 0x27c   :  { %v3866_v57 = vadd.f32 %v3865_v43, %v3823_v53 }
 0x2b3   :  { %v3902_v59 = vpop.f32.mrf.mxu0 }
 0x2b4   :  { %v3945_v52 = vpop.f32.mrf.mxu1  ;;  %v3903_v63 = vadd.f32 %v3902_v59, %v3860_v56 }
 0x2b5   :  { %v3904_v34 = vpop.f32.mrf.mxu0 }
 0x2b6   :  { %v3947_v55 = vpop.f32.mrf.mxu1  ;;  %v3905_v5 = vadd.f32 %v3904_v34, %v3862_v4  ;;  %v3946_v8 = vadd.f32 %v3945_v52, %v3903_v63 }
 0x2b7   :  { %v3906_v47 = vpop.f32.mrf.mxu0 }
 0x2b8   :  { %v3949_v3 = vpop.f32.mrf.mxu1  ;;  %v3907_v0 = vadd.f32 %v3906_v47, %v3864_v61  ;;  %v3948_v7 = vadd.f32 %v3947_v55, %v3905_v5 }
 0x2b9   :  { %v3908_v50 = vpop.f32.mrf.mxu0 }
 0x2ba   :  { %v3951_v6 = vpop.f32.mrf.mxu1  ;;  %v3909_v60 = vadd.f32 %v3908_v50, %v3866_v57  ;;  %v3950_v11 = vadd.f32 %v3949_v3, %v3907_v0 }
 0x2bc   :  { %v3952_v15 = vadd.f32 %v3951_v6, %v3909_v60 }
 0x2f3   :  { %v3988_v62 = vpop.f32.mrf.mxu0 }
 0x2f4   :  { %v4031_v1 = vpop.f32.mrf.mxu1  ;;  %v3989_v13 = vadd.f32 %v3988_v62, %v3946_v8 }
 0x2f5   :  { %v3990_v9 = vpop.f32.mrf.mxu0 }
 0x2f6   :  { %v4033_v10 = vpop.f32.mrf.mxu1  ;;  %v3991_v12 = vadd.f32 %v3990_v9, %v3948_v7  ;;  %v4032_v25 = vadd.f32 %v4031_v1, %v3989_v13 }
 0x2f7   :  { %v3992_v14 = vpop.f32.mrf.mxu0 }
 0x2f8   :  { %v4035_v17 = vpop.f32.mrf.mxu1  ;;  %v3993_v19 = vadd.f32 %v3992_v14, %v3950_v11  ;;  %v4034_v20 = vadd.f32 %v4033_v10, %v3991_v12  ;;  %v4040_v37 = vmax.f32 %v4032_v25, 0.0 }
 0x2f9   :  { %v3994_v21 = vpop.f32.mrf.mxu0 }
 0x2fa   :  { %v4036_v23 = vadd.f32 %v4035_v17, %v3993_v19  ;;  %v3995_v18 = vadd.f32 %v3994_v21, %v3952_v15  ;;  %v4037_v42 = vpop.f32.mrf.mxu1  ;;  %v4041_v32 = vmax.f32 %v4034_v20, 0.0 }
 0x2fc   :  { %v4038_v22 = vadd.f32 %v4037_v42, %v3995_v18  ;;  %v4042_v35 = vmax.f32 %v4036_v23, 0.0 }
 0x2fe   :  { %v4043_v29 = vmax.f32 %v4038_v22, 0.0  ;;  %v4044_v30 = vpack.c.bf16 %v4042_v35, %v4040_v37 }
 0x300   :  { %v4045_v54 = vpack.c.bf16 %v4043_v29, %v4041_v32 }
 0x302   :  { %4213 = vmatprep.mubr.bf16.mxu0 %v4045_v54 }
 0x303   :  { %4214 = vmatmul.mubr.bf16.vlgmr.msra.gmra.mxu0 %v4044_v30 }
 0x3c3   :  { %v4902_v58 = vpop.f32.mrf.mxu0 }
 0x3c5   :  { %v4903_v38 = vpop.f32.mrf.mxu0 }
 0x3c6   :  { %v4904_v43 = vadd.f32 %v4903_v38, %v4902_v58 }
 0x3c7   :  { %v4905_v26 = vpop.f32.mrf.mxu0 }
 0x3c8   :  { %v4216_v59 = vadd.f32 %v4904_v43, %v4863_v40 }
 0x3c9   :  { %v4906_v45 = vpop.f32.mrf.mxu0 }
 0x3ca   :  { %v4907_v52 = vadd.f32 %v4906_v45, %v4905_v26  ;;  %v4222_v28 = vmax.f32 %v4216_v59, 0.0 }
 0x3cc   :  { %v4219_v44 = vadd.f32 %v4907_v52, %v4863_v40 }
 0x3ce   :  { %v4223_v41 = vmax.f32 %v4219_v44, 0.0 }
 0x3d0   :  { %v4224_v46 = vpack.c.bf16 %v4223_v41, %v4222_v28 }
 0x3d2   :  { %4922 = vmatmul.mubr.msk.bf16.vlgmr.msra.gmra.mxu1 %vm4264_vm1, %v4224_v46 }
 0x492   :  { %v4302_v34 = vpop.f32.mrf.mxu1 }
 0x493   :  { %v4303_v55 = vadd.f32 %v4880_v27, %v4302_v34 }
 0x494   :  { %v4923_v2 = vpop.f32.mrf.mxu1 }
 0x495   :  { %4310 = vst.msk [vmem:[%s6153_s7] sm:$0xff] %vm4309_vm2, %v4303_v55 }
 0x496   :  { %v4305_v16 = vpop.f32.mrf.mxu1 }
 0x497   :  { %v4306_v31 = vadd.f32 %v4880_v27, %v4305_v16 }
 0x498   :  { %v4924_v51 = vpop.f32.mrf.mxu1 }
 0x499   :  { %4311 = vst.msk [vmem:[%s6153_s7 + $0x8] sm:$0xff] %vm4309_vm2, %v4306_v31 }
 0x49a   :  { %4316 = vsyncpa [#allocation3], 1 }
 0x49b   :  { %4317 = vsyncpa [#allocation5], 1 }
 0x49c   :  { %4318 = vsyncpa [#allocation8], 1 }

</bundles_post_ra>
